<compile_context>
chip_gen: v7x
topology: tpu7x:2x2x1
jax: 0.10.0
libtpu: 0.0.40
codegen_flags: <defaults>
</compile_context>

<pallas_src>
import functools
import math

import jax
import jax.numpy as jnp
from jax.experimental import pallas as pl
from jax.experimental.pallas import tpu as pltpu  # noqa: F401  (kept for TPU tooling)

SQRT1_2 = 0.7071067811865476
# The ViT-Hybrid reference implementation uses LayerNorm(eps=1e-6) everywhere
# (torch.nn.LayerNorm default would be 1e-5).
LN_EPS = 1e-6


# --------------------------------------------------------------------------
# helpers used inside the kernel (operate on values, not refs)
# --------------------------------------------------------------------------
def _gelu(y):  # exact GELU (matches torch.nn.GELU default)
    return 0.5 * y * (1.0 + jax.lax.erf(y * SQRT1_2))


def _layernorm(x, g, b, eps=LN_EPS):
    mean = jnp.mean(x, axis=-1, keepdims=True)
    var = jnp.mean(jnp.square(x - mean), axis=-1, keepdims=True)
    return (x - mean) * jax.lax.rsqrt(var + eps) * g + b


# --------------------------------------------------------------------------
# The single fused kernel: stem conv + patch embed + L transformer layers +
# final LayerNorm + individual/combine head (one invocation, batch in rows).
# --------------------------------------------------------------------------
def _encoder_kernel(cols_ref, stem_w_ref, patch_w_ref, add_ref,
                    ln1_g_ref, ln1_b_ref, qkv_w_ref, qkv_b_ref,
                    out_w_ref, out_b_ref, ln2_g_ref, ln2_b_ref,
                    fc1_w_ref, fc1_b_ref, fc2_w_ref, fc2_b_ref,
                    enc_g_ref, enc_b_ref,
                    ind_x_ref, ind_w_ref, ind_b_ref,
                    comb_w_ref, comb_b_ref,
                    *out_refs,
                    num_layers, batch, seq, heads, head_dim, hidden, scale,
                    with_probs):
    if with_probs:
        out_ref, probs_ref = out_refs
    else:
        (out_ref,) = out_refs

    f32 = jnp.float32
    bf16 = jnp.bfloat16
    H, Dh, N, B = hidden, head_dim, seq, batch

    # ---- stem conv (+bias via indicator column) + ReLU + patch embedding ----
    # cols: (B*N, S*K+1) bf16, cls rows are all-zero (indicator incl.) so they
    # stay exactly 0 through ReLU and the patch-embed matmul.
    feat = jnp.dot(cols_ref[...], stem_w_ref[...], preferred_element_type=f32)
    feat = jnp.maximum(feat, 0.0)                                   # (B*N, S*Cs)
    h = jnp.dot(feat.astype(bf16), patch_w_ref[...],
                preferred_element_type=f32)
    # add_ref row for cls token carries cls_token + pos[0]; patch rows carry
    # patch bias + pos[t]  (folded host-side, no in-kernel concat needed).
    h = h + add_ref[...]                                            # (B*N, H)
    # nn.Dropout: identity in eval mode.

    for l in range(num_layers):
        # ---------------- self-attention block ----------------
        xn = _layernorm(h, ln1_g_ref[l], ln1_b_ref[l])
        qkv = jnp.dot(xn.astype(bf16), qkv_w_ref[l],
                      preferred_element_type=f32) + qkv_b_ref[l]    # (B*N, 3H)
        qkv = qkv.astype(bf16)

        ctx_rows = []
        for b in range(B):                                          # unrolled
            qkv_b = qkv[b * N:(b + 1) * N]                          # (N, 3H)
            ctx_heads = []
            for hh in range(heads):                                 # unrolled
                qh = qkv_b[:, hh * Dh:(hh + 1) * Dh]
                kh = qkv_b[:, H + hh * Dh:H + (hh + 1) * Dh]
                vh = qkv_b[:, 2 * H + hh * Dh:2 * H + (hh + 1) * Dh]
                # q @ k^T via contracting dims (no transposed copy of k)
                s = jax.lax.dot_general(qh, kh, (((1,), (1,)), ((), ())),
                                        preferred_element_type=f32) * scale
                s = s - jnp.max(s, axis=-1, keepdims=True)
                e = jnp.exp(s)
                p = e * pl.reciprocal(jnp.sum(e, axis=-1, keepdims=True),
                                      approx=True)                  # (N, N)
                if with_probs:
                    probs_ref[l, b * heads + hh] = p.astype(probs_ref.dtype)
                ctx_heads.append(jnp.dot(p.astype(bf16), vh,
                                         preferred_element_type=f32))
            ctx_rows.append(jnp.concatenate(ctx_heads, axis=1))     # (N, H)
        ctx = jnp.concatenate(ctx_rows, axis=0)                     # (B*N, H)
        # single out-projection matmul per layer (merged over heads & batch)
        attn_out = jnp.dot(ctx.astype(bf16), out_w_ref[l],
                           preferred_element_type=f32) + out_b_ref[l]
        h = h + attn_out

        # ---------------- MLP block ----------------
        xn2 = _layernorm(h, ln2_g_ref[l], ln2_b_ref[l])
        m = jnp.dot(xn2.astype(bf16), fc1_w_ref[l],
                    preferred_element_type=f32) + fc1_b_ref[l]
        m = _gelu(m)
        m = jnp.dot(m.astype(bf16), fc2_w_ref[l],
                    preferred_element_type=f32) + fc2_b_ref[l]
        h = h + m

    # final encoder LayerNorm
    h = _layernorm(h, enc_g_ref[...], enc_b_ref[...])

    # ---------------- ViT_Hybrid_encoder head ----------------
    cls_tok = jnp.concatenate([h[b * N:b * N + 1, :] for b in range(B)],
                              axis=0)                               # (B, H)
    ind = jnp.dot(ind_x_ref[...], ind_w_ref[...],
                  preferred_element_type=f32) + ind_b_ref[...]
    ind = _gelu(ind)                                                # (B, n_ind)
    cw = comb_w_ref[...]                                            # (H+n_ind, H)
    # combine_nn(cat([cls, ind], 1)) == cls @ cw[:H] + ind @ cw[H:] (no lane concat)
    out = (jnp.dot(cls_tok, cw[:H, :], preferred_element_type=f32)
           + jnp.dot(ind, cw[H:, :], preferred_element_type=f32)
           + comb_b_ref[...])
    out_ref[...] = _gelu(out).astype(out_ref.dtype)


# --------------------------------------------------------------------------
# Model config / parameters
# --------------------------------------------------------------------------
CFG = dict(
    channels=4, img_size=16,
    stem_width=8, stem_kernel=2,          # simplified hybrid backbone
    patch_size=4,
    hidden=32, heads=4, head_dim=8, mlp=64, num_layers=2,
    n_individual=6,
)


def init_params(key, cfg):
    keys = iter(jax.random.split(key, 128))

    def nrm(shape, scale=0.02):
        return (scale * jax.random.normal(next(keys), shape)).astype(jnp.float32)

    H, M = cfg["hidden"], cfg["mlp"]
    p = {
        "stem_w": nrm((cfg["stem_width"], cfg["channels"],
                       cfg["stem_kernel"], cfg["stem_kernel"])),
        "stem_b": jnp.zeros((cfg["stem_width"],), jnp.float32),
        "patch_w": nrm((H, cfg["stem_width"], cfg["patch_size"], cfg["patch_size"])),
        "patch_b": jnp.zeros((H,), jnp.float32),
        "cls_token": nrm((1, 1, H)),
        "pos_emb": None,
        "enc_ln_g": jnp.ones((H,), jnp.float32),
        "enc_ln_b": jnp.zeros((H,), jnp.float32),
        "ind_w": nrm((cfg["n_individual"], cfg["n_individual"])),
        "ind_b": jnp.zeros((cfg["n_individual"],), jnp.float32),
        "comb_w": nrm((H + cfg["n_individual"], H)),
        "comb_b": jnp.zeros((H,), jnp.float32),
        "layers": [],
    }
    feat_size = cfg["img_size"] // cfg["stem_kernel"]
    n_patches = (feat_size // cfg["patch_size"]) ** 2
    p["pos_emb"] = nrm((1, n_patches + 1, H))
    for _ in range(cfg["num_layers"]):
        p["layers"].append({
            "ln1_g": jnp.ones((H,), jnp.float32), "ln1_b": jnp.zeros((H,), jnp.float32),
            "q_w": nrm((H, H)), "q_b": jnp.zeros((H,), jnp.float32),
            "k_w": nrm((H, H)), "k_b": jnp.zeros((H,), jnp.float32),
            "v_w": nrm((H, H)), "v_b": jnp.zeros((H,), jnp.float32),
            "out_w": nrm((H, H)), "out_b": jnp.zeros((H,), jnp.float32),
            "ln2_g": jnp.ones((H,), jnp.float32), "ln2_b": jnp.zeros((H,), jnp.float32),
            "fc1_w": nrm((H, M)), "fc1_b": jnp.zeros((M,), jnp.float32),
            "fc2_w": nrm((M, H)), "fc2_b": jnp.zeros((H,), jnp.float32),
        })
    return p


# --------------------------------------------------------------------------
# Forward pass (== ViT_Hybrid_encoder.forward, eval mode)
# --------------------------------------------------------------------------
def vit_hybrid_encoder(params, x, individual_feat, cfg, return_attn=False):
    B = x.shape[0]
    C, img = cfg["channels"], cfg["img_size"]
    ks, Cs, ps = cfg["stem_kernel"], cfg["stem_width"], cfg["patch_size"]
    H, heads, Dh = cfg["hidden"], cfg["heads"], cfg["head_dim"]
    L, M, n_ind = cfg["num_layers"], cfg["mlp"], cfg["n_individual"]
    dtype = x.dtype
    wdt = jnp.bfloat16
    assert heads * Dh == H

    pg = (img // ks) // ps            # patch grid per side (over stem output)
    n_patches = pg * pg
    N = n_patches + 1
    S = ps * ps                       # stem-output positions per patch
    K = C * ks * ks                   # stem im2col column length

    # ---- stem + patch-embed columns, grouped by patch (pure index math) ----
    # TODO(synk): full ResNetV2 hybrid backbone (bottleneck stages + GroupNorm)
    #             simplified to a single patchifying conv + ReLU stem.
    x8 = x.reshape(B, C, pg, ps, ks, pg, ps, ks)
    x8 = x8.transpose(0, 2, 5, 3, 6, 1, 4, 7)          # (b,pi,pj,di,dj,cin,u,v)
    cols = x8.reshape(B, n_patches, S * K)
    ones = jnp.ones((B, n_patches, 1), x.dtype)        # stem-bias indicator col
    cols = jnp.concatenate([cols, ones], axis=-1)      # (B, np, S*K+1)
    # prepend an all-zero row per batch -> cls-token slot stays exactly zero
    cols = jnp.concatenate([jnp.zeros((B, 1, S * K + 1), x.dtype), cols], axis=1)
    cols2 = cols.reshape(B * N, S * K + 1).astype(wdt)

    # block-diagonal stem weight + bias row: stem conv + patch-order im2col in
    # a single lane-dense matmul, no in-kernel reshape/relayout.
    stem_wm = params["stem_w"].reshape(Cs, K).T                          # (K, Cs)
    stem_w2 = jnp.kron(jnp.eye(S, dtype=stem_wm.dtype), stem_wm)        # (S*K, S*Cs)
    bias_row = jnp.tile(params["stem_b"], S).reshape(1, S * Cs)
    stem_w2 = jnp.concatenate([stem_w2, bias_row], axis=0).astype(wdt)  # (S*K+1, S*Cs)

    # patch-embed weight, rows ordered (di, dj, c_stem) to match stem lanes
    patch_w2 = params["patch_w"].transpose(2, 3, 1, 0).reshape(S * Cs, H).astype(wdt)

    # cls token, patch bias and position embedding folded into one add term
    row0 = params["cls_token"].reshape(1, H)
    rows = jnp.broadcast_to(params["patch_b"].reshape(1, H), (n_patches, H))
    add_term = jnp.concatenate([row0, rows], axis=0) + params["pos_emb"][0]   # (N, H)
    add_term = jnp.tile(add_term, (B, 1)).astype(jnp.float32)                 # (B*N, H)

    def stack(name):
        return jnp.stack([lp[name] for lp in params["layers"]], axis=0)

    ln1_g = stack("ln1_g").reshape(L, 1, H); ln1_b = stack("ln1_b").reshape(L, 1, H)
    qkv_w = jnp.concatenate([stack("q_w"), stack("k_w"), stack("v_w")],
                            axis=2).astype(wdt)                              # (L,H,3H)
    qkv_b = jnp.concatenate([stack("q_b"), stack("k_b"), stack("v_b")],
                            axis=1).reshape(L, 1, 3 * H)
    out_w = stack("out_w").astype(wdt); out_b = stack("out_b").reshape(L, 1, H)
    ln2_g = stack("ln2_g").reshape(L, 1, H); ln2_b = stack("ln2_b").reshape(L, 1, H)
    fc1_w = stack("fc1_w").astype(wdt); fc1_b = stack("fc1_b").reshape(L, 1, M)
    fc2_w = stack("fc2_w").astype(wdt); fc2_b = stack("fc2_b").reshape(L, 1, H)

    enc_g = params["enc_ln_g"].reshape(1, H)
    enc_b = params["enc_ln_b"].reshape(1, H)
    ind_x = individual_feat.reshape(B, n_ind).astype(jnp.float32)
    ind_w = params["ind_w"]
    ind_b = params["ind_b"].reshape(1, n_ind)
    comb_w = params["comb_w"]
    comb_b = params["comb_b"].reshape(1, H)

    kernel = functools.partial(
        _encoder_kernel, num_layers=L, batch=B, seq=N, heads=heads,
        head_dim=Dh, hidden=H, scale=1.0 / math.sqrt(Dh), with_probs=return_attn)

    if return_attn:
        out_shape = (jax.ShapeDtypeStruct((B, H), jnp.float32),
                     jax.ShapeDtypeStruct((L, B * heads, N, N), jnp.float32))
    else:
        out_shape = jax.ShapeDtypeStruct((B, H), jnp.float32)

    # Single invocation (no grid): everything is VMEM/vreg resident; batch is
    # folded into rows so no per-grid-step overhead on single-TC chips.
    res = pl.pallas_call(kernel, out_shape=out_shape)(
        cols2, stem_w2, patch_w2, add_term,
        ln1_g, ln1_b, qkv_w, qkv_b, out_w, out_b, ln2_g, ln2_b,
        fc1_w, fc1_b, fc2_w, fc2_b, enc_g, enc_b,
        ind_x, ind_w, ind_b, comb_w, comb_b)

    if return_attn:
        out, probs = res
        return out.astype(dtype), probs.reshape(L, B, heads, N, N)
    return res.astype(dtype), None


# --------------------------------------------------------------------------
if __name__ == "__main__":
    key = jax.random.PRNGKey(0)
    kx, kf, kp = jax.random.split(key, 3)

    B = 2
    x = jax.random.normal(kx, (B, CFG["channels"], CFG["img_size"], CFG["img_size"]),
                          dtype=jnp.float32)
    individual_feat = jax.random.normal(kf, (B, CFG["n_individual"]), dtype=jnp.float32)

    params = init_params(kp, CFG)

    fwd = jax.jit(functools.partial(vit_hybrid_encoder, cfg=CFG))              # fast path
    fwd_vis = jax.jit(functools.partial(vit_hybrid_encoder, cfg=CFG,
                                        return_attn=True))                     # vis path

    out, _ = fwd(params, x, individual_feat)
    out = jax.block_until_ready(out)

    out_v, attn = fwd_vis(params, x, individual_feat)
    out_v = jax.block_until_ready(out_v)
    attn = jax.block_until_ready(attn)

    feat_size = CFG["img_size"] // CFG["stem_kernel"]
    N = (feat_size // CFG["patch_size"]) ** 2 + 1
    assert out.shape == (B, CFG["hidden"])
    assert attn.shape == (CFG["num_layers"], B, CFG["heads"], N, N)
    assert jnp.all(jnp.isfinite(out)) and jnp.all(jnp.isfinite(attn))
    assert jnp.allclose(out, out_v, atol=1e-3, rtol=1e-3)
    print("KERNEL_OK")
</pallas_src>

<mosaic_0001>
module attributes {stable_mosaic.version = 11 : i64} {
  func.func @_encoder_kernel(%arg0: memref<10x257xbf16, #tpu.memory_space<vmem>>, %arg1: memref<257x128xbf16, #tpu.memory_space<vmem>>, %arg2: memref<128x32xbf16, #tpu.memory_space<vmem>>, %arg3: memref<10x32xf32, #tpu.memory_space<vmem>>, %arg4: memref<2x1x32xf32, #tpu.memory_space<vmem>>, %arg5: memref<2x1x32xf32, #tpu.memory_space<vmem>>, %arg6: memref<2x32x96xbf16, #tpu.memory_space<vmem>>, %arg7: memref<2x1x96xf32, #tpu.memory_space<vmem>>, %arg8: memref<2x32x32xbf16, #tpu.memory_space<vmem>>, %arg9: memref<2x1x32xf32, #tpu.memory_space<vmem>>, %arg10: memref<2x1x32xf32, #tpu.memory_space<vmem>>, %arg11: memref<2x1x32xf32, #tpu.memory_space<vmem>>, %arg12: memref<2x32x64xbf16, #tpu.memory_space<vmem>>, %arg13: memref<2x1x64xf32, #tpu.memory_space<vmem>>, %arg14: memref<2x64x32xbf16, #tpu.memory_space<vmem>>, %arg15: memref<2x1x32xf32, #tpu.memory_space<vmem>>, %arg16: memref<1x32xf32, #tpu.memory_space<vmem>>, %arg17: memref<1x32xf32, #tpu.memory_space<vmem>>, %arg18: memref<2x6xf32, #tpu.memory_space<vmem>>, %arg19: memref<6x6xf32, #tpu.memory_space<vmem>>, %arg20: memref<1x6xf32, #tpu.memory_space<vmem>>, %arg21: memref<38x32xf32, #tpu.memory_space<vmem>>, %arg22: memref<1x32xf32, #tpu.memory_space<vmem>>, %arg23: memref<2x32xf32, #tpu.memory_space<vmem>>) attributes {dimension_semantics = [], scalar_prefetch = 0 : i64, scratch_operands = 0 : i64, tpu.core_type = #tpu.core_type<tc>} {
    %c0 = arith.constant 0 : index
    %c0_0 = arith.constant 0 : index
    %0 = vector.load %arg0[%c0, %c0_0] : memref<10x257xbf16, #tpu.memory_space<vmem>>, vector<10x257xbf16>
    %c0_1 = arith.constant 0 : index
    %c0_2 = arith.constant 0 : index
    %1 = vector.load %arg1[%c0_1, %c0_2] : memref<257x128xbf16, #tpu.memory_space<vmem>>, vector<257x128xbf16>
    %cst = arith.constant dense<0.000000e+00> : vector<10x128xf32>
    %2 = tpu.matmul %0, %1, %cst {dimension_numbers = #tpu.dot_dimension_numbers<[1], [0], [0], [1], [0, 0, 1, 1], [], []>} : vector<10x257xbf16>, vector<257x128xbf16>, vector<10x128xf32> -> vector<10x128xf32>
    %cst_3 = arith.constant 0.000000e+00 : f32
    %3 = vector.broadcast %cst_3 : f32 to vector<10x128xf32>
    %4 = arith.maximumf %2, %3 : vector<10x128xf32>
    %5 = arith.truncf %4 : vector<10x128xf32> to vector<10x128xbf16>
    %c0_4 = arith.constant 0 : index
    %c0_5 = arith.constant 0 : index
    %6 = vector.load %arg2[%c0_4, %c0_5] : memref<128x32xbf16, #tpu.memory_space<vmem>>, vector<128x32xbf16>
    %cst_6 = arith.constant dense<0.000000e+00> : vector<10x32xf32>
    %7 = tpu.matmul %5, %6, %cst_6 {dimension_numbers = #tpu.dot_dimension_numbers<[1], [0], [0], [1], [0, 0, 1, 1], [], []>} : vector<10x128xbf16>, vector<128x32xbf16>, vector<10x32xf32> -> vector<10x32xf32>
    %c0_7 = arith.constant 0 : index
    %c0_8 = arith.constant 0 : index
    %8 = vector.load %arg3[%c0_7, %c0_8] : memref<10x32xf32, #tpu.memory_space<vmem>>, vector<10x32xf32>
    %9 = arith.addf %7, %8 : vector<10x32xf32>
    %c0_9 = arith.constant 0 : index
    %c0_10 = arith.constant 0 : index
    %c0_11 = arith.constant 0 : index
    %10 = vector.load %arg4[%c0_9, %c0_10, %c0_11] : memref<2x1x32xf32, #tpu.memory_space<vmem>>, vector<1x1x32xf32>
    %11 = vector.shape_cast %10 : vector<1x1x32xf32> to vector<1x32xf32>
    %c0_12 = arith.constant 0 : index
    %c0_13 = arith.constant 0 : index
    %c0_14 = arith.constant 0 : index
    %12 = vector.load %arg5[%c0_12, %c0_13, %c0_14] : memref<2x1x32xf32, #tpu.memory_space<vmem>>, vector<1x1x32xf32>
    %13 = vector.shape_cast %12 : vector<1x1x32xf32> to vector<1x32xf32>
    %cst_15 = arith.constant dense<0.000000e+00> : vector<10xf32>
    %14 = vector.multi_reduction <add>, %9, %cst_15 [1] : vector<10x32xf32> to vector<10xf32>
    %15 = vector.shape_cast %14 : vector<10xf32> to vector<10x1xf32>
    %cst_16 = arith.constant 3.200000e+01 : f32
    %16 = vector.broadcast %cst_16 : f32 to vector<10x1xf32>
    %17 = arith.divf %15, %16 : vector<10x1xf32>
    %18 = vector.broadcast %17 : vector<10x1xf32> to vector<10x32xf32>
    %19 = arith.subf %9, %18 : vector<10x32xf32>
    %20 = arith.mulf %19, %19 : vector<10x32xf32>
    %cst_17 = arith.constant dense<0.000000e+00> : vector<10xf32>
    %21 = vector.multi_reduction <add>, %20, %cst_17 [1] : vector<10x32xf32> to vector<10xf32>
    %22 = vector.shape_cast %21 : vector<10xf32> to vector<10x1xf32>
    %cst_18 = arith.constant 3.200000e+01 : f32
    %23 = vector.broadcast %cst_18 : f32 to vector<10x1xf32>
    %24 = arith.divf %22, %23 : vector<10x1xf32>
    %25 = vector.broadcast %17 : vector<10x1xf32> to vector<10x32xf32>
    %26 = arith.subf %9, %25 : vector<10x32xf32>
    %cst_19 = arith.constant 9.99999997E-7 : f32
    %27 = vector.broadcast %cst_19 : f32 to vector<10x1xf32>
    %28 = arith.addf %24, %27 : vector<10x1xf32>
    %29 = math.rsqrt %28 : vector<10x1xf32>
    %30 = vector.broadcast %29 : vector<10x1xf32> to vector<10x32xf32>
    %31 = arith.mulf %26, %30 : vector<10x32xf32>
    %32 = vector.broadcast %11 : vector<1x32xf32> to vector<10x32xf32>
    %33 = arith.mulf %31, %32 : vector<10x32xf32>
    %34 = vector.broadcast %13 : vector<1x32xf32> to vector<10x32xf32>
    %35 = arith.addf %33, %34 : vector<10x32xf32>
    %36 = arith.truncf %35 : vector<10x32xf32> to vector<10x32xbf16>
    %c0_20 = arith.constant 0 : index
    %c0_21 = arith.constant 0 : index
    %c0_22 = arith.constant 0 : index
    %37 = vector.load %arg6[%c0_20, %c0_21, %c0_22] : memref<2x32x96xbf16, #tpu.memory_space<vmem>>, vector<1x32x96xbf16>
    %38 = vector.shape_cast %37 : vector<1x32x96xbf16> to vector<32x96xbf16>
    %cst_23 = arith.constant dense<0.000000e+00> : vector<10x96xf32>
    %39 = tpu.matmul %36, %38, %cst_23 {dimension_numbers = #tpu.dot_dimension_numbers<[1], [0], [0], [1], [0, 0, 1, 1], [], []>} : vector<10x32xbf16>, vector<32x96xbf16>, vector<10x96xf32> -> vector<10x96xf32>
    %c0_24 = arith.constant 0 : index
    %c0_25 = arith.constant 0 : index
    %c0_26 = arith.constant 0 : index
    %40 = vector.load %arg7[%c0_24, %c0_25, %c0_26] : memref<2x1x96xf32, #tpu.memory_space<vmem>>, vector<1x1x96xf32>
    %41 = vector.shape_cast %40 : vector<1x1x96xf32> to vector<1x96xf32>
    %42 = vector.broadcast %41 : vector<1x96xf32> to vector<10x96xf32>
    %43 = arith.addf %39, %42 : vector<10x96xf32>
    %44 = arith.truncf %43 : vector<10x96xf32> to vector<10x96xbf16>
    %45 = vector.extract_strided_slice %44 {offsets = [0, 0], sizes = [5, 96], strides = [1, 1]} : vector<10x96xbf16> to vector<5x96xbf16>
    %46 = vector.extract_strided_slice %45 {offsets = [0, 0], sizes = [5, 8], strides = [1, 1]} : vector<5x96xbf16> to vector<5x8xbf16>
    %47 = vector.extract_strided_slice %45 {offsets = [0, 32], sizes = [5, 8], strides = [1, 1]} : vector<5x96xbf16> to vector<5x8xbf16>
    %48 = vector.extract_strided_slice %45 {offsets = [0, 64], sizes = [5, 8], strides = [1, 1]} : vector<5x96xbf16> to vector<5x8xbf16>
    %cst_27 = arith.constant dense<0.000000e+00> : vector<5x5xf32>
    %49 = tpu.matmul %46, %47, %cst_27 {dimension_numbers = #tpu.dot_dimension_numbers<[1], [1], [0], [0], [0, 0, 1, 0], [], []>} : vector<5x8xbf16>, vector<5x8xbf16>, vector<5x5xf32> -> vector<5x5xf32>
    %cst_28 = arith.constant 0.353553385 : f32
    %50 = vector.broadcast %cst_28 : f32 to vector<5x5xf32>
    %51 = arith.mulf %49, %50 : vector<5x5xf32>
    %cst_29 = arith.constant dense<0xFF800000> : vector<5xf32>
    %52 = vector.multi_reduction <maximumf>, %51, %cst_29 [1] : vector<5x5xf32> to vector<5xf32>
    %53 = vector.shape_cast %52 : vector<5xf32> to vector<5x1xf32>
    %54 = vector.broadcast %53 : vector<5x1xf32> to vector<5x5xf32>
    %55 = arith.subf %51, %54 : vector<5x5xf32>
    %56 = math.exp %55 : vector<5x5xf32>
    %cst_30 = arith.constant dense<0.000000e+00> : vector<5xf32>
    %57 = vector.multi_reduction <add>, %56, %cst_30 [1] : vector<5x5xf32> to vector<5xf32>
    %58 = vector.shape_cast %57 : vector<5xf32> to vector<5x1xf32>
    %59 = tpu.reciprocal %58 {approx = true} : vector<5x1xf32> -> vector<5x1xf32>
    %60 = vector.broadcast %59 : vector<5x1xf32> to vector<5x5xf32>
    %61 = arith.mulf %56, %60 : vector<5x5xf32>
    %62 = arith.truncf %61 : vector<5x5xf32> to vector<5x5xbf16>
    %cst_31 = arith.constant dense<0.000000e+00> : vector<5x8xf32>
    %63 = tpu.matmul %62, %48, %cst_31 {dimension_numbers = #tpu.dot_dimension_numbers<[1], [0], [0], [1], [0, 0, 1, 1], [], []>} : vector<5x5xbf16>, vector<5x8xbf16>, vector<5x8xf32> -> vector<5x8xf32>
    %64 = vector.extract_strided_slice %45 {offsets = [0, 8], sizes = [5, 8], strides = [1, 1]} : vector<5x96xbf16> to vector<5x8xbf16>
    %65 = vector.extract_strided_slice %45 {offsets = [0, 40], sizes = [5, 8], strides = [1, 1]} : vector<5x96xbf16> to vector<5x8xbf16>
    %66 = vector.extract_strided_slice %45 {offsets = [0, 72], sizes = [5, 8], strides = [1, 1]} : vector<5x96xbf16> to vector<5x8xbf16>
    %cst_32 = arith.constant dense<0.000000e+00> : vector<5x5xf32>
    %67 = tpu.matmul %64, %65, %cst_32 {dimension_numbers = #tpu.dot_dimension_numbers<[1], [1], [0], [0], [0, 0, 1, 0], [], []>} : vector<5x8xbf16>, vector<5x8xbf16>, vector<5x5xf32> -> vector<5x5xf32>
    %cst_33 = arith.constant 0.353553385 : f32
    %68 = vector.broadcast %cst_33 : f32 to vector<5x5xf32>
    %69 = arith.mulf %67, %68 : vector<5x5xf32>
    %cst_34 = arith.constant dense<0xFF800000> : vector<5xf32>
    %70 = vector.multi_reduction <maximumf>, %69, %cst_34 [1] : vector<5x5xf32> to vector<5xf32>
    %71 = vector.shape_cast %70 : vector<5xf32> to vector<5x1xf32>
    %72 = vector.broadcast %71 : vector<5x1xf32> to vector<5x5xf32>
    %73 = arith.subf %69, %72 : vector<5x5xf32>
    %74 = math.exp %73 : vector<5x5xf32>
    %cst_35 = arith.constant dense<0.000000e+00> : vector<5xf32>
    %75 = vector.multi_reduction <add>, %74, %cst_35 [1] : vector<5x5xf32> to vector<5xf32>
    %76 = vector.shape_cast %75 : vector<5xf32> to vector<5x1xf32>
    %77 = tpu.reciprocal %76 {approx = true} : vector<5x1xf32> -> vector<5x1xf32>
    %78 = vector.broadcast %77 : vector<5x1xf32> to vector<5x5xf32>
    %79 = arith.mulf %74, %78 : vector<5x5xf32>
    %80 = arith.truncf %79 : vector<5x5xf32> to vector<5x5xbf16>
    %cst_36 = arith.constant dense<0.000000e+00> : vector<5x8xf32>
    %81 = tpu.matmul %80, %66, %cst_36 {dimension_numbers = #tpu.dot_dimension_numbers<[1], [0], [0], [1], [0, 0, 1, 1], [], []>} : vector<5x5xbf16>, vector<5x8xbf16>, vector<5x8xf32> -> vector<5x8xf32>
    %82 = vector.extract_strided_slice %45 {offsets = [0, 16], sizes = [5, 8], strides = [1, 1]} : vector<5x96xbf16> to vector<5x8xbf16>
    %83 = vector.extract_strided_slice %45 {offsets = [0, 48], sizes = [5, 8], strides = [1, 1]} : vector<5x96xbf16> to vector<5x8xbf16>
    %84 = vector.extract_strided_slice %45 {offsets = [0, 80], sizes = [5, 8], strides = [1, 1]} : vector<5x96xbf16> to vector<5x8xbf16>
    %cst_37 = arith.constant dense<0.000000e+00> : vector<5x5xf32>
    %85 = tpu.matmul %82, %83, %cst_37 {dimension_numbers = #tpu.dot_dimension_numbers<[1], [1], [0], [0], [0, 0, 1, 0], [], []>} : vector<5x8xbf16>, vector<5x8xbf16>, vector<5x5xf32> -> vector<5x5xf32>
    %cst_38 = arith.constant 0.353553385 : f32
    %86 = vector.broadcast %cst_38 : f32 to vector<5x5xf32>
    %87 = arith.mulf %85, %86 : vector<5x5xf32>
    %cst_39 = arith.constant dense<0xFF800000> : vector<5xf32>
    %88 = vector.multi_reduction <maximumf>, %87, %cst_39 [1] : vector<5x5xf32> to vector<5xf32>
    %89 = vector.shape_cast %88 : vector<5xf32> to vector<5x1xf32>
    %90 = vector.broadcast %89 : vector<5x1xf32> to vector<5x5xf32>
    %91 = arith.subf %87, %90 : vector<5x5xf32>
    %92 = math.exp %91 : vector<5x5xf32>
    %cst_40 = arith.constant dense<0.000000e+00> : vector<5xf32>
    %93 = vector.multi_reduction <add>, %92, %cst_40 [1] : vector<5x5xf32> to vector<5xf32>
    %94 = vector.shape_cast %93 : vector<5xf32> to vector<5x1xf32>
    %95 = tpu.reciprocal %94 {approx = true} : vector<5x1xf32> -> vector<5x1xf32>
    %96 = vector.broadcast %95 : vector<5x1xf32> to vector<5x5xf32>
    %97 = arith.mulf %92, %96 : vector<5x5xf32>
    %98 = arith.truncf %97 : vector<5x5xf32> to vector<5x5xbf16>
    %cst_41 = arith.constant dense<0.000000e+00> : vector<5x8xf32>
    %99 = tpu.matmul %98, %84, %cst_41 {dimension_numbers = #tpu.dot_dimension_numbers<[1], [0], [0], [1], [0, 0, 1, 1], [], []>} : vector<5x5xbf16>, vector<5x8xbf16>, vector<5x8xf32> -> vector<5x8xf32>
    %100 = vector.extract_strided_slice %45 {offsets = [0, 24], sizes = [5, 8], strides = [1, 1]} : vector<5x96xbf16> to vector<5x8xbf16>
    %101 = vector.extract_strided_slice %45 {offsets = [0, 56], sizes = [5, 8], strides = [1, 1]} : vector<5x96xbf16> to vector<5x8xbf16>
    %102 = vector.extract_strided_slice %45 {offsets = [0, 88], sizes = [5, 8], strides = [1, 1]} : vector<5x96xbf16> to vector<5x8xbf16>
    %cst_42 = arith.constant dense<0.000000e+00> : vector<5x5xf32>
    %103 = tpu.matmul %100, %101, %cst_42 {dimension_numbers = #tpu.dot_dimension_numbers<[1], [1], [0], [0], [0, 0, 1, 0], [], []>} : vector<5x8xbf16>, vector<5x8xbf16>, vector<5x5xf32> -> vector<5x5xf32>
    %cst_43 = arith.constant 0.353553385 : f32
    %104 = vector.broadcast %cst_43 : f32 to vector<5x5xf32>
    %105 = arith.mulf %103, %104 : vector<5x5xf32>
    %cst_44 = arith.constant dense<0xFF800000> : vector<5xf32>
    %106 = vector.multi_reduction <maximumf>, %105, %cst_44 [1] : vector<5x5xf32> to vector<5xf32>
    %107 = vector.shape_cast %106 : vector<5xf32> to vector<5x1xf32>
    %108 = vector.broadcast %107 : vector<5x1xf32> to vector<5x5xf32>
    %109 = arith.subf %105, %108 : vector<5x5xf32>
    %110 = math.exp %109 : vector<5x5xf32>
    %cst_45 = arith.constant dense<0.000000e+00> : vector<5xf32>
    %111 = vector.multi_reduction <add>, %110, %cst_45 [1] : vector<5x5xf32> to vector<5xf32>
    %112 = vector.shape_cast %111 : vector<5xf32> to vector<5x1xf32>
    %113 = tpu.reciprocal %112 {approx = true} : vector<5x1xf32> -> vector<5x1xf32>
    %114 = vector.broadcast %113 : vector<5x1xf32> to vector<5x5xf32>
    %115 = arith.mulf %110, %114 : vector<5x5xf32>
    %116 = arith.truncf %115 : vector<5x5xf32> to vector<5x5xbf16>
    %cst_46 = arith.constant dense<0.000000e+00> : vector<5x8xf32>
    %117 = tpu.matmul %116, %102, %cst_46 {dimension_numbers = #tpu.dot_dimension_numbers<[1], [0], [0], [1], [0, 0, 1, 1], [], []>} : vector<5x5xbf16>, vector<5x8xbf16>, vector<5x8xf32> -> vector<5x8xf32>
    %118 = tpu.concatenate %63, %81, %99, %117 in 1 : vector<5x8xf32>, vector<5x8xf32>, vector<5x8xf32>, vector<5x8xf32> -> vector<5x32xf32>
    %119 = vector.extract_strided_slice %44 {offsets = [5, 0], sizes = [5, 96], strides = [1, 1]} : vector<10x96xbf16> to vector<5x96xbf16>
    %120 = vector.extract_strided_slice %119 {offsets = [0, 0], sizes = [5, 8], strides = [1, 1]} : vector<5x96xbf16> to vector<5x8xbf16>
    %121 = vector.extract_strided_slice %119 {offsets = [0, 32], sizes = [5, 8], strides = [1, 1]} : vector<5x96xbf16> to vector<5x8xbf16>
    %122 = vector.extract_strided_slice %119 {offsets = [0, 64], sizes = [5, 8], strides = [1, 1]} : vector<5x96xbf16> to vector<5x8xbf16>
    %cst_47 = arith.constant dense<0.000000e+00> : vector<5x5xf32>
    %123 = tpu.matmul %120, %121, %cst_47 {dimension_numbers = #tpu.dot_dimension_numbers<[1], [1], [0], [0], [0, 0, 1, 0], [], []>} : vector<5x8xbf16>, vector<5x8xbf16>, vector<5x5xf32> -> vector<5x5xf32>
    %cst_48 = arith.constant 0.353553385 : f32
    %124 = vector.broadcast %cst_48 : f32 to vector<5x5xf32>
    %125 = arith.mulf %123, %124 : vector<5x5xf32>
    %cst_49 = arith.constant dense<0xFF800000> : vector<5xf32>
    %126 = vector.multi_reduction <maximumf>, %125, %cst_49 [1] : vector<5x5xf32> to vector<5xf32>
    %127 = vector.shape_cast %126 : vector<5xf32> to vector<5x1xf32>
    %128 = vector.broadcast %127 : vector<5x1xf32> to vector<5x5xf32>
    %129 = arith.subf %125, %128 : vector<5x5xf32>
    %130 = math.exp %129 : vector<5x5xf32>
    %cst_50 = arith.constant dense<0.000000e+00> : vector<5xf32>
    %131 = vector.multi_reduction <add>, %130, %cst_50 [1] : vector<5x5xf32> to vector<5xf32>
    %132 = vector.shape_cast %131 : vector<5xf32> to vector<5x1xf32>
    %133 = tpu.reciprocal %132 {approx = true} : vector<5x1xf32> -> vector<5x1xf32>
    %134 = vector.broadcast %133 : vector<5x1xf32> to vector<5x5xf32>
    %135 = arith.mulf %130, %134 : vector<5x5xf32>
    %136 = arith.truncf %135 : vector<5x5xf32> to vector<5x5xbf16>
    %cst_51 = arith.constant dense<0.000000e+00> : vector<5x8xf32>
    %137 = tpu.matmul %136, %122, %cst_51 {dimension_numbers = #tpu.dot_dimension_numbers<[1], [0], [0], [1], [0, 0, 1, 1], [], []>} : vector<5x5xbf16>, vector<5x8xbf16>, vector<5x8xf32> -> vector<5x8xf32>
    %138 = vector.extract_strided_slice %119 {offsets = [0, 8], sizes = [5, 8], strides = [1, 1]} : vector<5x96xbf16> to vector<5x8xbf16>
    %139 = vector.extract_strided_slice %119 {offsets = [0, 40], sizes = [5, 8], strides = [1, 1]} : vector<5x96xbf16> to vector<5x8xbf16>
    %140 = vector.extract_strided_slice %119 {offsets = [0, 72], sizes = [5, 8], strides = [1, 1]} : vector<5x96xbf16> to vector<5x8xbf16>
    %cst_52 = arith.constant dense<0.000000e+00> : vector<5x5xf32>
    %141 = tpu.matmul %138, %139, %cst_52 {dimension_numbers = #tpu.dot_dimension_numbers<[1], [1], [0], [0], [0, 0, 1, 0], [], []>} : vector<5x8xbf16>, vector<5x8xbf16>, vector<5x5xf32> -> vector<5x5xf32>
    %cst_53 = arith.constant 0.353553385 : f32
    %142 = vector.broadcast %cst_53 : f32 to vector<5x5xf32>
    %143 = arith.mulf %141, %142 : vector<5x5xf32>
    %cst_54 = arith.constant dense<0xFF800000> : vector<5xf32>
    %144 = vector.multi_reduction <maximumf>, %143, %cst_54 [1] : vector<5x5xf32> to vector<5xf32>
    %145 = vector.shape_cast %144 : vector<5xf32> to vector<5x1xf32>
    %146 = vector.broadcast %145 : vector<5x1xf32> to vector<5x5xf32>
    %147 = arith.subf %143, %146 : vector<5x5xf32>
    %148 = math.exp %147 : vector<5x5xf32>
    %cst_55 = arith.constant dense<0.000000e+00> : vector<5xf32>
    %149 = vector.multi_reduction <add>, %148, %cst_55 [1] : vector<5x5xf32> to vector<5xf32>
    %150 = vector.shape_cast %149 : vector<5xf32> to vector<5x1xf32>
    %151 = tpu.reciprocal %150 {approx = true} : vector<5x1xf32> -> vector<5x1xf32>
    %152 = vector.broadcast %151 : vector<5x1xf32> to vector<5x5xf32>
    %153 = arith.mulf %148, %152 : vector<5x5xf32>
    %154 = arith.truncf %153 : vector<5x5xf32> to vector<5x5xbf16>
    %cst_56 = arith.constant dense<0.000000e+00> : vector<5x8xf32>
    %155 = tpu.matmul %154, %140, %cst_56 {dimension_numbers = #tpu.dot_dimension_numbers<[1], [0], [0], [1], [0, 0, 1, 1], [], []>} : vector<5x5xbf16>, vector<5x8xbf16>, vector<5x8xf32> -> vector<5x8xf32>
    %156 = vector.extract_strided_slice %119 {offsets = [0, 16], sizes = [5, 8], strides = [1, 1]} : vector<5x96xbf16> to vector<5x8xbf16>
    %157 = vector.extract_strided_slice %119 {offsets = [0, 48], sizes = [5, 8], strides = [1, 1]} : vector<5x96xbf16> to vector<5x8xbf16>
    %158 = vector.extract_strided_slice %119 {offsets = [0, 80], sizes = [5, 8], strides = [1, 1]} : vector<5x96xbf16> to vector<5x8xbf16>
    %cst_57 = arith.constant dense<0.000000e+00> : vector<5x5xf32>
    %159 = tpu.matmul %156, %157, %cst_57 {dimension_numbers = #tpu.dot_dimension_numbers<[1], [1], [0], [0], [0, 0, 1, 0], [], []>} : vector<5x8xbf16>, vector<5x8xbf16>, vector<5x5xf32> -> vector<5x5xf32>
    %cst_58 = arith.constant 0.353553385 : f32
    %160 = vector.broadcast %cst_58 : f32 to vector<5x5xf32>
    %161 = arith.mulf %159, %160 : vector<5x5xf32>
    %cst_59 = arith.constant dense<0xFF800000> : vector<5xf32>
    %162 = vector.multi_reduction <maximumf>, %161, %cst_59 [1] : vector<5x5xf32> to vector<5xf32>
    %163 = vector.shape_cast %162 : vector<5xf32> to vector<5x1xf32>
    %164 = vector.broadcast %163 : vector<5x1xf32> to vector<5x5xf32>
    %165 = arith.subf %161, %164 : vector<5x5xf32>
    %166 = math.exp %165 : vector<5x5xf32>
    %cst_60 = arith.constant dense<0.000000e+00> : vector<5xf32>
    %167 = vector.multi_reduction <add>, %166, %cst_60 [1] : vector<5x5xf32> to vector<5xf32>
    %168 = vector.shape_cast %167 : vector<5xf32> to vector<5x1xf32>
    %169 = tpu.reciprocal %168 {approx = true} : vector<5x1xf32> -> vector<5x1xf32>
    %170 = vector.broadcast %169 : vector<5x1xf32> to vector<5x5xf32>
    %171 = arith.mulf %166, %170 : vector<5x5xf32>
    %172 = arith.truncf %171 : vector<5x5xf32> to vector<5x5xbf16>
    %cst_61 = arith.constant dense<0.000000e+00> : vector<5x8xf32>
    %173 = tpu.matmul %172, %158, %cst_61 {dimension_numbers = #tpu.dot_dimension_numbers<[1], [0], [0], [1], [0, 0, 1, 1], [], []>} : vector<5x5xbf16>, vector<5x8xbf16>, vector<5x8xf32> -> vector<5x8xf32>
    %174 = vector.extract_strided_slice %119 {offsets = [0, 24], sizes = [5, 8], strides = [1, 1]} : vector<5x96xbf16> to vector<5x8xbf16>
    %175 = vector.extract_strided_slice %119 {offsets = [0, 56], sizes = [5, 8], strides = [1, 1]} : vector<5x96xbf16> to vector<5x8xbf16>
    %176 = vector.extract_strided_slice %119 {offsets = [0, 88], sizes = [5, 8], strides = [1, 1]} : vector<5x96xbf16> to vector<5x8xbf16>
    %cst_62 = arith.constant dense<0.000000e+00> : vector<5x5xf32>
    %177 = tpu.matmul %174, %175, %cst_62 {dimension_numbers = #tpu.dot_dimension_numbers<[1], [1], [0], [0], [0, 0, 1, 0], [], []>} : vector<5x8xbf16>, vector<5x8xbf16>, vector<5x5xf32> -> vector<5x5xf32>
    %cst_63 = arith.constant 0.353553385 : f32
    %178 = vector.broadcast %cst_63 : f32 to vector<5x5xf32>
    %179 = arith.mulf %177, %178 : vector<5x5xf32>
    %cst_64 = arith.constant dense<0xFF800000> : vector<5xf32>
    %180 = vector.multi_reduction <maximumf>, %179, %cst_64 [1] : vector<5x5xf32> to vector<5xf32>
    %181 = vector.shape_cast %180 : vector<5xf32> to vector<5x1xf32>
    %182 = vector.broadcast %181 : vector<5x1xf32> to vector<5x5xf32>
    %183 = arith.subf %179, %182 : vector<5x5xf32>
    %184 = math.exp %183 : vector<5x5xf32>
    %cst_65 = arith.constant dense<0.000000e+00> : vector<5xf32>
    %185 = vector.multi_reduction <add>, %184, %cst_65 [1] : vector<5x5xf32> to vector<5xf32>
    %186 = vector.shape_cast %185 : vector<5xf32> to vector<5x1xf32>
    %187 = tpu.reciprocal %186 {approx = true} : vector<5x1xf32> -> vector<5x1xf32>
    %188 = vector.broadcast %187 : vector<5x1xf32> to vector<5x5xf32>
    %189 = arith.mulf %184, %188 : vector<5x5xf32>
    %190 = arith.truncf %189 : vector<5x5xf32> to vector<5x5xbf16>
    %cst_66 = arith.constant dense<0.000000e+00> : vector<5x8xf32>
    %191 = tpu.matmul %190, %176, %cst_66 {dimension_numbers = #tpu.dot_dimension_numbers<[1], [0], [0], [1], [0, 0, 1, 1], [], []>} : vector<5x5xbf16>, vector<5x8xbf16>, vector<5x8xf32> -> vector<5x8xf32>
    %192 = tpu.concatenate %137, %155, %173, %191 in 1 : vector<5x8xf32>, vector<5x8xf32>, vector<5x8xf32>, vector<5x8xf32> -> vector<5x32xf32>
    %193 = tpu.concatenate %118, %192 in 0 : vector<5x32xf32>, vector<5x32xf32> -> vector<10x32xf32>
    %194 = arith.truncf %193 : vector<10x32xf32> to vector<10x32xbf16>
    %c0_67 = arith.constant 0 : index
    %c0_68 = arith.constant 0 : index
    %c0_69 = arith.constant 0 : index
    %195 = vector.load %arg8[%c0_67, %c0_68, %c0_69] : memref<2x32x32xbf16, #tpu.memory_space<vmem>>, vector<1x32x32xbf16>
    %196 = vector.shape_cast %195 : vector<1x32x32xbf16> to vector<32x32xbf16>
    %cst_70 = arith.constant dense<0.000000e+00> : vector<10x32xf32>
    %197 = tpu.matmul %194, %196, %cst_70 {dimension_numbers = #tpu.dot_dimension_numbers<[1], [0], [0], [1], [0, 0, 1, 1], [], []>} : vector<10x32xbf16>, vector<32x32xbf16>, vector<10x32xf32> -> vector<10x32xf32>
    %c0_71 = arith.constant 0 : index
    %c0_72 = arith.constant 0 : index
    %c0_73 = arith.constant 0 : index
    %198 = vector.load %arg9[%c0_71, %c0_72, %c0_73] : memref<2x1x32xf32, #tpu.memory_space<vmem>>, vector<1x1x32xf32>
    %199 = vector.shape_cast %198 : vector<1x1x32xf32> to vector<1x32xf32>
    %200 = vector.broadcast %199 : vector<1x32xf32> to vector<10x32xf32>
    %201 = arith.addf %197, %200 : vector<10x32xf32>
    %202 = arith.addf %9, %201 : vector<10x32xf32>
    %c0_74 = arith.constant 0 : index
    %c0_75 = arith.constant 0 : index
    %c0_76 = arith.constant 0 : index
    %203 = vector.load %arg10[%c0_74, %c0_75, %c0_76] : memref<2x1x32xf32, #tpu.memory_space<vmem>>, vector<1x1x32xf32>
    %204 = vector.shape_cast %203 : vector<1x1x32xf32> to vector<1x32xf32>
    %c0_77 = arith.constant 0 : index
    %c0_78 = arith.constant 0 : index
    %c0_79 = arith.constant 0 : index
    %205 = vector.load %arg11[%c0_77, %c0_78, %c0_79] : memref<2x1x32xf32, #tpu.memory_space<vmem>>, vector<1x1x32xf32>
    %206 = vector.shape_cast %205 : vector<1x1x32xf32> to vector<1x32xf32>
    %cst_80 = arith.constant dense<0.000000e+00> : vector<10xf32>
    %207 = vector.multi_reduction <add>, %202, %cst_80 [1] : vector<10x32xf32> to vector<10xf32>
    %208 = vector.shape_cast %207 : vector<10xf32> to vector<10x1xf32>
    %cst_81 = arith.constant 3.200000e+01 : f32
    %209 = vector.broadcast %cst_81 : f32 to vector<10x1xf32>
    %210 = arith.divf %208, %209 : vector<10x1xf32>
    %211 = vector.broadcast %210 : vector<10x1xf32> to vector<10x32xf32>
    %212 = arith.subf %202, %211 : vector<10x32xf32>
    %213 = arith.mulf %212, %212 : vector<10x32xf32>
    %cst_82 = arith.constant dense<0.000000e+00> : vector<10xf32>
    %214 = vector.multi_reduction <add>, %213, %cst_82 [1] : vector<10x32xf32> to vector<10xf32>
    %215 = vector.shape_cast %214 : vector<10xf32> to vector<10x1xf32>
    %cst_83 = arith.constant 3.200000e+01 : f32
    %216 = vector.broadcast %cst_83 : f32 to vector<10x1xf32>
    %217 = arith.divf %215, %216 : vector<10x1xf32>
    %218 = vector.broadcast %210 : vector<10x1xf32> to vector<10x32xf32>
    %219 = arith.subf %202, %218 : vector<10x32xf32>
    %cst_84 = arith.constant 9.99999997E-7 : f32
    %220 = vector.broadcast %cst_84 : f32 to vector<10x1xf32>
    %221 = arith.addf %217, %220 : vector<10x1xf32>
    %222 = math.rsqrt %221 : vector<10x1xf32>
    %223 = vector.broadcast %222 : vector<10x1xf32> to vector<10x32xf32>
    %224 = arith.mulf %219, %223 : vector<10x32xf32>
    %225 = vector.broadcast %204 : vector<1x32xf32> to vector<10x32xf32>
    %226 = arith.mulf %224, %225 : vector<10x32xf32>
    %227 = vector.broadcast %206 : vector<1x32xf32> to vector<10x32xf32>
    %228 = arith.addf %226, %227 : vector<10x32xf32>
    %229 = arith.truncf %228 : vector<10x32xf32> to vector<10x32xbf16>
    %c0_85 = arith.constant 0 : index
    %c0_86 = arith.constant 0 : index
    %c0_87 = arith.constant 0 : index
    %230 = vector.load %arg12[%c0_85, %c0_86, %c0_87] : memref<2x32x64xbf16, #tpu.memory_space<vmem>>, vector<1x32x64xbf16>
    %231 = vector.shape_cast %230 : vector<1x32x64xbf16> to vector<32x64xbf16>
    %cst_88 = arith.constant dense<0.000000e+00> : vector<10x64xf32>
    %232 = tpu.matmul %229, %231, %cst_88 {dimension_numbers = #tpu.dot_dimension_numbers<[1], [0], [0], [1], [0, 0, 1, 1], [], []>} : vector<10x32xbf16>, vector<32x64xbf16>, vector<10x64xf32> -> vector<10x64xf32>
    %c0_89 = arith.constant 0 : index
    %c0_90 = arith.constant 0 : index
    %c0_91 = arith.constant 0 : index
    %233 = vector.load %arg13[%c0_89, %c0_90, %c0_91] : memref<2x1x64xf32, #tpu.memory_space<vmem>>, vector<1x1x64xf32>
    %234 = vector.shape_cast %233 : vector<1x1x64xf32> to vector<1x64xf32>
    %235 = vector.broadcast %234 : vector<1x64xf32> to vector<10x64xf32>
    %236 = arith.addf %232, %235 : vector<10x64xf32>
    %cst_92 = arith.constant 5.000000e-01 : f32
    %237 = vector.broadcast %cst_92 : f32 to vector<10x64xf32>
    %238 = arith.mulf %237, %236 : vector<10x64xf32>
    %cst_93 = arith.constant 0.707106769 : f32
    %239 = vector.broadcast %cst_93 : f32 to vector<10x64xf32>
    %240 = arith.mulf %236, %239 : vector<10x64xf32>
    %241 = math.erf %240 : vector<10x64xf32>
    %cst_94 = arith.constant 1.000000e+00 : f32
    %242 = vector.broadcast %cst_94 : f32 to vector<10x64xf32>
    %243 = arith.addf %242, %241 : vector<10x64xf32>
    %244 = arith.mulf %238, %243 : vector<10x64xf32>
    %245 = arith.truncf %244 : vector<10x64xf32> to vector<10x64xbf16>
    %c0_95 = arith.constant 0 : index
    %c0_96 = arith.constant 0 : index
    %c0_97 = arith.constant 0 : index
    %246 = vector.load %arg14[%c0_95, %c0_96, %c0_97] : memref<2x64x32xbf16, #tpu.memory_space<vmem>>, vector<1x64x32xbf16>
    %247 = vector.shape_cast %246 : vector<1x64x32xbf16> to vector<64x32xbf16>
    %cst_98 = arith.constant dense<0.000000e+00> : vector<10x32xf32>
    %248 = tpu.matmul %245, %247, %cst_98 {dimension_numbers = #tpu.dot_dimension_numbers<[1], [0], [0], [1], [0, 0, 1, 1], [], []>} : vector<10x64xbf16>, vector<64x32xbf16>, vector<10x32xf32> -> vector<10x32xf32>
    %c0_99 = arith.constant 0 : index
    %c0_100 = arith.constant 0 : index
    %c0_101 = arith.constant 0 : index
    %249 = vector.load %arg15[%c0_99, %c0_100, %c0_101] : memref<2x1x32xf32, #tpu.memory_space<vmem>>, vector<1x1x32xf32>
    %250 = vector.shape_cast %249 : vector<1x1x32xf32> to vector<1x32xf32>
    %251 = vector.broadcast %250 : vector<1x32xf32> to vector<10x32xf32>
    %252 = arith.addf %248, %251 : vector<10x32xf32>
    %253 = arith.addf %202, %252 : vector<10x32xf32>
    %c1 = arith.constant 1 : index
    %c0_102 = arith.constant 0 : index
    %c0_103 = arith.constant 0 : index
    %254 = vector.load %arg4[%c1, %c0_102, %c0_103] : memref<2x1x32xf32, #tpu.memory_space<vmem>>, vector<1x1x32xf32>
    %255 = vector.shape_cast %254 : vector<1x1x32xf32> to vector<1x32xf32>
    %c1_104 = arith.constant 1 : index
    %c0_105 = arith.constant 0 : index
    %c0_106 = arith.constant 0 : index
    %256 = vector.load %arg5[%c1_104, %c0_105, %c0_106] : memref<2x1x32xf32, #tpu.memory_space<vmem>>, vector<1x1x32xf32>
    %257 = vector.shape_cast %256 : vector<1x1x32xf32> to vector<1x32xf32>
    %cst_107 = arith.constant dense<0.000000e+00> : vector<10xf32>
    %258 = vector.multi_reduction <add>, %253, %cst_107 [1] : vector<10x32xf32> to vector<10xf32>
    %259 = vector.shape_cast %258 : vector<10xf32> to vector<10x1xf32>
    %cst_108 = arith.constant 3.200000e+01 : f32
    %260 = vector.broadcast %cst_108 : f32 to vector<10x1xf32>
    %261 = arith.divf %259, %260 : vector<10x1xf32>
    %262 = vector.broadcast %261 : vector<10x1xf32> to vector<10x32xf32>
    %263 = arith.subf %253, %262 : vector<10x32xf32>
    %264 = arith.mulf %263, %263 : vector<10x32xf32>
    %cst_109 = arith.constant dense<0.000000e+00> : vector<10xf32>
    %265 = vector.multi_reduction <add>, %264, %cst_109 [1] : vector<10x32xf32> to vector<10xf32>
    %266 = vector.shape_cast %265 : vector<10xf32> to vector<10x1xf32>
    %cst_110 = arith.constant 3.200000e+01 : f32
    %267 = vector.broadcast %cst_110 : f32 to vector<10x1xf32>
    %268 = arith.divf %266, %267 : vector<10x1xf32>
    %269 = vector.broadcast %261 : vector<10x1xf32> to vector<10x32xf32>
    %270 = arith.subf %253, %269 : vector<10x32xf32>
    %cst_111 = arith.constant 9.99999997E-7 : f32
    %271 = vector.broadcast %cst_111 : f32 to vector<10x1xf32>
    %272 = arith.addf %268, %271 : vector<10x1xf32>
    %273 = math.rsqrt %272 : vector<10x1xf32>
    %274 = vector.broadcast %273 : vector<10x1xf32> to vector<10x32xf32>
    %275 = arith.mulf %270, %274 : vector<10x32xf32>
    %276 = vector.broadcast %255 : vector<1x32xf32> to vector<10x32xf32>
    %277 = arith.mulf %275, %276 : vector<10x32xf32>
    %278 = vector.broadcast %257 : vector<1x32xf32> to vector<10x32xf32>
    %279 = arith.addf %277, %278 : vector<10x32xf32>
    %280 = arith.truncf %279 : vector<10x32xf32> to vector<10x32xbf16>
    %c1_112 = arith.constant 1 : index
    %c0_113 = arith.constant 0 : index
    %c0_114 = arith.constant 0 : index
    %281 = vector.load %arg6[%c1_112, %c0_113, %c0_114] : memref<2x32x96xbf16, #tpu.memory_space<vmem>>, vector<1x32x96xbf16>
    %282 = vector.shape_cast %281 : vector<1x32x96xbf16> to vector<32x96xbf16>
    %cst_115 = arith.constant dense<0.000000e+00> : vector<10x96xf32>
    %283 = tpu.matmul %280, %282, %cst_115 {dimension_numbers = #tpu.dot_dimension_numbers<[1], [0], [0], [1], [0, 0, 1, 1], [], []>} : vector<10x32xbf16>, vector<32x96xbf16>, vector<10x96xf32> -> vector<10x96xf32>
    %c1_116 = arith.constant 1 : index
    %c0_117 = arith.constant 0 : index
    %c0_118 = arith.constant 0 : index
    %284 = vector.load %arg7[%c1_116, %c0_117, %c0_118] : memref<2x1x96xf32, #tpu.memory_space<vmem>>, vector<1x1x96xf32>
    %285 = vector.shape_cast %284 : vector<1x1x96xf32> to vector<1x96xf32>
    %286 = vector.broadcast %285 : vector<1x96xf32> to vector<10x96xf32>
    %287 = arith.addf %283, %286 : vector<10x96xf32>
    %288 = arith.truncf %287 : vector<10x96xf32> to vector<10x96xbf16>
    %289 = vector.extract_strided_slice %288 {offsets = [0, 0], sizes = [5, 96], strides = [1, 1]} : vector<10x96xbf16> to vector<5x96xbf16>
    %290 = vector.extract_strided_slice %289 {offsets = [0, 0], sizes = [5, 8], strides = [1, 1]} : vector<5x96xbf16> to vector<5x8xbf16>
    %291 = vector.extract_strided_slice %289 {offsets = [0, 32], sizes = [5, 8], strides = [1, 1]} : vector<5x96xbf16> to vector<5x8xbf16>
    %292 = vector.extract_strided_slice %289 {offsets = [0, 64], sizes = [5, 8], strides = [1, 1]} : vector<5x96xbf16> to vector<5x8xbf16>
    %cst_119 = arith.constant dense<0.000000e+00> : vector<5x5xf32>
    %293 = tpu.matmul %290, %291, %cst_119 {dimension_numbers = #tpu.dot_dimension_numbers<[1], [1], [0], [0], [0, 0, 1, 0], [], []>} : vector<5x8xbf16>, vector<5x8xbf16>, vector<5x5xf32> -> vector<5x5xf32>
    %cst_120 = arith.constant 0.353553385 : f32
    %294 = vector.broadcast %cst_120 : f32 to vector<5x5xf32>
    %295 = arith.mulf %293, %294 : vector<5x5xf32>
    %cst_121 = arith.constant dense<0xFF800000> : vector<5xf32>
    %296 = vector.multi_reduction <maximumf>, %295, %cst_121 [1] : vector<5x5xf32> to vector<5xf32>
    %297 = vector.shape_cast %296 : vector<5xf32> to vector<5x1xf32>
    %298 = vector.broadcast %297 : vector<5x1xf32> to vector<5x5xf32>
    %299 = arith.subf %295, %298 : vector<5x5xf32>
    %300 = math.exp %299 : vector<5x5xf32>
    %cst_122 = arith.constant dense<0.000000e+00> : vector<5xf32>
    %301 = vector.multi_reduction <add>, %300, %cst_122 [1] : vector<5x5xf32> to vector<5xf32>
    %302 = vector.shape_cast %301 : vector<5xf32> to vector<5x1xf32>
    %303 = tpu.reciprocal %302 {approx = true} : vector<5x1xf32> -> vector<5x1xf32>
    %304 = vector.broadcast %303 : vector<5x1xf32> to vector<5x5xf32>
    %305 = arith.mulf %300, %304 : vector<5x5xf32>
    %306 = arith.truncf %305 : vector<5x5xf32> to vector<5x5xbf16>
    %cst_123 = arith.constant dense<0.000000e+00> : vector<5x8xf32>
    %307 = tpu.matmul %306, %292, %cst_123 {dimension_numbers = #tpu.dot_dimension_numbers<[1], [0], [0], [1], [0, 0, 1, 1], [], []>} : vector<5x5xbf16>, vector<5x8xbf16>, vector<5x8xf32> -> vector<5x8xf32>
    %308 = vector.extract_strided_slice %289 {offsets = [0, 8], sizes = [5, 8], strides = [1, 1]} : vector<5x96xbf16> to vector<5x8xbf16>
    %309 = vector.extract_strided_slice %289 {offsets = [0, 40], sizes = [5, 8], strides = [1, 1]} : vector<5x96xbf16> to vector<5x8xbf16>
    %310 = vector.extract_strided_slice %289 {offsets = [0, 72], sizes = [5, 8], strides = [1, 1]} : vector<5x96xbf16> to vector<5x8xbf16>
    %cst_124 = arith.constant dense<0.000000e+00> : vector<5x5xf32>
    %311 = tpu.matmul %308, %309, %cst_124 {dimension_numbers = #tpu.dot_dimension_numbers<[1], [1], [0], [0], [0, 0, 1, 0], [], []>} : vector<5x8xbf16>, vector<5x8xbf16>, vector<5x5xf32> -> vector<5x5xf32>
    %cst_125 = arith.constant 0.353553385 : f32
    %312 = vector.broadcast %cst_125 : f32 to vector<5x5xf32>
    %313 = arith.mulf %311, %312 : vector<5x5xf32>
    %cst_126 = arith.constant dense<0xFF800000> : vector<5xf32>
    %314 = vector.multi_reduction <maximumf>, %313, %cst_126 [1] : vector<5x5xf32> to vector<5xf32>
    %315 = vector.shape_cast %314 : vector<5xf32> to vector<5x1xf32>
    %316 = vector.broadcast %315 : vector<5x1xf32> to vector<5x5xf32>
    %317 = arith.subf %313, %316 : vector<5x5xf32>
    %318 = math.exp %317 : vector<5x5xf32>
    %cst_127 = arith.constant dense<0.000000e+00> : vector<5xf32>
    %319 = vector.multi_reduction <add>, %318, %cst_127 [1] : vector<5x5xf32> to vector<5xf32>
    %320 = vector.shape_cast %319 : vector<5xf32> to vector<5x1xf32>
    %321 = tpu.reciprocal %320 {approx = true} : vector<5x1xf32> -> vector<5x1xf32>
    %322 = vector.broadcast %321 : vector<5x1xf32> to vector<5x5xf32>
    %323 = arith.mulf %318, %322 : vector<5x5xf32>
    %324 = arith.truncf %323 : vector<5x5xf32> to vector<5x5xbf16>
    %cst_128 = arith.constant dense<0.000000e+00> : vector<5x8xf32>
    %325 = tpu.matmul %324, %310, %cst_128 {dimension_numbers = #tpu.dot_dimension_numbers<[1], [0], [0], [1], [0, 0, 1, 1], [], []>} : vector<5x5xbf16>, vector<5x8xbf16>, vector<5x8xf32> -> vector<5x8xf32>
    %326 = vector.extract_strided_slice %289 {offsets = [0, 16], sizes = [5, 8], strides = [1, 1]} : vector<5x96xbf16> to vector<5x8xbf16>
    %327 = vector.extract_strided_slice %289 {offsets = [0, 48], sizes = [5, 8], strides = [1, 1]} : vector<5x96xbf16> to vector<5x8xbf16>
    %328 = vector.extract_strided_slice %289 {offsets = [0, 80], sizes = [5, 8], strides = [1, 1]} : vector<5x96xbf16> to vector<5x8xbf16>
    %cst_129 = arith.constant dense<0.000000e+00> : vector<5x5xf32>
    %329 = tpu.matmul %326, %327, %cst_129 {dimension_numbers = #tpu.dot_dimension_numbers<[1], [1], [0], [0], [0, 0, 1, 0], [], []>} : vector<5x8xbf16>, vector<5x8xbf16>, vector<5x5xf32> -> vector<5x5xf32>
    %cst_130 = arith.constant 0.353553385 : f32
    %330 = vector.broadcast %cst_130 : f32 to vector<5x5xf32>
    %331 = arith.mulf %329, %330 : vector<5x5xf32>
    %cst_131 = arith.constant dense<0xFF800000> : vector<5xf32>
    %332 = vector.multi_reduction <maximumf>, %331, %cst_131 [1] : vector<5x5xf32> to vector<5xf32>
    %333 = vector.shape_cast %332 : vector<5xf32> to vector<5x1xf32>
    %334 = vector.broadcast %333 : vector<5x1xf32> to vector<5x5xf32>
    %335 = arith.subf %331, %334 : vector<5x5xf32>
    %336 = math.exp %335 : vector<5x5xf32>
    %cst_132 = arith.constant dense<0.000000e+00> : vector<5xf32>
    %337 = vector.multi_reduction <add>, %336, %cst_132 [1] : vector<5x5xf32> to vector<5xf32>
    %338 = vector.shape_cast %337 : vector<5xf32> to vector<5x1xf32>
    %339 = tpu.reciprocal %338 {approx = true} : vector<5x1xf32> -> vector<5x1xf32>
    %340 = vector.broadcast %339 : vector<5x1xf32> to vector<5x5xf32>
    %341 = arith.mulf %336, %340 : vector<5x5xf32>
    %342 = arith.truncf %341 : vector<5x5xf32> to vector<5x5xbf16>
    %cst_133 = arith.constant dense<0.000000e+00> : vector<5x8xf32>
    %343 = tpu.matmul %342, %328, %cst_133 {dimension_numbers = #tpu.dot_dimension_numbers<[1], [0], [0], [1], [0, 0, 1, 1], [], []>} : vector<5x5xbf16>, vector<5x8xbf16>, vector<5x8xf32> -> vector<5x8xf32>
    %344 = vector.extract_strided_slice %289 {offsets = [0, 24], sizes = [5, 8], strides = [1, 1]} : vector<5x96xbf16> to vector<5x8xbf16>
    %345 = vector.extract_strided_slice %289 {offsets = [0, 56], sizes = [5, 8], strides = [1, 1]} : vector<5x96xbf16> to vector<5x8xbf16>
    %346 = vector.extract_strided_slice %289 {offsets = [0, 88], sizes = [5, 8], strides = [1, 1]} : vector<5x96xbf16> to vector<5x8xbf16>
    %cst_134 = arith.constant dense<0.000000e+00> : vector<5x5xf32>
    %347 = tpu.matmul %344, %345, %cst_134 {dimension_numbers = #tpu.dot_dimension_numbers<[1], [1], [0], [0], [0, 0, 1, 0], [], []>} : vector<5x8xbf16>, vector<5x8xbf16>, vector<5x5xf32> -> vector<5x5xf32>
    %cst_135 = arith.constant 0.353553385 : f32
    %348 = vector.broadcast %cst_135 : f32 to vector<5x5xf32>
    %349 = arith.mulf %347, %348 : vector<5x5xf32>
    %cst_136 = arith.constant dense<0xFF800000> : vector<5xf32>
    %350 = vector.multi_reduction <maximumf>, %349, %cst_136 [1] : vector<5x5xf32> to vector<5xf32>
    %351 = vector.shape_cast %350 : vector<5xf32> to vector<5x1xf32>
    %352 = vector.broadcast %351 : vector<5x1xf32> to vector<5x5xf32>
    %353 = arith.subf %349, %352 : vector<5x5xf32>
    %354 = math.exp %353 : vector<5x5xf32>
    %cst_137 = arith.constant dense<0.000000e+00> : vector<5xf32>
    %355 = vector.multi_reduction <add>, %354, %cst_137 [1] : vector<5x5xf32> to vector<5xf32>
    %356 = vector.shape_cast %355 : vector<5xf32> to vector<5x1xf32>
    %357 = tpu.reciprocal %356 {approx = true} : vector<5x1xf32> -> vector<5x1xf32>
    %358 = vector.broadcast %357 : vector<5x1xf32> to vector<5x5xf32>
    %359 = arith.mulf %354, %358 : vector<5x5xf32>
    %360 = arith.truncf %359 : vector<5x5xf32> to vector<5x5xbf16>
    %cst_138 = arith.constant dense<0.000000e+00> : vector<5x8xf32>
    %361 = tpu.matmul %360, %346, %cst_138 {dimension_numbers = #tpu.dot_dimension_numbers<[1], [0], [0], [1], [0, 0, 1, 1], [], []>} : vector<5x5xbf16>, vector<5x8xbf16>, vector<5x8xf32> -> vector<5x8xf32>
    %362 = tpu.concatenate %307, %325, %343, %361 in 1 : vector<5x8xf32>, vector<5x8xf32>, vector<5x8xf32>, vector<5x8xf32> -> vector<5x32xf32>
    %363 = vector.extract_strided_slice %288 {offsets = [5, 0], sizes = [5, 96], strides = [1, 1]} : vector<10x96xbf16> to vector<5x96xbf16>
    %364 = vector.extract_strided_slice %363 {offsets = [0, 0], sizes = [5, 8], strides = [1, 1]} : vector<5x96xbf16> to vector<5x8xbf16>
    %365 = vector.extract_strided_slice %363 {offsets = [0, 32], sizes = [5, 8], strides = [1, 1]} : vector<5x96xbf16> to vector<5x8xbf16>
    %366 = vector.extract_strided_slice %363 {offsets = [0, 64], sizes = [5, 8], strides = [1, 1]} : vector<5x96xbf16> to vector<5x8xbf16>
    %cst_139 = arith.constant dense<0.000000e+00> : vector<5x5xf32>
    %367 = tpu.matmul %364, %365, %cst_139 {dimension_numbers = #tpu.dot_dimension_numbers<[1], [1], [0], [0], [0, 0, 1, 0], [], []>} : vector<5x8xbf16>, vector<5x8xbf16>, vector<5x5xf32> -> vector<5x5xf32>
    %cst_140 = arith.constant 0.353553385 : f32
    %368 = vector.broadcast %cst_140 : f32 to vector<5x5xf32>
    %369 = arith.mulf %367, %368 : vector<5x5xf32>
    %cst_141 = arith.constant dense<0xFF800000> : vector<5xf32>
    %370 = vector.multi_reduction <maximumf>, %369, %cst_141 [1] : vector<5x5xf32> to vector<5xf32>
    %371 = vector.shape_cast %370 : vector<5xf32> to vector<5x1xf32>
    %372 = vector.broadcast %371 : vector<5x1xf32> to vector<5x5xf32>
    %373 = arith.subf %369, %372 : vector<5x5xf32>
    %374 = math.exp %373 : vector<5x5xf32>
    %cst_142 = arith.constant dense<0.000000e+00> : vector<5xf32>
    %375 = vector.multi_reduction <add>, %374, %cst_142 [1] : vector<5x5xf32> to vector<5xf32>
    %376 = vector.shape_cast %375 : vector<5xf32> to vector<5x1xf32>
    %377 = tpu.reciprocal %376 {approx = true} : vector<5x1xf32> -> vector<5x1xf32>
    %378 = vector.broadcast %377 : vector<5x1xf32> to vector<5x5xf32>
    %379 = arith.mulf %374, %378 : vector<5x5xf32>
    %380 = arith.truncf %379 : vector<5x5xf32> to vector<5x5xbf16>
    %cst_143 = arith.constant dense<0.000000e+00> : vector<5x8xf32>
    %381 = tpu.matmul %380, %366, %cst_143 {dimension_numbers = #tpu.dot_dimension_numbers<[1], [0], [0], [1], [0, 0, 1, 1], [], []>} : vector<5x5xbf16>, vector<5x8xbf16>, vector<5x8xf32> -> vector<5x8xf32>
    %382 = vector.extract_strided_slice %363 {offsets = [0, 8], sizes = [5, 8], strides = [1, 1]} : vector<5x96xbf16> to vector<5x8xbf16>
    %383 = vector.extract_strided_slice %363 {offsets = [0, 40], sizes = [5, 8], strides = [1, 1]} : vector<5x96xbf16> to vector<5x8xbf16>
    %384 = vector.extract_strided_slice %363 {offsets = [0, 72], sizes = [5, 8], strides = [1, 1]} : vector<5x96xbf16> to vector<5x8xbf16>
    %cst_144 = arith.constant dense<0.000000e+00> : vector<5x5xf32>
    %385 = tpu.matmul %382, %383, %cst_144 {dimension_numbers = #tpu.dot_dimension_numbers<[1], [1], [0], [0], [0, 0, 1, 0], [], []>} : vector<5x8xbf16>, vector<5x8xbf16>, vector<5x5xf32> -> vector<5x5xf32>
    %cst_145 = arith.constant 0.353553385 : f32
    %386 = vector.broadcast %cst_145 : f32 to vector<5x5xf32>
    %387 = arith.mulf %385, %386 : vector<5x5xf32>
    %cst_146 = arith.constant dense<0xFF800000> : vector<5xf32>
    %388 = vector.multi_reduction <maximumf>, %387, %cst_146 [1] : vector<5x5xf32> to vector<5xf32>
    %389 = vector.shape_cast %388 : vector<5xf32> to vector<5x1xf32>
    %390 = vector.broadcast %389 : vector<5x1xf32> to vector<5x5xf32>
    %391 = arith.subf %387, %390 : vector<5x5xf32>
    %392 = math.exp %391 : vector<5x5xf32>
    %cst_147 = arith.constant dense<0.000000e+00> : vector<5xf32>
    %393 = vector.multi_reduction <add>, %392, %cst_147 [1] : vector<5x5xf32> to vector<5xf32>
    %394 = vector.shape_cast %393 : vector<5xf32> to vector<5x1xf32>
    %395 = tpu.reciprocal %394 {approx = true} : vector<5x1xf32> -> vector<5x1xf32>
    %396 = vector.broadcast %395 : vector<5x1xf32> to vector<5x5xf32>
    %397 = arith.mulf %392, %396 : vector<5x5xf32>
    %398 = arith.truncf %397 : vector<5x5xf32> to vector<5x5xbf16>
    %cst_148 = arith.constant dense<0.000000e+00> : vector<5x8xf32>
    %399 = tpu.matmul %398, %384, %cst_148 {dimension_numbers = #tpu.dot_dimension_numbers<[1], [0], [0], [1], [0, 0, 1, 1], [], []>} : vector<5x5xbf16>, vector<5x8xbf16>, vector<5x8xf32> -> vector<5x8xf32>
    %400 = vector.extract_strided_slice %363 {offsets = [0, 16], sizes = [5, 8], strides = [1, 1]} : vector<5x96xbf16> to vector<5x8xbf16>
    %401 = vector.extract_strided_slice %363 {offsets = [0, 48], sizes = [5, 8], strides = [1, 1]} : vector<5x96xbf16> to vector<5x8xbf16>
    %402 = vector.extract_strided_slice %363 {offsets = [0, 80], sizes = [5, 8], strides = [1, 1]} : vector<5x96xbf16> to vector<5x8xbf16>
    %cst_149 = arith.constant dense<0.000000e+00> : vector<5x5xf32>
    %403 = tpu.matmul %400, %401, %cst_149 {dimension_numbers = #tpu.dot_dimension_numbers<[1], [1], [0], [0], [0, 0, 1, 0], [], []>} : vector<5x8xbf16>, vector<5x8xbf16>, vector<5x5xf32> -> vector<5x5xf32>
    %cst_150 = arith.constant 0.353553385 : f32
    %404 = vector.broadcast %cst_150 : f32 to vector<5x5xf32>
    %405 = arith.mulf %403, %404 : vector<5x5xf32>
    %cst_151 = arith.constant dense<0xFF800000> : vector<5xf32>
    %406 = vector.multi_reduction <maximumf>, %405, %cst_151 [1] : vector<5x5xf32> to vector<5xf32>
    %407 = vector.shape_cast %406 : vector<5xf32> to vector<5x1xf32>
    %408 = vector.broadcast %407 : vector<5x1xf32> to vector<5x5xf32>
    %409 = arith.subf %405, %408 : vector<5x5xf32>
    %410 = math.exp %409 : vector<5x5xf32>
    %cst_152 = arith.constant dense<0.000000e+00> : vector<5xf32>
    %411 = vector.multi_reduction <add>, %410, %cst_152 [1] : vector<5x5xf32> to vector<5xf32>
    %412 = vector.shape_cast %411 : vector<5xf32> to vector<5x1xf32>
    %413 = tpu.reciprocal %412 {approx = true} : vector<5x1xf32> -> vector<5x1xf32>
    %414 = vector.broadcast %413 : vector<5x1xf32> to vector<5x5xf32>
    %415 = arith.mulf %410, %414 : vector<5x5xf32>
    %416 = arith.truncf %415 : vector<5x5xf32> to vector<5x5xbf16>
    %cst_153 = arith.constant dense<0.000000e+00> : vector<5x8xf32>
    %417 = tpu.matmul %416, %402, %cst_153 {dimension_numbers = #tpu.dot_dimension_numbers<[1], [0], [0], [1], [0, 0, 1, 1], [], []>} : vector<5x5xbf16>, vector<5x8xbf16>, vector<5x8xf32> -> vector<5x8xf32>
    %418 = vector.extract_strided_slice %363 {offsets = [0, 24], sizes = [5, 8], strides = [1, 1]} : vector<5x96xbf16> to vector<5x8xbf16>
    %419 = vector.extract_strided_slice %363 {offsets = [0, 56], sizes = [5, 8], strides = [1, 1]} : vector<5x96xbf16> to vector<5x8xbf16>
    %420 = vector.extract_strided_slice %363 {offsets = [0, 88], sizes = [5, 8], strides = [1, 1]} : vector<5x96xbf16> to vector<5x8xbf16>
    %cst_154 = arith.constant dense<0.000000e+00> : vector<5x5xf32>
    %421 = tpu.matmul %418, %419, %cst_154 {dimension_numbers = #tpu.dot_dimension_numbers<[1], [1], [0], [0], [0, 0, 1, 0], [], []>} : vector<5x8xbf16>, vector<5x8xbf16>, vector<5x5xf32> -> vector<5x5xf32>
    %cst_155 = arith.constant 0.353553385 : f32
    %422 = vector.broadcast %cst_155 : f32 to vector<5x5xf32>
    %423 = arith.mulf %421, %422 : vector<5x5xf32>
    %cst_156 = arith.constant dense<0xFF800000> : vector<5xf32>
    %424 = vector.multi_reduction <maximumf>, %423, %cst_156 [1] : vector<5x5xf32> to vector<5xf32>
    %425 = vector.shape_cast %424 : vector<5xf32> to vector<5x1xf32>
    %426 = vector.broadcast %425 : vector<5x1xf32> to vector<5x5xf32>
    %427 = arith.subf %423, %426 : vector<5x5xf32>
    %428 = math.exp %427 : vector<5x5xf32>
    %cst_157 = arith.constant dense<0.000000e+00> : vector<5xf32>
    %429 = vector.multi_reduction <add>, %428, %cst_157 [1] : vector<5x5xf32> to vector<5xf32>
    %430 = vector.shape_cast %429 : vector<5xf32> to vector<5x1xf32>
    %431 = tpu.reciprocal %430 {approx = true} : vector<5x1xf32> -> vector<5x1xf32>
    %432 = vector.broadcast %431 : vector<5x1xf32> to vector<5x5xf32>
    %433 = arith.mulf %428, %432 : vector<5x5xf32>
    %434 = arith.truncf %433 : vector<5x5xf32> to vector<5x5xbf16>
    %cst_158 = arith.constant dense<0.000000e+00> : vector<5x8xf32>
    %435 = tpu.matmul %434, %420, %cst_158 {dimension_numbers = #tpu.dot_dimension_numbers<[1], [0], [0], [1], [0, 0, 1, 1], [], []>} : vector<5x5xbf16>, vector<5x8xbf16>, vector<5x8xf32> -> vector<5x8xf32>
    %436 = tpu.concatenate %381, %399, %417, %435 in 1 : vector<5x8xf32>, vector<5x8xf32>, vector<5x8xf32>, vector<5x8xf32> -> vector<5x32xf32>
    %437 = tpu.concatenate %362, %436 in 0 : vector<5x32xf32>, vector<5x32xf32> -> vector<10x32xf32>
    %438 = arith.truncf %437 : vector<10x32xf32> to vector<10x32xbf16>
    %c1_159 = arith.constant 1 : index
    %c0_160 = arith.constant 0 : index
    %c0_161 = arith.constant 0 : index
    %439 = vector.load %arg8[%c1_159, %c0_160, %c0_161] : memref<2x32x32xbf16, #tpu.memory_space<vmem>>, vector<1x32x32xbf16>
    %440 = vector.shape_cast %439 : vector<1x32x32xbf16> to vector<32x32xbf16>
    %cst_162 = arith.constant dense<0.000000e+00> : vector<10x32xf32>
    %441 = tpu.matmul %438, %440, %cst_162 {dimension_numbers = #tpu.dot_dimension_numbers<[1], [0], [0], [1], [0, 0, 1, 1], [], []>} : vector<10x32xbf16>, vector<32x32xbf16>, vector<10x32xf32> -> vector<10x32xf32>
    %c1_163 = arith.constant 1 : index
    %c0_164 = arith.constant 0 : index
    %c0_165 = arith.constant 0 : index
    %442 = vector.load %arg9[%c1_163, %c0_164, %c0_165] : memref<2x1x32xf32, #tpu.memory_space<vmem>>, vector<1x1x32xf32>
    %443 = vector.shape_cast %442 : vector<1x1x32xf32> to vector<1x32xf32>
    %444 = vector.broadcast %443 : vector<1x32xf32> to vector<10x32xf32>
    %445 = arith.addf %441, %444 : vector<10x32xf32>
    %446 = arith.addf %253, %445 : vector<10x32xf32>
    %c1_166 = arith.constant 1 : index
    %c0_167 = arith.constant 0 : index
    %c0_168 = arith.constant 0 : index
    %447 = vector.load %arg10[%c1_166, %c0_167, %c0_168] : memref<2x1x32xf32, #tpu.memory_space<vmem>>, vector<1x1x32xf32>
    %448 = vector.shape_cast %447 : vector<1x1x32xf32> to vector<1x32xf32>
    %c1_169 = arith.constant 1 : index
    %c0_170 = arith.constant 0 : index
    %c0_171 = arith.constant 0 : index
    %449 = vector.load %arg11[%c1_169, %c0_170, %c0_171] : memref<2x1x32xf32, #tpu.memory_space<vmem>>, vector<1x1x32xf32>
    %450 = vector.shape_cast %449 : vector<1x1x32xf32> to vector<1x32xf32>
    %cst_172 = arith.constant dense<0.000000e+00> : vector<10xf32>
    %451 = vector.multi_reduction <add>, %446, %cst_172 [1] : vector<10x32xf32> to vector<10xf32>
    %452 = vector.shape_cast %451 : vector<10xf32> to vector<10x1xf32>
    %cst_173 = arith.constant 3.200000e+01 : f32
    %453 = vector.broadcast %cst_173 : f32 to vector<10x1xf32>
    %454 = arith.divf %452, %453 : vector<10x1xf32>
    %455 = vector.broadcast %454 : vector<10x1xf32> to vector<10x32xf32>
    %456 = arith.subf %446, %455 : vector<10x32xf32>
    %457 = arith.mulf %456, %456 : vector<10x32xf32>
    %cst_174 = arith.constant dense<0.000000e+00> : vector<10xf32>
    %458 = vector.multi_reduction <add>, %457, %cst_174 [1] : vector<10x32xf32> to vector<10xf32>
    %459 = vector.shape_cast %458 : vector<10xf32> to vector<10x1xf32>
    %cst_175 = arith.constant 3.200000e+01 : f32
    %460 = vector.broadcast %cst_175 : f32 to vector<10x1xf32>
    %461 = arith.divf %459, %460 : vector<10x1xf32>
    %462 = vector.broadcast %454 : vector<10x1xf32> to vector<10x32xf32>
    %463 = arith.subf %446, %462 : vector<10x32xf32>
    %cst_176 = arith.constant 9.99999997E-7 : f32
    %464 = vector.broadcast %cst_176 : f32 to vector<10x1xf32>
    %465 = arith.addf %461, %464 : vector<10x1xf32>
    %466 = math.rsqrt %465 : vector<10x1xf32>
    %467 = vector.broadcast %466 : vector<10x1xf32> to vector<10x32xf32>
    %468 = arith.mulf %463, %467 : vector<10x32xf32>
    %469 = vector.broadcast %448 : vector<1x32xf32> to vector<10x32xf32>
    %470 = arith.mulf %468, %469 : vector<10x32xf32>
    %471 = vector.broadcast %450 : vector<1x32xf32> to vector<10x32xf32>
    %472 = arith.addf %470, %471 : vector<10x32xf32>
    %473 = arith.truncf %472 : vector<10x32xf32> to vector<10x32xbf16>
    %c1_177 = arith.constant 1 : index
    %c0_178 = arith.constant 0 : index
    %c0_179 = arith.constant 0 : index
    %474 = vector.load %arg12[%c1_177, %c0_178, %c0_179] : memref<2x32x64xbf16, #tpu.memory_space<vmem>>, vector<1x32x64xbf16>
    %475 = vector.shape_cast %474 : vector<1x32x64xbf16> to vector<32x64xbf16>
    %cst_180 = arith.constant dense<0.000000e+00> : vector<10x64xf32>
    %476 = tpu.matmul %473, %475, %cst_180 {dimension_numbers = #tpu.dot_dimension_numbers<[1], [0], [0], [1], [0, 0, 1, 1], [], []>} : vector<10x32xbf16>, vector<32x64xbf16>, vector<10x64xf32> -> vector<10x64xf32>
    %c1_181 = arith.constant 1 : index
    %c0_182 = arith.constant 0 : index
    %c0_183 = arith.constant 0 : index
    %477 = vector.load %arg13[%c1_181, %c0_182, %c0_183] : memref<2x1x64xf32, #tpu.memory_space<vmem>>, vector<1x1x64xf32>
    %478 = vector.shape_cast %477 : vector<1x1x64xf32> to vector<1x64xf32>
    %479 = vector.broadcast %478 : vector<1x64xf32> to vector<10x64xf32>
    %480 = arith.addf %476, %479 : vector<10x64xf32>
    %cst_184 = arith.constant 5.000000e-01 : f32
    %481 = vector.broadcast %cst_184 : f32 to vector<10x64xf32>
    %482 = arith.mulf %481, %480 : vector<10x64xf32>
    %cst_185 = arith.constant 0.707106769 : f32
    %483 = vector.broadcast %cst_185 : f32 to vector<10x64xf32>
    %484 = arith.mulf %480, %483 : vector<10x64xf32>
    %485 = math.erf %484 : vector<10x64xf32>
    %cst_186 = arith.constant 1.000000e+00 : f32
    %486 = vector.broadcast %cst_186 : f32 to vector<10x64xf32>
    %487 = arith.addf %486, %485 : vector<10x64xf32>
    %488 = arith.mulf %482, %487 : vector<10x64xf32>
    %489 = arith.truncf %488 : vector<10x64xf32> to vector<10x64xbf16>
    %c1_187 = arith.constant 1 : index
    %c0_188 = arith.constant 0 : index
    %c0_189 = arith.constant 0 : index
    %490 = vector.load %arg14[%c1_187, %c0_188, %c0_189] : memref<2x64x32xbf16, #tpu.memory_space<vmem>>, vector<1x64x32xbf16>
    %491 = vector.shape_cast %490 : vector<1x64x32xbf16> to vector<64x32xbf16>
    %cst_190 = arith.constant dense<0.000000e+00> : vector<10x32xf32>
    %492 = tpu.matmul %489, %491, %cst_190 {dimension_numbers = #tpu.dot_dimension_numbers<[1], [0], [0], [1], [0, 0, 1, 1], [], []>} : vector<10x64xbf16>, vector<64x32xbf16>, vector<10x32xf32> -> vector<10x32xf32>
    %c1_191 = arith.constant 1 : index
    %c0_192 = arith.constant 0 : index
    %c0_193 = arith.constant 0 : index
    %493 = vector.load %arg15[%c1_191, %c0_192, %c0_193] : memref<2x1x32xf32, #tpu.memory_space<vmem>>, vector<1x1x32xf32>
    %494 = vector.shape_cast %493 : vector<1x1x32xf32> to vector<1x32xf32>
    %495 = vector.broadcast %494 : vector<1x32xf32> to vector<10x32xf32>
    %496 = arith.addf %492, %495 : vector<10x32xf32>
    %497 = arith.addf %446, %496 : vector<10x32xf32>
    %c0_194 = arith.constant 0 : index
    %c0_195 = arith.constant 0 : index
    %498 = vector.load %arg16[%c0_194, %c0_195] : memref<1x32xf32, #tpu.memory_space<vmem>>, vector<1x32xf32>
    %c0_196 = arith.constant 0 : index
    %c0_197 = arith.constant 0 : index
    %499 = vector.load %arg17[%c0_196, %c0_197] : memref<1x32xf32, #tpu.memory_space<vmem>>, vector<1x32xf32>
    %cst_198 = arith.constant dense<0.000000e+00> : vector<10xf32>
    %500 = vector.multi_reduction <add>, %497, %cst_198 [1] : vector<10x32xf32> to vector<10xf32>
    %501 = vector.shape_cast %500 : vector<10xf32> to vector<10x1xf32>
    %cst_199 = arith.constant 3.200000e+01 : f32
    %502 = vector.broadcast %cst_199 : f32 to vector<10x1xf32>
    %503 = arith.divf %501, %502 : vector<10x1xf32>
    %504 = vector.broadcast %503 : vector<10x1xf32> to vector<10x32xf32>
    %505 = arith.subf %497, %504 : vector<10x32xf32>
    %506 = arith.mulf %505, %505 : vector<10x32xf32>
    %cst_200 = arith.constant dense<0.000000e+00> : vector<10xf32>
    %507 = vector.multi_reduction <add>, %506, %cst_200 [1] : vector<10x32xf32> to vector<10xf32>
    %508 = vector.shape_cast %507 : vector<10xf32> to vector<10x1xf32>
    %cst_201 = arith.constant 3.200000e+01 : f32
    %509 = vector.broadcast %cst_201 : f32 to vector<10x1xf32>
    %510 = arith.divf %508, %509 : vector<10x1xf32>
    %511 = vector.broadcast %503 : vector<10x1xf32> to vector<10x32xf32>
    %512 = arith.subf %497, %511 : vector<10x32xf32>
    %cst_202 = arith.constant 9.99999997E-7 : f32
    %513 = vector.broadcast %cst_202 : f32 to vector<10x1xf32>
    %514 = arith.addf %510, %513 : vector<10x1xf32>
    %515 = math.rsqrt %514 : vector<10x1xf32>
    %516 = vector.broadcast %515 : vector<10x1xf32> to vector<10x32xf32>
    %517 = arith.mulf %512, %516 : vector<10x32xf32>
    %518 = vector.broadcast %498 : vector<1x32xf32> to vector<10x32xf32>
    %519 = arith.mulf %517, %518 : vector<10x32xf32>
    %520 = vector.broadcast %499 : vector<1x32xf32> to vector<10x32xf32>
    %521 = arith.addf %519, %520 : vector<10x32xf32>
    %522 = vector.extract_strided_slice %521 {offsets = [0, 0], sizes = [1, 32], strides = [1, 1]} : vector<10x32xf32> to vector<1x32xf32>
    %523 = vector.extract_strided_slice %521 {offsets = [5, 0], sizes = [1, 32], strides = [1, 1]} : vector<10x32xf32> to vector<1x32xf32>
    %524 = tpu.concatenate %522, %523 in 0 : vector<1x32xf32>, vector<1x32xf32> -> vector<2x32xf32>
    %c0_203 = arith.constant 0 : index
    %c0_204 = arith.constant 0 : index
    %525 = vector.load %arg18[%c0_203, %c0_204] : memref<2x6xf32, #tpu.memory_space<vmem>>, vector<2x6xf32>
    %c0_205 = arith.constant 0 : index
    %c0_206 = arith.constant 0 : index
    %526 = vector.load %arg19[%c0_205, %c0_206] : memref<6x6xf32, #tpu.memory_space<vmem>>, vector<6x6xf32>
    %cst_207 = arith.constant dense<0.000000e+00> : vector<2x6xf32>
    %527 = tpu.matmul %525, %526, %cst_207 {dimension_numbers = #tpu.dot_dimension_numbers<[1], [0], [0], [1], [0, 0, 1, 1], [], []>} : vector<2x6xf32>, vector<6x6xf32>, vector<2x6xf32> -> vector<2x6xf32>
    %c0_208 = arith.constant 0 : index
    %c0_209 = arith.constant 0 : index
    %528 = vector.load %arg20[%c0_208, %c0_209] : memref<1x6xf32, #tpu.memory_space<vmem>>, vector<1x6xf32>
    %529 = vector.broadcast %528 : vector<1x6xf32> to vector<2x6xf32>
    %530 = arith.addf %527, %529 : vector<2x6xf32>
    %cst_210 = arith.constant 5.000000e-01 : f32
    %531 = vector.broadcast %cst_210 : f32 to vector<2x6xf32>
    %532 = arith.mulf %531, %530 : vector<2x6xf32>
    %cst_211 = arith.constant 0.707106769 : f32
    %533 = vector.broadcast %cst_211 : f32 to vector<2x6xf32>
    %534 = arith.mulf %530, %533 : vector<2x6xf32>
    %535 = math.erf %534 : vector<2x6xf32>
    %cst_212 = arith.constant 1.000000e+00 : f32
    %536 = vector.broadcast %cst_212 : f32 to vector<2x6xf32>
    %537 = arith.addf %536, %535 : vector<2x6xf32>
    %538 = arith.mulf %532, %537 : vector<2x6xf32>
    %c0_213 = arith.constant 0 : index
    %c0_214 = arith.constant 0 : index
    %539 = vector.load %arg21[%c0_213, %c0_214] : memref<38x32xf32, #tpu.memory_space<vmem>>, vector<38x32xf32>
    %540 = vector.extract_strided_slice %539 {offsets = [0, 0], sizes = [32, 32], strides = [1, 1]} : vector<38x32xf32> to vector<32x32xf32>
    %cst_215 = arith.constant dense<0.000000e+00> : vector<2x32xf32>
    %541 = tpu.matmul %524, %540, %cst_215 {dimension_numbers = #tpu.dot_dimension_numbers<[1], [0], [0], [1], [0, 0, 1, 1], [], []>} : vector<2x32xf32>, vector<32x32xf32>, vector<2x32xf32> -> vector<2x32xf32>
    %542 = vector.extract_strided_slice %539 {offsets = [32, 0], sizes = [6, 32], strides = [1, 1]} : vector<38x32xf32> to vector<6x32xf32>
    %cst_216 = arith.constant dense<0.000000e+00> : vector<2x32xf32>
    %543 = tpu.matmul %538, %542, %cst_216 {dimension_numbers = #tpu.dot_dimension_numbers<[1], [0], [0], [1], [0, 0, 1, 1], [], []>} : vector<2x6xf32>, vector<6x32xf32>, vector<2x32xf32> -> vector<2x32xf32>
    %544 = arith.addf %541, %543 : vector<2x32xf32>
    %c0_217 = arith.constant 0 : index
    %c0_218 = arith.constant 0 : index
    %545 = vector.load %arg22[%c0_217, %c0_218] : memref<1x32xf32, #tpu.memory_space<vmem>>, vector<1x32xf32>
    %546 = vector.broadcast %545 : vector<1x32xf32> to vector<2x32xf32>
    %547 = arith.addf %544, %546 : vector<2x32xf32>
    %cst_219 = arith.constant 5.000000e-01 : f32
    %548 = vector.broadcast %cst_219 : f32 to vector<2x32xf32>
    %549 = arith.mulf %548, %547 : vector<2x32xf32>
    %cst_220 = arith.constant 0.707106769 : f32
    %550 = vector.broadcast %cst_220 : f32 to vector<2x32xf32>
    %551 = arith.mulf %547, %550 : vector<2x32xf32>
    %552 = math.erf %551 : vector<2x32xf32>
    %cst_221 = arith.constant 1.000000e+00 : f32
    %553 = vector.broadcast %cst_221 : f32 to vector<2x32xf32>
    %554 = arith.addf %553, %552 : vector<2x32xf32>
    %555 = arith.mulf %549, %554 : vector<2x32xf32>
    %c0_222 = arith.constant 0 : index
    %c0_223 = arith.constant 0 : index
    %556 = vector.load %arg23[%c0_222, %c0_223] : memref<2x32xf32, #tpu.memory_space<vmem>>, vector<2x32xf32>
    tpu.vector_store %arg23[%c0_222, %c0_223], %555 {strides = array<i32>} : memref<2x32xf32, #tpu.memory_space<vmem>>, vector<2x32xf32>,
    return
  }
}

</mosaic_0001>

<bundles_post_ra>
// kernel: tile.0
= control target key start
LH: loop header
LB: loop body
LE: loop exit
PB: predicated region body
PF: predicated region fallthrough
CT: control target
= control target key end

     0   :  { %s156_s8 = smov 104   ;;  %vm34_vm0 = vcmask 64512   ;;  %s157_s9 = smov 112   ;;  %vm40_vm1 = vcmask 1048512   ;;  %vm46_vm2 = vcmask 982912   ;;  %vm52_vm3 = vcmask 917312   ;;  %s187_s0 = inlined_call_operand.vmem [shape: bf16[16,8], index: 0, kind: input, shape index: {}]   ;;  %s188_s1 = inlined_call_operand.vmem [shape: bf16[1,128], index: 1, kind: output, shape index: {}]  }
   0x1   :  { %v136_v0 = vld [vmem:[%s187_s0] sm:$0xff]   ;;  %s155_s0 = smov 120   ;;  %s158_s10 = smov 96   ;;  %vm58_vm4 = vcmask 851712   ;;  %vm64_vm5 = vcmask 786112   ;;  %vm70_vm6 = vcmask 720512  }
   0x2   :  { %v138_v1 = vunpack.c.h.bf16 %v136_v0  ;;  %v137_v2 = vunpack.c.l.bf16 %v136_v0  ;;  %s159_s11 = smov 88   ;;  %s160_s12 = smov 80   ;;  %vm76_vm7 = vcmask 654912   ;;  %vm82_vm8 = vcmask 589312  }
   0x3   :  { %s161_s13 = smov 72   ;;  %s162_s14 = smov 64   ;;  %vm88_vm9 = vcmask 523712   ;;  %vm94_vm10 = vcmask 458112   ;;  %vm100_vm11 = vcmask 392512   ;;  %vm106_vm12 = vcmask 326912  }
   0x4   :  { %19 = vst [vmem:[#allocation1 + $0x8] sm:$0xff] %v138_v1  ;;  %32 = vst [vmem:[#allocation1] sm:$0xff] %v137_v2  ;;  %s163_s15 = smov 56   ;;  %s164_s16 = smov 48   ;;  %vm112_vm13 = vcmask 261312   ;;  %vm118_vm14 = vcmask 195712  }
   0x5   :  { %s165_s17 = smov 40   ;;  %s166_s18 = smov 32   ;;  %vm124_vm15 = vcmask 130112   ;;  %v170_v35 = vmov 0.0  }
   0x6   :  { %s167_s19 = smov 24   ;;  %s168_s20 = smov 16  }
   0x7   :  { %s169_s21 = smov 8  }
   0xb   :  { %v37_v3 = vld [vmem:[#allocation1 + $0xf] sm:$0x1]   ;;  %v49_v4 = vld [vmem:[#allocation1 + $0xd] sm:$0x1]   ;;  %v43_v5 = vld [vmem:[#allocation1 + $0xe] sm:$0x1]  }
   0xc   :  { %38 = vrot.lane.b32.xlu0 %v37_v3, %s155_s0  ;;  %50 = vrot.lane.b32.xlu1 %v49_v4, %s156_s8  ;;  %v55_v6 = vld [vmem:[#allocation1 + $0xc] sm:$0x1]   ;;  %v33_v7 = vld [vmem:[#allocation1] sm:$0x1]   ;;  %v61_v8 = vld [vmem:[#allocation1 + $0xb] sm:$0x1]  }
   0xd   :  { %v67_v9 = vld [vmem:[#allocation1 + $0xa] sm:$0x1]   ;;  %35 = vst.msk [vmem:[#allocation0] sm:$0x1] %vm34_vm0, %v33_v7   ;;  %v73_v10 = vld [vmem:[#allocation1 + $0x9] sm:$0x1]  }
   0xe   :  { %v79_v11 = vld [vmem:[#allocation1 + $0x8] sm:$0x1]   ;;  %v85_v12 = vld [vmem:[#allocation1 + $0x7] sm:$0x1]   ;;  %v91_v13 = vld [vmem:[#allocation1 + $0x6] sm:$0x1]  }
   0xf   :  { %v97_v14 = vld [vmem:[#allocation1 + $0x5] sm:$0x1]   ;;  %v103_v15 = vld [vmem:[#allocation1 + $0x4] sm:$0x1]   ;;  %v109_v16 = vld [vmem:[#allocation1 + $0x3] sm:$0x1]  }
  0x10   :  { %44 = vrot.lane.b32.xlu0 %v43_v5, %s157_s9  ;;  %56 = vrot.lane.b32.xlu1 %v55_v6, %s158_s10  ;;  %v115_v17 = vld [vmem:[#allocation1 + $0x2] sm:$0x1]   ;;  %v121_v18 = vld [vmem:[#allocation1 + $0x1] sm:$0x1]  }
  0x14   :  { %62 = vrot.lane.b32.xlu0 %v61_v8, %s159_s11  ;;  %68 = vrot.lane.b32.xlu1 %v67_v9, %s160_s12 }
  0x18   :  { %74 = vrot.lane.b32.xlu0 %v73_v10, %s161_s13  ;;  %80 = vrot.lane.b32.xlu1 %v79_v11, %s162_s14 }
  0x1c   :  { %86 = vrot.lane.b32.xlu0 %v85_v12, %s163_s15  ;;  %92 = vrot.lane.b32.xlu1 %v91_v13, %s164_s16 }
  0x20   :  { %98 = vrot.lane.b32.xlu0 %v97_v14, %s165_s17  ;;  %104 = vrot.lane.b32.xlu1 %v103_v15, %s166_s18 }
  0x24   :  { %110 = vrot.lane.b32.xlu0 %v109_v16, %s167_s19  ;;  %116 = vrot.lane.b32.xlu1 %v115_v17, %s168_s20 }
  0x28   :  { %122 = vrot.lane.b32.xlu0 %v121_v18, %s169_s21 }
  0x7e   :  { %v39_v19 = vpop.permute.xlu0 %38   ;;  %v51_v20 = vpop.permute.xlu1 %50  }
  0x7f   :  { %41 = vst.msk [vmem:[#allocation0] sm:$0x1] %vm40_vm1, %v39_v19  }
  0x82   :  { %v45_v21 = vpop.permute.xlu0 %44   ;;  %v57_v22 = vpop.permute.xlu1 %56  }
  0x83   :  { %47 = vst.msk [vmem:[#allocation0] sm:$0x1] %vm46_vm2, %v45_v21  }
  0x84   :  { %53 = vst.msk [vmem:[#allocation0] sm:$0x1] %vm52_vm3, %v51_v20  }
  0x85   :  { %59 = vst.msk [vmem:[#allocation0] sm:$0x1] %vm58_vm4, %v57_v22  }
  0x86   :  { %v63_v23 = vpop.permute.xlu0 %62   ;;  %v69_v24 = vpop.permute.xlu1 %68  }
  0x87   :  { %65 = vst.msk [vmem:[#allocation0] sm:$0x1] %vm64_vm5, %v63_v23  }
  0x88   :  { %71 = vst.msk [vmem:[#allocation0] sm:$0x1] %vm70_vm6, %v69_v24  }
  0x8a   :  { %v75_v25 = vpop.permute.xlu0 %74   ;;  %v81_v26 = vpop.permute.xlu1 %80  }
  0x8b   :  { %77 = vst.msk [vmem:[#allocation0] sm:$0x1] %vm76_vm7, %v75_v25  }
  0x8c   :  { %83 = vst.msk [vmem:[#allocation0] sm:$0x1] %vm82_vm8, %v81_v26  }
  0x8e   :  { %v87_v27 = vpop.permute.xlu0 %86   ;;  %v93_v28 = vpop.permute.xlu1 %92  }
  0x8f   :  { %89 = vst.msk [vmem:[#allocation0] sm:$0x1] %vm88_vm9, %v87_v27  }
  0x90   :  { %95 = vst.msk [vmem:[#allocation0] sm:$0x1] %vm94_vm10, %v93_v28  }
  0x92   :  { %v99_v29 = vpop.permute.xlu0 %98   ;;  %v105_v30 = vpop.permute.xlu1 %104  }
  0x93   :  { %101 = vst.msk [vmem:[#allocation0] sm:$0x1] %vm100_vm11, %v99_v29  }
  0x94   :  { %107 = vst.msk [vmem:[#allocation0] sm:$0x1] %vm106_vm12, %v105_v30  }
  0x96   :  { %v111_v31 = vpop.permute.xlu0 %110   ;;  %v117_v32 = vpop.permute.xlu1 %116  }
  0x97   :  { %113 = vst.msk [vmem:[#allocation0] sm:$0x1] %vm112_vm13, %v111_v31  }
  0x98   :  { %119 = vst.msk [vmem:[#allocation0] sm:$0x1] %vm118_vm14, %v117_v32  }
  0x9a   :  { %v123_v33 = vpop.permute.xlu0 %122  }
  0x9b   :  { %125 = vst.msk [vmem:[#allocation0] sm:$0x1] %vm124_vm15, %v123_v33  }
  0xa2   :  { %v130_v34 = vld [vmem:[#allocation0] sm:$0x3] }
  0xa3   :  { %v131_v36 = vpack.c.bf16 %v170_v35, %v130_v34 }
  0xa5   :  { %133 = vst [vmem:[%s188_s1] sm:$0x1] %v131_v36 }

// kernel: tile.19
= control target key start
LH: loop header
LB: loop body
LE: loop exit
PB: predicated region body
PF: predicated region fallthrough
CT: control target
= control target key end

     0   :  { %vm3_vm0 = vcmask 261120   ;;  %s34_s0 = inlined_call_operand.vmem [shape: f32[2,5,32], index: 0, kind: input, shape index: {}]   ;;  %s35_s1 = inlined_call_operand.vmem [shape: f32[10,32], index: 1, kind: output, shape index: {}]  }
   0x1   :  { %v2_v0 = vld [vmem:[%s34_s0] sm:$0x1f]   ;;  %v10_v1 = vld [vmem:[%s34_s0 + $0x8] sm:$0x1f]  }
   0x2   :  { %4 = vst.msk [vmem:[%s35_s1] sm:$0x1f] %vm3_vm0, %v2_v0   ;;  %11 = vst.msk [vmem:[%s35_s1 + $0x5] sm:$0x1f] %vm3_vm0, %v10_v1  }

// kernel: vit_hybrid_encoder.1
= control target key start
LH: loop header
LB: loop body
LE: loop exit
PB: predicated region body
PF: predicated region fallthrough
CT: control target
= control target key end

     0   :  { %s5111_s0 = inlined_call_operand.vmem [shape: bf16[10,257], index: 0, kind: input, shape index: {}]   ;;  %s5112_s1 = inlined_call_operand.vmem [shape: bf16[257,128], index: 1, kind: input, shape index: {}]   ;;  %s5113_s2 = inlined_call_operand.vmem [shape: bf16[128,32], index: 2, kind: input, shape index: {}]   ;;  %s5114_s3 = inlined_call_operand.vmem [shape: f32[10,32], index: 3, kind: input, shape index: {}]   ;;  %s5115_s4 = inlined_call_operand.vmem [shape: f32[2,1,32], index: 4, kind: input, shape index: {}]   ;;  %s5116_s5 = inlined_call_operand.vmem [shape: f32[2,1,32], index: 5, kind: input, shape index: {}]   ;;  %s5117_s6 = inlined_call_operand.vmem [shape: bf16[2,32,96], index: 6, kind: input, shape index: {}]   ;;  %s5118_s7 = inlined_call_operand.vmem [shape: f32[2,1,96], index: 7, kind: input, shape index: {}]   ;;  %s5119_s8 = inlined_call_operand.vmem [shape: bf16[2,32,32], index: 8, kind: input, shape index: {}]   ;;  %s5120_s9 = inlined_call_operand.vmem [shape: f32[2,1,32], index: 9, kind: input, shape index: {}]   ;;  %s5121_s10 = inlined_call_operand.vmem [shape: f32[2,1,32], index: 10, kind: input, shape index: {}]   ;;  %s5122_s11 = inlined_call_operand.vmem [shape: f32[2,1,32], index: 11, kind: input, shape index: {}]   ;;  %s5123_s12 = inlined_call_operand.vmem [shape: bf16[2,32,64], index: 12, kind: input, shape index: {}]   ;;  %s5124_s13 = inlined_call_operand.vmem [shape: f32[2,1,64], index: 13, kind: input, shape index: {}]   ;;  %s5125_s14 = inlined_call_operand.vmem [shape: bf16[2,64,32], index: 14, kind: input, shape index: {}]   ;;  %s5126_s15 = inlined_call_operand.vmem [shape: f32[2,1,32], index: 15, kind: input, shape index: {}]   ;;  %s5127_s16 = inlined_call_operand.vmem [shape: f32[1,32], index: 16, kind: input, shape index: {}]   ;;  %s5128_s17 = inlined_call_operand.vmem [shape: f32[1,32], index: 17, kind: input, shape index: {}]   ;;  %s5129_s18 = inlined_call_operand.vmem [shape: f32[2,6], index: 18, kind: input, shape index: {}]   ;;  %s5130_s19 = inlined_call_operand.vmem [shape: f32[6,6], index: 19, kind: input, shape index: {}]   ;;  %s5131_s20 = inlined_call_operand.vmem [shape: f32[1,6], index: 20, kind: input, shape index: {}]   ;;  %s5132_s21 = inlined_call_operand.vmem [shape: f32[38,32], index: 21, kind: input, shape index: {}]   ;;  %s5133_s22 = inlined_call_operand.vmem [shape: f32[1,32], index: 22, kind: input, shape index: {}]   ;;  %s5134_s23 = inlined_call_operand.hbm [shape: f32[2,32], index: 23, kind: output, shape index: {}]  }
   0x1   :  { %5161 = sst [smem:[#allocation5_spill]] %s5111_s0 }
   0x2   :  { %5162 = sst [smem:[#allocation6_spill]] %s5112_s1 }
   0x3   :  { %5163 = sst [smem:[#allocation7_spill]] %s5113_s2 }
   0x4   :  { %5164 = sst [smem:[#allocation8_spill]] %s5114_s3 }
   0x5   :  { %5165 = sst [smem:[#allocation9_spill]] %s5115_s4 }
   0x6   :  { %5166 = sst [smem:[#allocation10_spill]] %s5116_s5 }
   0x7   :  { %5167 = sst [smem:[#allocation11_spill]] %s5117_s6 }
   0x8   :  { %5168 = sst [smem:[#allocation12_spill]] %s5118_s7 }
   0x9   :  { %s5169_s24 = sld [smem:[#allocation6_spill]]  ;;  %v4194_v2 = vmov 0.0   ;;  %vm4195_vm0 = vmmov 0   ;;  %vm231_vm1 = vcmask 1040384   ;;  %v4196_v12 = vmov 0   ;;  %s5170_s25 = sld [smem:[#allocation5_spill]] }
   0xa   :  { %3670 = vmatprep.subr.bf16.mxu1 %v4194_v2  ;;  %3672 = vmatprep.mubr.msk.bf16.mxu1 %vm4195_vm0, %v4194_v2  ;;  %v233_v13 = vsel %vm231_vm1, 65535, %v4196_v12  ;;  %vm227_vm2 = vcmask 7168   ;;  %s5171_s6 = sld [smem:[#allocation7_spill]] }
   0xf   :  { %v4027_v0 = vld [vmem:[%s5169_s24 + $0x40] sm:$0xff]   ;;  %v4029_v3 = vld [vmem:[%s5169_s24 + $0x48] sm:$0xff]   ;;  %v4031_v5 = vld [vmem:[%s5169_s24 + $0x50] sm:$0xff]  }
  0x10   :  { %v4028_v1 = vld [vmem:[%s5169_s24] sm:$0xff]   ;;  %3536 = vmatprep.subr.bf16.mxu0 %v4027_v0  ;;  %v4030_v4 = vld [vmem:[%s5169_s24 + $0x8] sm:$0xff]   ;;  %v4032_v6 = vld [vmem:[%s5169_s24 + $0x10] sm:$0xff]  }
  0x11   :  { %3537 = vmatpush3.bf16.msra.mxu0 %v4028_v1  ;;  %v4033_v7 = vld [vmem:[%s5169_s24 + $0x58] sm:$0xff]   ;;  %v4035_v9 = vld [vmem:[%s5169_s24 + $0x60] sm:$0xff]   ;;  %v4037_v11 = vld [vmem:[%s5169_s24 + $0x68] sm:$0xff]  }
  0x12   :  { %3538 = vmatprep.subr.bf16.mxu0 %v4029_v3  ;;  %v4034_v8 = vld [vmem:[%s5169_s24 + $0x18] sm:$0xff]   ;;  %v4036_v10 = vld [vmem:[%s5169_s24 + $0x20] sm:$0xff]   ;;  %v4038_v15 = vld [vmem:[%s5169_s24 + $0x28] sm:$0xff]  }
  0x13   :  { %v4043_v14 = vld [vmem:[%s5169_s24 + $0x80] ss:$0 sps:$4 sm:$0x11]   ;;  %v4039_v16 = vld [vmem:[%s5169_s24 + $0x70] sm:$0xff]   ;;  %v4041_v22 = vld [vmem:[%s5169_s24 + $0x78] sm:$0xff]  }
  0x14   :  { %v235_v17 = vand.u32 %v4043_v14, %v233_v13  ;;  %v4046_v18 = vld [vmem:[%s5170_s25 + $0x4] ss:$12 sps:$4 sm:$0x1f]   ;;  %v4047_v19 = vld [vmem:[%s5170_s25 + $0x8] ss:$12 sps:$4 sm:$0x1f]  }
  0x15   :  { %3539 = vmatpush3.bf16.msra.mxu0 %v4030_v4  ;;  %v4048_v20 = vld [vmem:[%s5171_s6] sm:$0xff]   ;;  %v4040_v21 = vld [vmem:[%s5169_s24 + $0x30] sm:$0xff]   ;;  %269 = vmatprep.mubr.bf16.mxu0 %v4046_v18  ;;  %v4049_v23 = vld [vmem:[%s5171_s6 + $0x8] sm:$0xff]  }
  0x16   :  { %3540 = vmatprep.subr.bf16.mxu0 %v4031_v5  ;;  %3671 = vmatpush3.bf16.msra.mxu1 %v235_v17  ;;  %v4042_v24 = vld [vmem:[%s5169_s24 + $0x38] sm:$0xff]   ;;  %v4050_v25 = vld [vmem:[%s5171_s6 + $0x10] sm:$0xff]   ;;  %v4044_v26 = vld [vmem:[%s5170_s25] ss:$12 sps:$4 sm:$0x1f]  }
  0x17   :  { %3676 = vmatprep.subr.bf16.mxu1 %v4194_v2  ;;  %v4051_v27 = vld [vmem:[%s5171_s6 + $0x18] sm:$0xff]   ;;  %v4052_v28 = vld [vmem:[%s5171_s6 + $0x20] sm:$0xff]  }
  0x19   :  { %3541 = vmatpush3.bf16.msra.mxu0 %v4032_v6  ;;  %3673 = vmatmul.mubr.msk.bf16.vlgmr.msra.gmra.mrb[0].mxu1 %vm227_vm2, %v4047_v19 }
  0x1a   :  { %3542 = vmatprep.subr.bf16.mxu0 %v4033_v7  ;;  %3677 = vmatpush3.bf16.msra.mxu1 %v4048_v20 }
  0x1b   :  { %3678 = vmatprep.subr.bf16.mxu1 %v4194_v2  ;;  %3692 = vmatprep.mubr.msk.bf16.mxu1 %vm4195_vm0, %v4194_v2 }
  0x1d   :  { %3543 = vmatpush3.bf16.msra.mxu0 %v4034_v8 }
  0x1e   :  { %3544 = vmatprep.subr.bf16.mxu0 %v4035_v9  ;;  %3679 = vmatpush3.bf16.msra.mxu1 %v4049_v23 }
  0x1f   :  { %3680 = vmatprep.subr.bf16.mxu1 %v4194_v2 }
  0x21   :  { %3545 = vmatpush3.bf16.msra.mxu0 %v4036_v10 }
  0x22   :  { %3546 = vmatprep.subr.bf16.mxu0 %v4037_v11  ;;  %3681 = vmatpush3.bf16.msra.mxu1 %v4050_v25 }
  0x23   :  { %3682 = vmatprep.subr.bf16.mxu1 %v4194_v2 }
  0x25   :  { %3547 = vmatpush3.bf16.msra.mxu0 %v4038_v15 }
  0x26   :  { %3548 = vmatprep.subr.bf16.mxu0 %v4039_v16  ;;  %3683 = vmatpush3.bf16.msra.mxu1 %v4051_v27 }
  0x27   :  { %3684 = vmatprep.subr.bf16.mxu1 %v4194_v2 }
  0x29   :  { %3549 = vmatpush3.bf16.msra.mxu0 %v4040_v21 }
  0x2a   :  { %3550 = vmatprep.subr.bf16.mxu0 %v4041_v22 }
  0x2d   :  { %3551 = vmatpush3.bf16.msra.mxu0 %v4042_v24 }
  0x2e   :  { %3696 = vmatprep.subr.bf16.mxu0 %v4194_v2 }
  0x30   :  { %270 = vmatmul.mubr.bf16.vlgmr.msra.gmra.mrb[0].mxu0 %v4044_v26 }
  0x31   :  { %3700 = vmatprep.mubr.msk.bf16.mxu0 %vm4195_vm0, %v4194_v2 }
  0x32   :  { %28 = vsyncpa [#allocation3], 0  ;;  %3685 = vmatpush3.bf16.msra.mxu1 %v4052_v28  ;;  %v4053_v29 = vld [vmem:[%s5171_s6 + $0x28] sm:$0xff]   ;;  %v4054_v30 = vld [vmem:[%s5171_s6 + $0x30] sm:$0xff]   ;;  %s5172_s1 = sld [smem:[#allocation8_spill]]  ;;  %vm431_vm3 = vcmask 261120  }
  0x33   :  { %3686 = vmatprep.subr.bf16.mxu1 %v4194_v2  ;;  %v4055_v31 = vld [vmem:[%s5171_s6 + $0x38] sm:$0xff]   ;;  %vm435_vm4 = vcmask 254976   ;;  %s5173_s7 = sld [smem:[#allocation11_spill]]  ;;  %s5174_s0 = sld [smem:[#allocation9_spill]]  ;;  %vm548_vm5 = vcmask 64512   ;;  %vm596_vm6 = vcmask 36864  }
  0x34   :  { %s5175_s6 = sld [smem:[#allocation10_spill]]  ;;  %s5176_s26 = sld [smem:[#allocation12_spill]]  ;;  %vm615_vm7 = vcmask 1041408   ;;  %vm616_vm8 = vcmask 1042432   ;;  %vm611_vm9 = vcmask 39936   ;;  %vm1008_vm10 = vcmask 130048  }
  0x35   :  { %s4197_s2 = smov 88   ;;  %s4198_s27 = smov 96   ;;  %vm1010_vm11 = vcmask 195584   ;;  %vm1479_vm12 = vcmask 1044480   ;;  %vm1713_vm13 = vcmask 523264   ;;  %vm3133_vm14 = vcmask 1045504  }
  0x36   :  { %3687 = vmatpush3.bf16.msra.mxu1 %v4053_v29  ;;  %s4199_s24 = smov 120   ;;  %s4200_s28 = smov 112   ;;  %vm3129_vm15 = vcmask 48128  }
  0x37   :  { %3688 = vmatprep.subr.bf16.mxu1 %v4194_v2  ;;  %s5153_s25 = smov 80   ;;  %s5159_s29 = smov 104  }
  0x38   :  { %v338_v47 = vld [vmem:[%s5172_s1] sm:$0xff]  ;;  %v339_v49 = vld [vmem:[%s5172_s1 + $0x8] sm:$0x3]  ;;  %s5151_s3 = smov 72   ;;  %s5149_s4 = smov 56  }
  0x39   :  { %v4056_v4 = vld [vmem:[%s5173_s7] sm:$0xff]   ;;  %v4057_v5 = vld [vmem:[%s5173_s7 + $0x8] sm:$0xff]   ;;  %s5145_s30 = smov 64   ;;  %s5147_s5 = smov 48  }
  0x3a   :  { %3689 = vmatpush3.bf16.msra.mxu1 %v4054_v30  ;;  %3697 = vmatpush3.bf16.msra.mxu0 %v4056_v4  ;;  %v3423_v14 = vld [vmem:[%s5174_s0] ss:$0 sm:$0xff]  ;;  %s5143_s1 = smov 40  }
  0x3b   :  { %3690 = vmatprep.subr.bf16.mxu1 %v4194_v2  ;;  %3698 = vmatprep.subr.bf16.mxu0 %v4194_v2  ;;  %v3424_v18 = vld [vmem:[%s5175_s6] ss:$0 sm:$0xff] }
  0x3c   :  { %v3425_v23 = vld [vmem:[%s5176_s26] ss:$0 sm:$0xff] }
  0x3e   :  { %3691 = vmatpush3.bf16.msra.mxu1 %v4055_v31  ;;  %3699 = vmatpush3.bf16.msra.mxu0 %v4057_v5 }
  0x3f   :  { %3704 = vmatprep.subr.bf16.mxu1 %v4194_v2  ;;  %3710 = vmatprep.subr.bf16.mxu0 %v4194_v2 }
  0xec   :  { %v312_v32 = vpop.f32.mrb[0].mxu1 }
  0xed   :  { %v3674_v33 = vpop.f32.mrb[1].mxu1 }
  0xee   :  { %v315_v34 = vpop.f32.mrb[2].mxu1 }
  0xef   :  { %v3675_v35 = vpop.f32.mrb[3].mxu1 }
 0x103   :  { %v3552_v36 = vpop.f32.mrb[0].mxu0 }
 0x104   :  { %v3553_v37 = vpop.f32.mrb[1].mxu0 }
 0x105   :  { %v3554_v38 = vadd.f32 %v3553_v37, %v3552_v36  ;;  %v3555_v39 = vpop.f32.mrb[2].mxu0 }
 0x106   :  { %v3556_v40 = vpop.f32.mrb[3].mxu0 }
 0x107   :  { %v313_v41 = vadd.f32 %v3554_v38, %v312_v32  ;;  %v3557_v42 = vadd.f32 %v3556_v40, %v3555_v39 }
 0x109   :  { %v316_v43 = vadd.f32 %v3557_v42, %v315_v34  ;;  %v319_v44 = vmax.f32 %v313_v41, 0.0 }
 0x10b   :  { %v320_v45 = vmax.f32 %v316_v43, 0.0 }
 0x10d   :  { %v321_v46 = vpack.c.bf16 %v320_v45, %v319_v44 }
 0x10f   :  { %3693 = vmatmul.mubr.bf16.vlgmr.msra.gmra.mrb[4].mxu1 %v321_v46 }
 0x110   :  { %3706 = vmatprep.mubr.msk.bf16.mxu1 %vm4195_vm0, %v4194_v2 }
 0x1e2   :  { %v422_v48 = vpop.f32.mrb[4].mxu1 }
 0x1e3   :  { %v4444_v50 = vadd.f32 %v422_v48, %v338_v47  ;;  %v3694_v51 = vpop.f32.mrb[5].mxu1 }
 0x1e4   :  { %v425_v52 = vpop.f32.mrb[6].mxu1 }
 0x1e5   :  { %v4446_v53 = vadd.f32 %v425_v52, %v339_v49  ;;  %v3695_v54 = vpop.f32.mrb[7].mxu1  ;;  %v432_v55 = vsel %vm431_vm3, %v4444_v50, 0.0 }
 0x1e6   :  { %433 = vadd.xlane.f32.xlu0 %v432_v55 }
 0x1e7   :  { %v436_v56 = vsel %vm435_vm4, %v4446_v53, 0.0 }
 0x1ea   :  { %437 = vadd.xlane.f32.xlu0 %v436_v56 }
 0x273   :  { %v434_v57 = vpop.xlane.xlu0 %433 }
 0x274   :  { %v440_v58 = vmul.f32 0.03125, %v434_v57 }
 0x276   :  { %v442_v59 = vsub.f32 %v4444_v50, %v440_v58 }
 0x277   :  { %v438_v60 = vpop.xlane.xlu0 %437 }
 0x278   :  { %v441_v61 = vmul.f32 0.03125, %v438_v60  ;;  %v444_v62 = vmul.f32 %v442_v59, %v442_v59 }
 0x27a   :  { %v443_v63 = vsub.f32 %v4446_v53, %v441_v61  ;;  %v446_v0 = vsel %vm431_vm3, %v444_v62, 0.0 }
 0x27b   :  { %447 = vadd.xlane.f32.xlu1 %v446_v0 }
 0x27c   :  { %v445_v1 = vmul.f32 %v443_v63, %v443_v63 }
 0x27e   :  { %v449_v3 = vsel %vm435_vm4, %v445_v1, 0.0 }
 0x27f   :  { %450 = vadd.xlane.f32.xlu1 %v449_v3 }
 0x308   :  { %v448_v6 = vpop.xlane.xlu1 %447 }
 0x309   :  { %v452_v7 = vmul.f32 0.03125, %v448_v6 }
 0x30b   :  { %v454_v8 = vadd.f32 1e-06, %v452_v7 }
 0x30c   :  { %v451_v9 = vpop.xlane.xlu1 %450 }
 0x30d   :  { %4076 = vrsqrt.f32 %v454_v8  ;;  %v453_v10 = vmul.f32 0.03125, %v451_v9 }
 0x30f   :  { %v455_v11 = vadd.f32 1e-06, %v453_v10 }
 0x311   :  { %4078 = vrsqrt.f32 %v455_v11 }
 0x317   :  { %v4077_v12 = vpop.eup %4076 }
 0x318   :  { %v458_v13 = vmul.f32 %v4077_v12, %v442_v59 }
 0x31a   :  { %v466_v16 = vmul.f32 %v3423_v14, %v458_v13 }
 0x31b   :  { %v4079_v15 = vpop.eup %4078 }
 0x31c   :  { %v459_v17 = vmul.f32 %v4079_v15, %v443_v63  ;;  %v474_v20 = vadd.f32 %v3424_v18, %v466_v16 }
 0x31e   :  { %v467_v19 = vmul.f32 %v3423_v14, %v459_v17 }
 0x320   :  { %v475_v21 = vadd.f32 %v3424_v18, %v467_v19 }
 0x322   :  { %v476_v22 = vpack.c.bf16 %v475_v21, %v474_v20 }
 0x324   :  { %3701 = vmatmul.mubr.msk.bf16.vlgmr.msra.gmra.mrb[4].mxu0 %vm431_vm3, %v476_v22 }
 0x325   :  { %3712 = vmatprep.mubr.msk.bf16.mxu0 %vm4195_vm0, %v4194_v2 }
 0x3f7   :  { %v537_v24 = vpop.f32.mrb[4].mxu0 }
 0x3f8   :  { %v3702_v25 = vpop.f32.mrb[5].mxu0  ;;  %v538_v27 = vadd.f32 %v3425_v23, %v537_v24 }
 0x3f9   :  { %v540_v26 = vpop.f32.mrb[6].mxu0 }
 0x3fa   :  { %v541_v28 = vadd.f32 %v3425_v23, %v540_v26  ;;  %v3703_v29 = vpop.f32.mrb[7].mxu0 }
 0x3fc   :  { %v4476_v30 = vpack.c.bf16 %v541_v28, %v538_v27 }
 0x3fe   :  { %664 = vrot.lane.b32.xlu1 %v4476_v30, %s4197_s2  ;;  %546 = vrot.lane.b32.xlu0 %v4476_v30, %s4198_s27  ;;  %v1012_v31 = vshrl.u32 %v4476_v30, 16  ;;  %v1015_v32 = vshll.u32 %v4476_v30, 16 }
 0x400   :  { %v1014_v33 = vrot.slane %v1012_v31, 2  ;;  %v1017_v34 = vrot.slane %v1015_v32, 3 }
 0x402   :  { %662 = vrot.lane.b32.xlu1 %v4476_v30, %s4199_s24  ;;  %773 = vrot.lane.b32.xlu0 %v4476_v30, %s4200_s28  ;;  %v4492_v35 = vor.u32 %v1017_v34, %v1014_v33 }
 0x406   :  { %775 = vrot.lane.b32.xlu1 %v4476_v30, %s5153_s25  ;;  %884 = vrot.lane.b32.xlu0 %v4476_v30, %s5159_s29 }
 0x40a   :  { %886 = vrot.lane.b32.xlu1 %v4476_v30, %s5151_s3  ;;  %1130 = vrot.lane.b32.xlu0 %v4492_v35, %s4197_s2 }
 0x40e   :  { %1241 = vrot.lane.b32.xlu0 %v4492_v35, %s5153_s25  ;;  %1019 = vrot.lane.b32.xlu1 %v4492_v35, %s4198_s27  ;;  %s5155_s25 = smov 16  }
 0x412   :  { %1352 = vrot.lane.b32.xlu0 %v4492_v35, %s5151_s3  ;;  %1128 = vrot.lane.b32.xlu1 %v4492_v35, %s4199_s24 }
 0x416   :  { %1239 = vrot.lane.b32.xlu1 %v4492_v35, %s4200_s28 }
 0x41a   :  { %1350 = vrot.lane.b32.xlu1 %v4492_v35, %s5159_s29  ;;  %s5185_s29 = smov 8  }
 0x470   :  { %v547_v36 = vpop.permute.xlu0 %546  ;;  %v665_v38 = vpop.permute.xlu1 %664 }
 0x471   :  { %v553_v37 = vsel %vm548_vm5, %v547_v36, 0  ;;  %v670_v40 = vsel %vm548_vm5, %v665_v38, 0 }
 0x472   :  { %3705 = vmatpush3.bf16.xpose.msra.mxu1 %v553_v37 }
 0x473   :  { %3716 = vmatprep.subr.bf16.mxu1 %v4194_v2 }
 0x474   :  { %v663_v39 = vpop.permute.xlu1 %662  ;;  %v774_v44 = vpop.permute.xlu0 %773 }
 0x478   :  { %v776_v41 = vpop.permute.xlu1 %775  ;;  %v885_v47 = vpop.permute.xlu0 %884 }
 0x479   :  { %3707 = vmatmul.mubr.msk.bf16.vlgmr.msra.gmra.mrb[8].mxu1 %vm548_vm5, %v4476_v30  ;;  %v781_v42 = vsel %vm548_vm5, %v776_v41, 0 }
 0x47a   :  { %3717 = vmatpush3.bf16.xpose.msra.mxu1 %v670_v40  ;;  %3718 = vmatprep.mubr.msk.bf16.mxu1 %vm4195_vm0, %v4194_v2 }
 0x47b   :  { %3728 = vmatprep.subr.bf16.mxu1 %v4194_v2 }
 0x47c   :  { %v887_v43 = vpop.permute.xlu1 %886  ;;  %v1131_v49 = vpop.permute.xlu0 %1130 }
 0x47d   :  { %v892_v45 = vsel %vm548_vm5, %v887_v43, 0  ;;  %v1136_v51 = vsel %vm548_vm5, %v1131_v49, 0 }
 0x480   :  { %v1020_v46 = vpop.permute.xlu1 %1019  ;;  %v1242_v52 = vpop.permute.xlu0 %1241 }
 0x481   :  { %3719 = vmatmul.mubr.msk.bf16.vlgmr.msra.gmra.mrb[12].mxu1 %vm548_vm5, %v663_v39  ;;  %v1025_v48 = vsel %vm548_vm5, %v1020_v46, 0  ;;  %v1247_v55 = vsel %vm548_vm5, %v1242_v52, 0 }
 0x482   :  { %3729 = vmatpush3.bf16.xpose.msra.mxu1 %v781_v42  ;;  %3730 = vmatprep.mubr.msk.bf16.mxu1 %vm4195_vm0, %v4194_v2 }
 0x483   :  { %3740 = vmatprep.subr.bf16.mxu1 %v4194_v2 }
 0x484   :  { %v1129_v54 = vpop.permute.xlu1 %1128  ;;  %v1353_v56 = vpop.permute.xlu0 %1352 }
 0x485   :  { %v1358_v58 = vsel %vm548_vm5, %v1353_v56, 0 }
 0x488   :  { %v1240_v57 = vpop.permute.xlu1 %1239 }
 0x489   :  { %3731 = vmatmul.mubr.msk.bf16.vlgmr.msra.gmra.mrb[16].mxu1 %vm548_vm5, %v774_v44 }
 0x48a   :  { %3741 = vmatpush3.bf16.xpose.msra.mxu1 %v892_v45  ;;  %3742 = vmatprep.mubr.msk.bf16.mxu1 %vm4195_vm0, %v4194_v2 }
 0x48b   :  { %3752 = vmatprep.subr.bf16.mxu1 %v4194_v2 }
 0x48c   :  { %v1351_v59 = vpop.permute.xlu1 %1350 }
 0x491   :  { %3743 = vmatmul.mubr.msk.bf16.vlgmr.msra.gmra.mrb[20].mxu1 %vm548_vm5, %v885_v47 }
 0x492   :  { %3753 = vmatpush3.bf16.xpose.msra.mxu1 %v1025_v48  ;;  %3754 = vmatprep.mubr.msk.bf16.mxu1 %vm4195_vm0, %v4194_v2 }
 0x493   :  { %3764 = vmatprep.subr.bf16.mxu1 %v4194_v2 }
 0x499   :  { %3755 = vmatmul.mubr.msk.bf16.vlgmr.msra.gmra.mrb[24].mxu1 %vm548_vm5, %v4492_v35 }
 0x49a   :  { %3765 = vmatpush3.bf16.xpose.msra.mxu1 %v1136_v51  ;;  %3766 = vmatprep.mubr.msk.bf16.mxu1 %vm4195_vm0, %v4194_v2 }
 0x49b   :  { %3776 = vmatprep.subr.bf16.mxu1 %v4194_v2 }
 0x4a1   :  { %3767 = vmatmul.mubr.msk.bf16.vlgmr.msra.gmra.mrb[28].mxu1 %vm548_vm5, %v1129_v54 }
 0x4a2   :  { %3777 = vmatpush3.bf16.xpose.msra.mxu1 %v1247_v55  ;;  %3778 = vmatprep.mubr.msk.bf16.mxu1 %vm4195_vm0, %v4194_v2 }
 0x4a3   :  { %3788 = vmatprep.subr.bf16.mxu1 %v4194_v2 }
 0x4a9   :  { %3779 = vmatmul.mubr.msk.bf16.vlgmr.msra.gmra.mrb[32].mxu1 %vm548_vm5, %v1240_v57 }
 0x4aa   :  { %3789 = vmatpush3.bf16.xpose.msra.mxu1 %v1358_v58  ;;  %3790 = vmatprep.mubr.msk.bf16.mxu1 %vm4195_vm0, %v4194_v2 }
 0x4ab   :  { %3800 = vmatprep.subr.bf16.mxu1 %v4194_v2 }
 0x4b1   :  { %3791 = vmatmul.mubr.msk.bf16.vlgmr.msra.gmra.mrb[36].mxu1 %vm548_vm5, %v1351_v59 }
 0x4b2   :  { %3804 = vmatprep.mubr.msk.bf16.mxu1 %vm4195_vm0, %v4194_v2 }
 0x54c   :  { %v589_v60 = vpop.f32.mrb[8].mxu1 }
 0x54d   :  { %v4552_v61 = vmul.f32 0.35355338, %v589_v60  ;;  %v3708_v62 = vpop.f32.mrb[9].mxu1 }
 0x54e   :  { %v592_v63 = vpop.f32.mrb[10].mxu1 }
 0x54f   :  { %v3709_v0 = vpop.f32.mrb[11].mxu1  ;;  %v597_v1 = vsel %vm596_vm6, %v4552_v61, -inf }
 0x550   :  { %598 = vmax.xlane.f32.xlu0 %v597_v1 }
 0x554   :  { %v706_v3 = vpop.f32.mrb[12].mxu1 }
 0x555   :  { %v712_v4 = vmul.f32 0.35355338, %v706_v3  ;;  %v3720_v5 = vpop.f32.mrb[13].mxu1 }
 0x556   :  { %v709_v6 = vpop.f32.mrb[14].mxu1 }
 0x557   :  { %v3721_v7 = vpop.f32.mrb[15].mxu1  ;;  %v713_v8 = vsel %vm596_vm6, %v712_v4, -inf }
 0x558   :  { %714 = vmax.xlane.f32.xlu1 %v713_v8 }
 0x55c   :  { %v817_v9 = vpop.f32.mrb[16].mxu1 }
 0x55d   :  { %v823_v10 = vmul.f32 0.35355338, %v817_v9  ;;  %v3732_v11 = vpop.f32.mrb[17].mxu1 }
 0x55e   :  { %v820_v12 = vpop.f32.mrb[18].mxu1 }
 0x55f   :  { %v3733_v13 = vpop.f32.mrb[19].mxu1  ;;  %v824_v14 = vsel %vm596_vm6, %v823_v10, -inf }
 0x560   :  { %825 = vmax.xlane.f32.xlu0 %v824_v14  ;;  %v4207_v13 = vmov 65535  }
 0x561   :  { %v617_v14 = vsel %vm615_vm7, 4294967295, %v4207_v13 }
 0x564   :  { %v928_v15 = vpop.f32.mrb[20].mxu1 }
 0x565   :  { %v934_v16 = vmul.f32 0.35355338, %v928_v15  ;;  %v3744_v17 = vpop.f32.mrb[21].mxu1  ;;  %v4599_v15 = vsel %vm616_vm8, %v617_v14, 0 }
 0x566   :  { %v931_v18 = vpop.f32.mrb[22].mxu1 }
 0x567   :  { %v3745_v19 = vpop.f32.mrb[23].mxu1  ;;  %v935_v20 = vsel %vm596_vm6, %v934_v16, -inf }
 0x568   :  { %936 = vmax.xlane.f32.xlu0 %v935_v20 }
 0x56c   :  { %v1061_v21 = vpop.f32.mrb[24].mxu1 }
 0x56d   :  { %v1067_v22 = vmul.f32 0.35355338, %v1061_v21  ;;  %v3756_v23 = vpop.f32.mrb[25].mxu1 }
 0x56e   :  { %v1064_v24 = vpop.f32.mrb[26].mxu1 }
 0x56f   :  { %v3757_v25 = vpop.f32.mrb[27].mxu1  ;;  %v1068_v26 = vsel %vm596_vm6, %v1067_v22, -inf }
 0x570   :  { %1069 = vmax.xlane.f32.xlu0 %v1068_v26 }
 0x574   :  { %v1172_v27 = vpop.f32.mrb[28].mxu1 }
 0x575   :  { %v4560_v28 = vmul.f32 0.35355338, %v1172_v27  ;;  %v3768_v29 = vpop.f32.mrb[29].mxu1 }
 0x576   :  { %v1175_v31 = vpop.f32.mrb[30].mxu1 }
 0x577   :  { %v3769_v32 = vpop.f32.mrb[31].mxu1  ;;  %v1179_v33 = vsel %vm596_vm6, %v4560_v28, -inf }
 0x578   :  { %1180 = vmax.xlane.f32.xlu1 %v1179_v33 }
 0x57c   :  { %v1283_v34 = vpop.f32.mrb[32].mxu1 }
 0x57d   :  { %v4564_v36 = vmul.f32 0.35355338, %v1283_v34  ;;  %v3780_v37 = vpop.f32.mrb[33].mxu1 }
 0x57e   :  { %v1286_v38 = vpop.f32.mrb[34].mxu1 }
 0x57f   :  { %v3781_v39 = vpop.f32.mrb[35].mxu1  ;;  %v1290_v40 = vsel %vm596_vm6, %v4564_v36, -inf }
 0x580   :  { %1291 = vmax.xlane.f32.xlu0 %v1290_v40 }
 0x584   :  { %v1394_v41 = vpop.f32.mrb[36].mxu1 }
 0x585   :  { %v4568_v42 = vmul.f32 0.35355338, %v1394_v41  ;;  %v3792_v43 = vpop.f32.mrb[37].mxu1 }
 0x586   :  { %v1397_v44 = vpop.f32.mrb[38].mxu1 }
 0x587   :  { %v3793_v45 = vpop.f32.mrb[39].mxu1  ;;  %v1401_v46 = vsel %vm596_vm6, %v4568_v42, -inf }
 0x588   :  { %1402 = vmax.xlane.f32.xlu1 %v1401_v46 }
 0x596   :  { %725 = vrot.lane.b32.xlu0 %v4476_v30, %s5149_s4 }
 0x599   :  { %609 = vrot.lane.b32.xlu1 %v4476_v30, %s5145_s30 }
 0x59a   :  { %836 = vrot.lane.b32.xlu0 %v4476_v30, %s5147_s5 }
 0x5dd   :  { %v599_v47 = vpop.xlane.xlu0 %598 }
 0x5de   :  { %v600_v48 = vsub.f32 %v4552_v61, %v599_v47 }
 0x5e0   :  { %v601_v49 = vmul.f32 1.442695, %v600_v48 }
 0x5e2   :  { %4080 = vpow2.f32 %v601_v49 }
 0x5e5   :  { %v715_v51 = vpop.xlane.xlu1 %714 }
 0x5e6   :  { %v716_v52 = vsub.f32 %v712_v4, %v715_v51 }
 0x5e8   :  { %v717_v54 = vmul.f32 1.442695, %v716_v52 }
 0x5ea   :  { %4082 = vpow2.f32 %v717_v54 }
 0x5ec   :  { %v4579_v55 = vpop.eup %4080 }
 0x5ed   :  { %v826_v56 = vpop.xlane.xlu0 %825  ;;  %v603_v57 = vsel %vm596_vm6, %v4579_v55, 0.0 }
 0x5ee   :  { %v827_v58 = vsub.f32 %v823_v10, %v826_v56  ;;  %604 = vadd.xlane.f32.xlu0 %v603_v57 }
 0x5f0   :  { %v828_v59 = vmul.f32 1.442695, %v827_v58 }
 0x5f2   :  { %4084 = vpow2.f32 %v828_v59 }
 0x5f4   :  { %v4583_v60 = vpop.eup %4082 }
 0x5f5   :  { %v937_v62 = vpop.xlane.xlu0 %936  ;;  %v719_v61 = vsel %vm596_vm6, %v4583_v60, 0.0 }
 0x5f6   :  { %v938_v63 = vsub.f32 %v934_v16, %v937_v62  ;;  %720 = vadd.xlane.f32.xlu1 %v719_v61 }
 0x5f8   :  { %v939_v0 = vmul.f32 1.442695, %v938_v63 }
 0x5fa   :  { %4086 = vpow2.f32 %v939_v0 }
 0x5fc   :  { %v4587_v1 = vpop.eup %4084 }
 0x5fd   :  { %v1070_v3 = vpop.xlane.xlu0 %1069  ;;  %v830_v4 = vsel %vm596_vm6, %v4587_v1, 0.0 }
 0x5fe   :  { %v1071_v5 = vsub.f32 %v1067_v22, %v1070_v3  ;;  %831 = vadd.xlane.f32.xlu0 %v830_v4 }
 0x600   :  { %v1072_v6 = vmul.f32 1.442695, %v1071_v5 }
 0x602   :  { %4088 = vpow2.f32 %v1072_v6 }
 0x604   :  { %v4591_v7 = vpop.eup %4086 }
 0x605   :  { %v941_v8 = vsel %vm596_vm6, %v4591_v7, 0.0  ;;  %v1181_v11 = vpop.xlane.xlu1 %1180 }
 0x606   :  { %942 = vadd.xlane.f32.xlu0 %v941_v8  ;;  %v1182_v18 = vsub.f32 %v4560_v28, %v1181_v11 }
 0x608   :  { %v1183_v20 = vmul.f32 1.442695, %v1182_v18 }
 0x60a   :  { %4090 = vpow2.f32 %v1183_v20 }
 0x60c   :  { %v4595_v9 = vpop.eup %4088 }
 0x60d   :  { %v1074_v10 = vsel %vm596_vm6, %v4595_v9, 0.0  ;;  %v1292_v19 = vpop.xlane.xlu0 %1291 }
 0x60e   :  { %1075 = vadd.xlane.f32.xlu1 %v1074_v10  ;;  %v1293_v21 = vsub.f32 %v4564_v36, %v1292_v19 }
 0x610   :  { %v1294_v22 = vmul.f32 1.442695, %v1293_v21 }
 0x611   :  { %v726_v31 = vpop.permute.xlu0 %725 }
 0x612   :  { %4092 = vpow2.f32 %v1294_v22  ;;  %v731_v39 = vand.u32 %v726_v31, %v4599_v15 }
 0x614   :  { %v4610_v25 = vpop.eup %4090 }
 0x615   :  { %v1403_v12 = vpop.xlane.xlu1 %1402  ;;  %v1185_v26 = vsel %vm596_vm6, %v4610_v25, 0.0  ;;  %v837_v32 = vpop.permute.xlu0 %836 }
 0x616   :  { %v1404_v23 = vsub.f32 %v4568_v42, %v1403_v12  ;;  %v842_v43 = vand.u32 %v837_v32, %v4599_v15 }
 0x618   :  { %v1405_v24 = vmul.f32 1.442695, %v1404_v23 }
 0x619   :  { %v610_v16 = vpop.permute.xlu1 %609 }
 0x61a   :  { %v620_v17 = vand.u32 %v4599_v15, %v610_v16  ;;  %4094 = vpow2.f32 %v1405_v24 }
 0x61c   :  { %1080 = vrot.lane.b32.xlu0 %v4492_v35, %s5145_s30  ;;  %3711 = vmatpush3.bf16.msra.mxu0 %v620_v17  ;;  %v4614_v27 = vpop.eup %4092  ;;  %s5157_s30 = smov 24  }
 0x61d   :  { %3722 = vmatprep.subr.bf16.mxu0 %v4194_v2 }
 0x61f   :  { %947 = vrot.lane.b32.xlu1 %v4476_v30, %s5143_s1  ;;  %v1296_v30 = vsel %vm596_vm6, %v4614_v27, 0.0 }
 0x624   :  { %v4618_v28 = vpop.eup %4094 }
 0x625   :  { %v1407_v29 = vsel %vm596_vm6, %v4618_v28, 0.0 }
 0x63b   :  { %1186 = vadd.xlane.f32.xlu0 %v1185_v26 }
 0x63f   :  { %1297 = vadd.xlane.f32.xlu0 %v1296_v30 }
 0x643   :  { %1408 = vadd.xlane.f32.xlu1 %v1407_v29 }
 0x655   :  { %1191 = vrot.lane.b32.xlu0 %v4492_v35, %s5149_s4 }
 0x659   :  { %1302 = vrot.lane.b32.xlu0 %v4492_v35, %s5147_s5 }
 0x65d   :  { %1413 = vrot.lane.b32.xlu0 %v4492_v35, %s5143_s1  ;;  %s5156_s1 = smov 8  }
 0x67b   :  { %v605_v33 = vpop.xlane.xlu0 %604 }
 0x67c   :  { %4096 = vrcp.f32 %v605_v33 }
 0x683   :  { %v721_v34 = vpop.xlane.xlu1 %720 }
 0x684   :  { %4098 = vrcp.f32 %v721_v34 }
 0x686   :  { %v4097_v36 = vpop.eup %4096 }
 0x687   :  { %v607_v37 = vmul.f32 %v4097_v36, %v4579_v55 }
 0x689   :  { %v608_v38 = vpack.c.bf16 %v607_v37, %v607_v37 }
 0x68b   :  { %v832_v40 = vpop.xlane.xlu0 %831  ;;  %3713 = vmatmul.mubr.msk.bf16.vlgmr.msra.gmra.mrb[8].mxu0 %vm611_vm9, %v608_v38 }
 0x68c   :  { %4100 = vrcp.f32 %v832_v40  ;;  %3723 = vmatpush3.bf16.msra.mxu0 %v731_v39  ;;  %3724 = vmatprep.mubr.msk.bf16.mxu0 %vm4195_vm0, %v4194_v2 }
 0x68d   :  { %3734 = vmatprep.subr.bf16.mxu0 %v4194_v2 }
 0x68e   :  { %v4099_v35 = vpop.eup %4098 }
 0x68f   :  { %v723_v41 = vmul.f32 %v4099_v35, %v4583_v60 }
 0x691   :  { %v724_v42 = vpack.c.bf16 %v723_v41, %v723_v41 }
 0x693   :  { %v943_v44 = vpop.xlane.xlu0 %942  ;;  %3725 = vmatmul.mubr.msk.bf16.vlgmr.msra.gmra.mrb[12].mxu0 %vm611_vm9, %v724_v42  ;;  %v4058_v42 = vld [vmem:[%s5119_s8] sm:$0xff]  }
 0x694   :  { %4102 = vrcp.f32 %v943_v44  ;;  %3735 = vmatpush3.bf16.msra.mxu0 %v842_v43  ;;  %3736 = vmatprep.mubr.msk.bf16.mxu0 %vm4195_vm0, %v4194_v2  ;;  %v4059_v44 = vld [vmem:[%s5119_s8 + $0x8] sm:$0xff]  }
 0x695   :  { %3746 = vmatprep.subr.bf16.mxu0 %v4194_v2  ;;  %3801 = vmatpush3.bf16.msra.mxu1 %v4058_v42 }
 0x696   :  { %v4101_v45 = vpop.eup %4100  ;;  %3802 = vmatprep.subr.bf16.mxu1 %v4194_v2 }
 0x697   :  { %v834_v46 = vmul.f32 %v4101_v45, %v4587_v1  ;;  %v1081_v55 = vpop.permute.xlu0 %1080 }
 0x698   :  { %v1086_v57 = vand.u32 %v1081_v55, %v4599_v15 }
 0x699   :  { %v835_v47 = vpack.c.bf16 %v834_v46, %v834_v46  ;;  %3803 = vmatpush3.bf16.msra.mxu1 %v4059_v44 }
 0x69a   :  { %3816 = vmatprep.subr.bf16.mxu1 %v4194_v2 }
 0x69b   :  { %3737 = vmatmul.mubr.msk.bf16.vlgmr.msra.gmra.mrb[16].mxu0 %vm611_vm9, %v835_v47  ;;  %v1076_v48 = vpop.xlane.xlu1 %1075 }
 0x69c   :  { %4104 = vrcp.f32 %v1076_v48  ;;  %3748 = vmatprep.mubr.msk.bf16.mxu0 %vm4195_vm0, %v4194_v2 }
 0x69e   :  { %v4103_v49 = vpop.eup %4102 }
 0x69f   :  { %v945_v51 = vmul.f32 %v4103_v49, %v4591_v7  ;;  %v948_v52 = vpop.permute.xlu1 %947 }
 0x6a0   :  { %v953_v54 = vand.u32 %v948_v52, %v4599_v15 }
 0x6a1   :  { %v946_v56 = vpack.c.bf16 %v945_v51, %v945_v51 }
 0x6a2   :  { %3747 = vmatpush3.bf16.msra.mxu0 %v953_v54 }
 0x6a3   :  { %3758 = vmatprep.subr.bf16.mxu0 %v4194_v2 }
 0x6a5   :  { %3749 = vmatmul.mubr.msk.bf16.vlgmr.msra.gmra.mrb[20].mxu0 %vm611_vm9, %v946_v56 }
 0x6a6   :  { %v4105_v58 = vpop.eup %4104  ;;  %3759 = vmatpush3.bf16.msra.mxu0 %v1086_v57  ;;  %3760 = vmatprep.mubr.msk.bf16.mxu0 %vm4195_vm0, %v4194_v2 }
 0x6a7   :  { %v1078_v59 = vmul.f32 %v4105_v58, %v4595_v9  ;;  %3770 = vmatprep.subr.bf16.mxu0 %v4194_v2 }
 0x6a9   :  { %v1079_v60 = vpack.c.bf16 %v1078_v59, %v1078_v59 }
 0x6ad   :  { %3761 = vmatmul.mubr.msk.bf16.vlgmr.msra.gmra.mrb[24].mxu0 %vm611_vm9, %v1079_v60 }
 0x6ae   :  { %3772 = vmatprep.mubr.msk.bf16.mxu0 %vm4195_vm0, %v4194_v2 }
 0x6c8   :  { %v1187_v62 = vpop.xlane.xlu0 %1186 }
 0x6c9   :  { %4106 = vrcp.f32 %v1187_v62 }
 0x6cc   :  { %v1298_v61 = vpop.xlane.xlu0 %1297 }
 0x6cd   :  { %4108 = vrcp.f32 %v1298_v61 }
 0x6d0   :  { %v1192_v63 = vpop.permute.xlu0 %1191  ;;  %v1409_v1 = vpop.xlane.xlu1 %1408 }
 0x6d1   :  { %v1197_v0 = vand.u32 %v1192_v63, %v4599_v15  ;;  %4110 = vrcp.f32 %v1409_v1 }
 0x6d3   :  { %v4107_v3 = vpop.eup %4106  ;;  %3771 = vmatpush3.bf16.msra.mxu0 %v1197_v0 }
 0x6d4   :  { %v1189_v4 = vmul.f32 %v4107_v3, %v4610_v25  ;;  %v1303_v5 = vpop.permute.xlu0 %1302  ;;  %3782 = vmatprep.subr.bf16.mxu0 %v4194_v2 }
 0x6d5   :  { %v1308_v6 = vand.u32 %v1303_v5, %v4599_v15 }
 0x6d6   :  { %v1190_v7 = vpack.c.bf16 %v1189_v4, %v1189_v4 }
 0x6d7   :  { %v4109_v8 = vpop.eup %4108 }
 0x6d8   :  { %3773 = vmatmul.mubr.msk.bf16.vlgmr.msra.gmra.mrb[28].mxu0 %vm611_vm9, %v1190_v7  ;;  %v1300_v9 = vmul.f32 %v4109_v8, %v4614_v27  ;;  %v1414_v10 = vpop.permute.xlu0 %1413 }
 0x6d9   :  { %3783 = vmatpush3.bf16.msra.mxu0 %v1308_v6  ;;  %3784 = vmatprep.mubr.msk.bf16.mxu0 %vm4195_vm0, %v4194_v2  ;;  %v1419_v13 = vand.u32 %v1414_v10, %v4599_v15 }
 0x6da   :  { %3794 = vmatprep.subr.bf16.mxu0 %v4194_v2  ;;  %v1301_v11 = vpack.c.bf16 %v1300_v9, %v1300_v9  ;;  %v3445_v9 = vld [vmem:[%s5120_s9] ss:$0 sm:$0xff] }
 0x6db   :  { %v4111_v12 = vpop.eup %4110 }
 0x6dc   :  { %v1411_v14 = vmul.f32 %v4111_v12, %v4618_v28 }
 0x6de   :  { %v1412_v16 = vpack.c.bf16 %v1411_v14, %v1411_v14 }
 0x6e0   :  { %3785 = vmatmul.mubr.msk.bf16.vlgmr.msra.gmra.mrb[32].mxu0 %vm611_vm9, %v1301_v11 }
 0x6e1   :  { %3795 = vmatpush3.bf16.msra.mxu0 %v1419_v13  ;;  %3796 = vmatprep.mubr.msk.bf16.mxu0 %vm4195_vm0, %v4194_v2 }
 0x6e2   :  { %3808 = vmatprep.subr.bf16.mxu0 %v4194_v2 }
 0x6e8   :  { %3797 = vmatmul.mubr.msk.bf16.vlgmr.msra.gmra.mrb[36].mxu0 %vm611_vm9, %v1412_v16 }
 0x6e9   :  { %3812 = vmatprep.mubr.msk.bf16.mxu0 %vm4195_vm0, %v4194_v2 }
 0x75e   :  { %v656_v17 = vpop.f32.mrb[8].mxu0 }
 0x75f   :  { %v3714_v18 = vpop.f32.mrb[9].mxu0 }
 0x760   :  { %v659_v19 = vpop.f32.mrb[10].mxu0 }
 0x761   :  { %v3715_v20 = vpop.f32.mrb[11].mxu0 }
 0x766   :  { %v767_v21 = vpop.f32.mrb[12].mxu0 }
 0x767   :  { %v3726_v22 = vpop.f32.mrb[13].mxu0 }
 0x768   :  { %v770_v23 = vpop.f32.mrb[14].mxu0 }
 0x769   :  { %v3727_v24 = vpop.f32.mrb[15].mxu0 }
 0x76e   :  { %v878_v25 = vpop.f32.mrb[16].mxu0 }
 0x76f   :  { %v3738_v26 = vpop.f32.mrb[17].mxu0 }
 0x770   :  { %v881_v27 = vpop.f32.mrb[18].mxu0 }
 0x771   :  { %v3739_v30 = vpop.f32.mrb[19].mxu0 }
 0x778   :  { %v989_v28 = vpop.f32.mrb[20].mxu0 }
 0x779   :  { %v3750_v29 = vpop.f32.mrb[21].mxu0 }
 0x77a   :  { %v992_v31 = vpop.f32.mrb[22].mxu0  ;;  %v4061_v29 = vld [vmem:[%s5123_s12 + $0x8] sm:$0xff]  }
 0x77b   :  { %v3751_v32 = vpop.f32.mrb[23].mxu0 }
 0x780   :  { %v1122_v33 = vpop.f32.mrb[24].mxu0 }
 0x781   :  { %v3762_v34 = vpop.f32.mrb[25].mxu0 }
 0x782   :  { %v1125_v36 = vpop.f32.mrb[26].mxu0 }
 0x783   :  { %v3763_v37 = vpop.f32.mrb[27].mxu0 }
 0x7ab   :  { %v1233_v38 = vpop.f32.mrb[28].mxu0 }
 0x7ac   :  { %v4007_v39 = vpack.i.bf16 %v767_v21, %v1233_v38  ;;  %v3774_v40 = vpop.f32.mrb[29].mxu0 }
 0x7ad   :  { %v1236_v35 = vpop.f32.mrb[30].mxu0  ;;  %v3449_v40 = vld [vmem:[%s5121_s10] ss:$0 sm:$0xff] }
 0x7ae   :  { %4008 = vrot.lane.b32.xlu0 %v4007_v39, %s5156_s1  ;;  %v3775_v41 = vpop.f32.mrb[31].mxu0  ;;  %s5184_s1 = smov 24  }
 0x7b3   :  { %v1344_v43 = vpop.f32.mrb[32].mxu0 }
 0x7b4   :  { %v4012_v45 = vpack.i.bf16 %v878_v25, %v1344_v43  ;;  %v3786_v46 = vpop.f32.mrb[33].mxu0  ;;  %v3450_v43 = vld [vmem:[%s5122_s11] ss:$0 sm:$0xff] }
 0x7b5   :  { %v1347_v47 = vpop.f32.mrb[34].mxu0 }
 0x7b6   :  { %4013 = vrot.lane.b32.xlu1 %v4012_v45, %s5155_s25  ;;  %v3787_v48 = vpop.f32.mrb[35].mxu0  ;;  %s5186_s25 = smov 16  }
 0x7b7   :  { %v4062_v48 = vld [vmem:[%s5125_s14] sm:$0xff]  }
 0x7bb   :  { %v1455_v49 = vpop.f32.mrb[36].mxu0 }
 0x7bc   :  { %1470 = vrot.lane.b32.xlu0 %v1455_v49, %s5157_s30  ;;  %v3798_v51 = vpop.f32.mrb[37].mxu0  ;;  %v4063_v49 = vld [vmem:[%s5125_s14 + $0x8] sm:$0xff]  }
 0x7bd   :  { %v1458_v52 = vpop.f32.mrb[38].mxu0  ;;  %v4064_v51 = vld [vmem:[%s5125_s14 + $0x10] sm:$0xff]  }
 0x7be   :  { %v3799_v54 = vpop.f32.mrb[39].mxu0  ;;  %v4065_v52 = vld [vmem:[%s5125_s14 + $0x18] sm:$0xff]  }
 0x7bf   :  { %v3451_v54 = vld [vmem:[%s5124_s13] ss:$0 sm:$0xff] }
 0x7c0   :  { %1004 = vrot.lane.b32.xlu0 %v989_v28, %s5157_s30  ;;  %v4060_v28 = vld [vmem:[%s5123_s12] sm:$0xff]  }
 0x7c1   :  { %3809 = vmatpush3.bf16.msra.mxu0 %v4060_v28  ;;  %v4066_v28 = vld [vmem:[%s5173_s7 + $0x10] sm:$0xff]  }
 0x7c2   :  { %3810 = vmatprep.subr.bf16.mxu0 %v4194_v2 }
 0x7c5   :  { %3811 = vmatpush3.bf16.msra.mxu0 %v4061_v29  ;;  %v4067_v29 = vld [vmem:[%s5173_s7 + $0x18] sm:$0xff]  }
 0x7c6   :  { %3828 = vmatprep.subr.bf16.mxu0 %v4194_v2 }
 0x820   :  { %v4009_v55 = vpop.permute.xlu0 %4008 }
 0x821   :  { %v4010_v57 = vunpack.i.l.bf16 %v4009_v55  ;;  %v4011_v59 = vunpack.i.h.bf16 %v4009_v55 }
 0x823   :  { %v1473_v60 = vsel %vm548_vm5, %v1122_v33, %v4010_v57  ;;  %v1007_v1 = vsel %vm548_vm5, %v656_v17, %v4011_v59 }
 0x828   :  { %v4014_v56 = vpop.permute.xlu1 %4013 }
 0x829   :  { %v4015_v58 = vunpack.i.l.bf16 %v4014_v56  ;;  %v4016_v62 = vunpack.i.h.bf16 %v4014_v56 }
 0x82b   :  { %v1474_v63 = vsel %vm1008_vm10, %v1473_v60, %v4015_v58  ;;  %v1009_v5 = vsel %vm1008_vm10, %v1007_v1, %v4016_v62 }
 0x82e   :  { %v1471_v61 = vpop.permute.xlu0 %1470 }
 0x82f   :  { %v1475_v0 = vsel %vm1010_vm11, %v1474_v63, %v1471_v61 }
 0x830   :  { %v1477_v3 = vrot.slane %v1475_v0, 3 }
 0x832   :  { %v1005_v4 = vpop.permute.xlu0 %1004 }
 0x833   :  { %v1011_v6 = vsel %vm1010_vm11, %v1009_v5, %v1005_v4 }
 0x834   :  { %v1480_v7 = vsel %vm1479_vm12, %v1011_v6, %v1477_v3 }
 0x835   :  { %v1481_v8 = vpack.c.bf16 %v1477_v3, %v1480_v7 }
 0x837   :  { %3805 = vmatmul.mubr.msk.bf16.vlgmr.msra.gmra.mrb[40].mxu1 %vm431_vm3, %v1481_v8 }
 0x838   :  { %3824 = vmatprep.mubr.msk.bf16.mxu1 %vm4195_vm0, %v4194_v2  ;;  %3817 = vmatpush3.bf16.msra.mxu1 %v4062_v48  ;;  %v3470_v48 = vld [vmem:[%s5176_s26 + $0x1] ss:$0 sm:$0xff]  ;;  %s5179_s26 = smov 72  }
 0x839   :  { %3818 = vmatprep.subr.bf16.mxu1 %v4194_v2 }
 0x83c   :  { %3819 = vmatpush3.bf16.msra.mxu1 %v4063_v49 }
 0x83d   :  { %3820 = vmatprep.subr.bf16.mxu1 %v4194_v2 }
 0x840   :  { %3821 = vmatpush3.bf16.msra.mxu1 %v4064_v51 }
 0x841   :  { %3822 = vmatprep.subr.bf16.mxu1 %v4194_v2 }
 0x844   :  { %3823 = vmatpush3.bf16.msra.mxu1 %v4065_v52 }
 0x845   :  { %3842 = vmatprep.subr.bf16.mxu1 %v4194_v2 }
 0x90a   :  { %v1542_v10 = vpop.f32.mrb[40].mxu1 }
 0x90b   :  { %v1543_v11 = vadd.f32 %v3445_v9, %v1542_v10  ;;  %v3806_v12 = vpop.f32.mrb[41].mxu1 }
 0x90c   :  { %v1545_v13 = vpop.f32.mrb[42].mxu1 }
 0x90d   :  { %v4700_v14 = vadd.f32 %v1543_v11, %v4444_v50  ;;  %v1546_v16 = vadd.f32 %v3445_v9, %v1545_v13  ;;  %v3807_v17 = vpop.f32.mrb[43].mxu1  ;;  %v3455_v9 = vld [vmem:[%s5126_s15] ss:$0 sm:$0xff] }
 0x90f   :  { %v4703_v18 = vadd.f32 %v1546_v16, %v4446_v53  ;;  %v1553_v19 = vsel %vm431_vm3, %v4700_v14, 0.0 }
 0x910   :  { %1554 = vadd.xlane.f32.xlu0 %v1553_v19 }
 0x911   :  { %v1556_v20 = vsel %vm435_vm4, %v4703_v18, 0.0 }
 0x912   :  { %1557 = vadd.xlane.f32.xlu1 %v1556_v20 }
 0x99d   :  { %v1555_v21 = vpop.xlane.xlu0 %1554 }
 0x99e   :  { %v1559_v22 = vmul.f32 0.03125, %v1555_v21 }
 0x99f   :  { %v1558_v23 = vpop.xlane.xlu1 %1557 }
 0x9a0   :  { %v1561_v24 = vsub.f32 %v4700_v14, %v1559_v22  ;;  %v1560_v50 = vmul.f32 0.03125, %v1558_v23 }
 0x9a2   :  { %v1562_v25 = vsub.f32 %v4703_v18, %v1560_v50  ;;  %v1563_v26 = vmul.f32 %v1561_v24, %v1561_v24 }
 0x9a4   :  { %v1565_v53 = vsel %vm431_vm3, %v1563_v26, 0.0  ;;  %v1564_v27 = vmul.f32 %v1562_v25, %v1562_v25 }
 0x9a5   :  { %1566 = vadd.xlane.f32.xlu0 %v1565_v53 }
 0x9a6   :  { %v1568_v30 = vsel %vm435_vm4, %v1564_v27, 0.0 }
 0x9a9   :  { %1569 = vadd.xlane.f32.xlu0 %v1568_v30 }
 0xa32   :  { %v1567_v31 = vpop.xlane.xlu0 %1566 }
 0xa33   :  { %v1571_v32 = vmul.f32 0.03125, %v1567_v31 }
 0xa35   :  { %v1573_v33 = vadd.f32 1e-06, %v1571_v32 }
 0xa36   :  { %v1570_v34 = vpop.xlane.xlu0 %1569 }
 0xa37   :  { %4112 = vrsqrt.f32 %v1573_v33  ;;  %v1572_v36 = vmul.f32 0.03125, %v1570_v34 }
 0xa39   :  { %v1574_v37 = vadd.f32 1e-06, %v1572_v36 }
 0xa3b   :  { %4114 = vrsqrt.f32 %v1574_v37 }
 0xa41   :  { %v4113_v38 = vpop.eup %4112 }
 0xa42   :  { %v1577_v39 = vmul.f32 %v4113_v38, %v1561_v24 }
 0xa44   :  { %v1585_v41 = vmul.f32 %v3449_v40, %v1577_v39 }
 0xa45   :  { %v4115_v35 = vpop.eup %4114 }
 0xa46   :  { %v1578_v42 = vmul.f32 %v4115_v35, %v1562_v25  ;;  %v1593_v45 = vadd.f32 %v3450_v43, %v1585_v41 }
 0xa48   :  { %v1586_v44 = vmul.f32 %v3449_v40, %v1578_v42  ;;  %v3463_v40 = vld [vmem:[%s5174_s0 + $0x1] ss:$0 sm:$0xff]  ;;  %s5177_s0 = smov 104  }
 0xa4a   :  { %v1594_v46 = vadd.f32 %v3450_v43, %v1586_v44  ;;  %v3464_v43 = vld [vmem:[%s5175_s6 + $0x1] ss:$0 sm:$0xff]  ;;  %s5178_s6 = smov 80  }
 0xa4c   :  { %v1595_v47 = vpack.c.bf16 %v1594_v46, %v1593_v45 }
 0xa4e   :  { %3813 = vmatmul.mubr.msk.bf16.vlgmr.msra.gmra.mrb[40].mxu0 %vm431_vm3, %v1595_v47 }
 0xa4f   :  { %3832 = vmatprep.mubr.msk.bf16.mxu0 %vm4195_vm0, %v4194_v2  ;;  %3829 = vmatpush3.bf16.msra.mxu0 %v4066_v28 }
 0xa50   :  { %3830 = vmatprep.subr.bf16.mxu0 %v4194_v2 }
 0xa53   :  { %3831 = vmatpush3.bf16.msra.mxu0 %v4067_v29 }
 0xa54   :  { %3836 = vmatprep.subr.bf16.mxu0 %v4194_v2 }
 0xb21   :  { %v1656_v55 = vpop.f32.mrb[40].mxu0 }
 0xb22   :  { %v1657_v56 = vadd.f32 %v3451_v54, %v1656_v55  ;;  %v3814_v57 = vpop.f32.mrb[41].mxu0 }
 0xb23   :  { %v1659_v58 = vpop.f32.mrb[42].mxu0 }
 0xb24   :  { %v1665_v59 = vmul.f32 0.70710677, %v1657_v56  ;;  %v1660_v60 = vadd.f32 %v3451_v54, %v1659_v58  ;;  %v3815_v62 = vpop.f32.mrb[43].mxu0  ;;  %v1663_v3 = vmul.f32 0.5, %v1657_v56 }
 0xb26   :  { %4116 = verf.f32 %v1665_v59  ;;  %v1666_v61 = vmul.f32 0.70710677, %v1660_v60  ;;  %v1664_v4 = vmul.f32 0.5, %v1660_v60 }
 0xb28   :  { %4118 = verf.f32 %v1666_v61 }
 0xb30   :  { %v4117_v63 = vpop.eup %4116 }
 0xb31   :  { %v1669_v0 = vadd.f32 1.0, %v4117_v63 }
 0xb32   :  { %v4119_v1 = vpop.eup %4118 }
 0xb33   :  { %v1670_v5 = vadd.f32 1.0, %v4119_v1  ;;  %v1671_v6 = vmul.f32 %v1669_v0, %v1663_v3 }
 0xb35   :  { %v1672_v7 = vmul.f32 %v1670_v5, %v1664_v4 }
 0xb37   :  { %v1673_v8 = vpack.c.bf16 %v1672_v7, %v1671_v6 }
 0xb39   :  { %3825 = vmatmul.mubr.msk.bf16.vlgmr.msra.gmra.mrb[44].mxu1 %vm1713_vm13, %v1673_v8 }
 0xb3a   :  { %3844 = vmatprep.mubr.msk.bf16.mxu1 %vm4195_vm0, %v4194_v2 }
 0xc0c   :  { %v1751_v10 = vpop.f32.mrb[44].mxu1 }
 0xc0d   :  { %v1752_v11 = vadd.f32 %v3455_v9, %v1751_v10  ;;  %v3826_v12 = vpop.f32.mrb[45].mxu1 }
 0xc0e   :  { %v1754_v13 = vpop.f32.mrb[46].mxu1 }
 0xc0f   :  { %v4756_v16 = vadd.f32 %v1752_v11, %v4700_v14  ;;  %v1755_v17 = vadd.f32 %v3455_v9, %v1754_v13  ;;  %v3827_v19 = vpop.f32.mrb[47].mxu1 }
 0xc11   :  { %v4759_v20 = vadd.f32 %v1755_v17, %v4703_v18  ;;  %v1764_v21 = vsel %vm431_vm3, %v4756_v16, 0.0 }
 0xc12   :  { %1765 = vadd.xlane.f32.xlu0 %v1764_v21 }
 0xc13   :  { %v1767_v22 = vsel %vm435_vm4, %v4759_v20, 0.0 }
 0xc16   :  { %1768 = vadd.xlane.f32.xlu0 %v1767_v22 }
 0xc9f   :  { %v1766_v23 = vpop.xlane.xlu0 %1765 }
 0xca0   :  { %v1770_v24 = vmul.f32 0.03125, %v1766_v23 }
 0xca2   :  { %v1772_v50 = vsub.f32 %v4756_v16, %v1770_v24 }
 0xca3   :  { %v1769_v25 = vpop.xlane.xlu0 %1768 }
 0xca4   :  { %v1771_v14 = vmul.f32 0.03125, %v1769_v25  ;;  %v1774_v26 = vmul.f32 %v1772_v50, %v1772_v50 }
 0xca6   :  { %v1773_v53 = vsub.f32 %v4759_v20, %v1771_v14  ;;  %v1776_v18 = vsel %vm431_vm3, %v1774_v26, 0.0 }
 0xca7   :  { %1777 = vadd.xlane.f32.xlu1 %v1776_v18 }
 0xca8   :  { %v1775_v27 = vmul.f32 %v1773_v53, %v1773_v53 }
 0xcaa   :  { %v1779_v30 = vsel %vm435_vm4, %v1775_v27, 0.0 }
 0xcab   :  { %1780 = vadd.xlane.f32.xlu0 %v1779_v30 }
 0xd34   :  { %v1778_v31 = vpop.xlane.xlu1 %1777 }
 0xd35   :  { %v1782_v32 = vmul.f32 0.03125, %v1778_v31 }
 0xd37   :  { %v1784_v33 = vadd.f32 1e-06, %v1782_v32 }
 0xd38   :  { %v1781_v34 = vpop.xlane.xlu0 %1780 }
 0xd39   :  { %4120 = vrsqrt.f32 %v1784_v33  ;;  %v1783_v36 = vmul.f32 0.03125, %v1781_v34 }
 0xd3b   :  { %v1785_v37 = vadd.f32 1e-06, %v1783_v36 }
 0xd3d   :  { %4122 = vrsqrt.f32 %v1785_v37 }
 0xd43   :  { %v4121_v38 = vpop.eup %4120 }
 0xd44   :  { %v1788_v39 = vmul.f32 %v4121_v38, %v1772_v50 }
 0xd46   :  { %v1796_v41 = vmul.f32 %v3463_v40, %v1788_v39 }
 0xd47   :  { %v4123_v35 = vpop.eup %4122 }
 0xd48   :  { %v1789_v42 = vmul.f32 %v4123_v35, %v1773_v53  ;;  %v1804_v45 = vadd.f32 %v3464_v43, %v1796_v41 }
 0xd4a   :  { %v1797_v44 = vmul.f32 %v3463_v40, %v1789_v42 }
 0xd4c   :  { %v1805_v46 = vadd.f32 %v3464_v43, %v1797_v44 }
 0xd4e   :  { %v1806_v47 = vpack.c.bf16 %v1805_v46, %v1804_v45 }
 0xd50   :  { %3833 = vmatmul.mubr.msk.bf16.vlgmr.msra.gmra.mrb[44].mxu0 %vm431_vm3, %v1806_v47 }
 0xd51   :  { %3838 = vmatprep.mubr.msk.bf16.mxu0 %vm4195_vm0, %v4194_v2 }
 0xe23   :  { %v1869_v49 = vpop.f32.mrb[44].mxu0 }
 0xe24   :  { %v3834_v51 = vpop.f32.mrb[45].mxu0  ;;  %v1870_v54 = vadd.f32 %v3470_v48, %v1869_v49 }
 0xe25   :  { %v1872_v52 = vpop.f32.mrb[46].mxu0 }
 0xe26   :  { %v1873_v55 = vadd.f32 %v3470_v48, %v1872_v52  ;;  %v3835_v56 = vpop.f32.mrb[47].mxu0 }
 0xe28   :  { %v4789_v57 = vpack.c.bf16 %v1873_v55, %v1870_v54 }
 0xe2a   :  { %1989 = vrot.lane.b32.xlu0 %v4789_v57, %s4197_s2  ;;  %1878 = vrot.lane.b32.xlu1 %v4789_v57, %s4198_s27  ;;  %v2335_v58 = vshrl.u32 %v4789_v57, 16  ;;  %v2338_v59 = vshll.u32 %v4789_v57, 16 }
 0xe2c   :  { %v2337_v60 = vrot.slane %v2335_v58, 2  ;;  %v2340_v62 = vrot.slane %v2338_v59, 3 }
 0xe2e   :  { %2098 = vrot.lane.b32.xlu0 %v4789_v57, %s4200_s28  ;;  %1987 = vrot.lane.b32.xlu1 %v4789_v57, %s4199_s24  ;;  %v4805_v61 = vor.u32 %v2340_v62, %v2337_v60 }
 0xe32   :  { %2209 = vrot.lane.b32.xlu0 %v4789_v57, %s5177_s0  ;;  %2100 = vrot.lane.b32.xlu1 %v4789_v57, %s5178_s6 }
 0xe36   :  { %2211 = vrot.lane.b32.xlu1 %v4789_v57, %s5179_s26  ;;  %2453 = vrot.lane.b32.xlu0 %v4805_v61, %s4197_s2  ;;  %s5180_s2 = smov 56  }
 0xe3a   :  { %2564 = vrot.lane.b32.xlu0 %v4805_v61, %s5178_s6  ;;  %2342 = vrot.lane.b32.xlu1 %v4805_v61, %s4198_s27  ;;  %s5181_s27 = smov 48  }
 0xe3e   :  { %2675 = vrot.lane.b32.xlu0 %v4805_v61, %s5179_s26  ;;  %2451 = vrot.lane.b32.xlu1 %v4805_v61, %s4199_s24  ;;  %s5182_s24 = smov 64  }
 0xe42   :  { %2562 = vrot.lane.b32.xlu1 %v4805_v61, %s4200_s28  ;;  %s5183_s28 = smov 40  }
 0xe46   :  { %2673 = vrot.lane.b32.xlu1 %v4805_v61, %s5177_s0 }
 0xe9c   :  { %v1879_v63 = vpop.permute.xlu1 %1878  ;;  %v1990_v1 = vpop.permute.xlu0 %1989 }
 0xe9d   :  { %v1884_v0 = vsel %vm548_vm5, %v1879_v63, 0  ;;  %v1995_v4 = vsel %vm548_vm5, %v1990_v1, 0 }
 0xe9e   :  { %3837 = vmatpush3.bf16.xpose.msra.mxu0 %v1884_v0 }
 0xe9f   :  { %3848 = vmatprep.subr.bf16.mxu0 %v4194_v2 }
 0xea0   :  { %v1988_v3 = vpop.permute.xlu1 %1987  ;;  %v2099_v8 = vpop.permute.xlu0 %2098 }
 0xea4   :  { %v2101_v5 = vpop.permute.xlu1 %2100  ;;  %v2210_v11 = vpop.permute.xlu0 %2209 }
 0xea5   :  { %3839 = vmatmul.mubr.msk.bf16.vlgmr.msra.gmra.mrb[48].mxu0 %vm548_vm5, %v4789_v57  ;;  %v2106_v6 = vsel %vm548_vm5, %v2101_v5, 0 }
 0xea6   :  { %3849 = vmatpush3.bf16.xpose.msra.mxu0 %v1995_v4  ;;  %3850 = vmatprep.mubr.msk.bf16.mxu0 %vm4195_vm0, %v4194_v2 }
 0xea7   :  { %3860 = vmatprep.subr.bf16.mxu0 %v4194_v2 }
 0xea8   :  { %v2212_v7 = vpop.permute.xlu1 %2211  ;;  %v2454_v13 = vpop.permute.xlu0 %2453 }
 0xea9   :  { %v2217_v9 = vsel %vm548_vm5, %v2212_v7, 0  ;;  %v2459_v17 = vsel %vm548_vm5, %v2454_v13, 0 }
 0xeac   :  { %v2343_v10 = vpop.permute.xlu1 %2342  ;;  %v2565_v19 = vpop.permute.xlu0 %2564 }
 0xead   :  { %3851 = vmatmul.mubr.msk.bf16.vlgmr.msra.gmra.mrb[52].mxu0 %vm548_vm5, %v1988_v3  ;;  %v2348_v12 = vsel %vm548_vm5, %v2343_v10, 0  ;;  %v2570_v22 = vsel %vm548_vm5, %v2565_v19, 0 }
 0xeae   :  { %3861 = vmatpush3.bf16.xpose.msra.mxu0 %v2106_v6  ;;  %3862 = vmatprep.mubr.msk.bf16.mxu0 %vm4195_vm0, %v4194_v2 }
 0xeaf   :  { %3872 = vmatprep.subr.bf16.mxu0 %v4194_v2 }
 0xeb0   :  { %v2452_v21 = vpop.permute.xlu1 %2451  ;;  %v2676_v23 = vpop.permute.xlu0 %2675 }
 0xeb1   :  { %v2681_v50 = vsel %vm548_vm5, %v2676_v23, 0 }
 0xeb4   :  { %v2563_v24 = vpop.permute.xlu1 %2562 }
 0xeb5   :  { %3863 = vmatmul.mubr.msk.bf16.vlgmr.msra.gmra.mrb[56].mxu0 %vm548_vm5, %v2099_v8 }
 0xeb6   :  { %3873 = vmatpush3.bf16.xpose.msra.mxu0 %v2217_v9  ;;  %3874 = vmatprep.mubr.msk.bf16.mxu0 %vm4195_vm0, %v4194_v2 }
 0xeb7   :  { %3884 = vmatprep.subr.bf16.mxu0 %v4194_v2 }
 0xeb8   :  { %v2674_v25 = vpop.permute.xlu1 %2673 }
 0xebd   :  { %3875 = vmatmul.mubr.msk.bf16.vlgmr.msra.gmra.mrb[60].mxu0 %vm548_vm5, %v2210_v11 }
 0xebe   :  { %3885 = vmatpush3.bf16.xpose.msra.mxu0 %v2348_v12  ;;  %3886 = vmatprep.mubr.msk.bf16.mxu0 %vm4195_vm0, %v4194_v2 }
 0xebf   :  { %3896 = vmatprep.subr.bf16.mxu0 %v4194_v2 }
 0xec5   :  { %3887 = vmatmul.mubr.msk.bf16.vlgmr.msra.gmra.mrb[64].mxu0 %vm548_vm5, %v4805_v61 }
 0xec6   :  { %3897 = vmatpush3.bf16.xpose.msra.mxu0 %v2459_v17  ;;  %3898 = vmatprep.mubr.msk.bf16.mxu0 %vm4195_vm0, %v4194_v2 }
 0xec7   :  { %3908 = vmatprep.subr.bf16.mxu0 %v4194_v2 }
 0xecd   :  { %3899 = vmatmul.mubr.msk.bf16.vlgmr.msra.gmra.mrb[68].mxu0 %vm548_vm5, %v2452_v21 }
 0xece   :  { %3909 = vmatpush3.bf16.xpose.msra.mxu0 %v2570_v22  ;;  %3910 = vmatprep.mubr.msk.bf16.mxu0 %vm4195_vm0, %v4194_v2 }
 0xecf   :  { %3920 = vmatprep.subr.bf16.mxu0 %v4194_v2 }
 0xed5   :  { %3911 = vmatmul.mubr.msk.bf16.vlgmr.msra.gmra.mrb[72].mxu0 %vm548_vm5, %v2563_v24 }
 0xed6   :  { %3921 = vmatpush3.bf16.xpose.msra.mxu0 %v2681_v50  ;;  %3922 = vmatprep.mubr.msk.bf16.mxu0 %vm4195_vm0, %v4194_v2 }
 0xed7   :  { %3932 = vmatprep.subr.bf16.mxu0 %v4194_v2 }
 0xedd   :  { %3923 = vmatmul.mubr.msk.bf16.vlgmr.msra.gmra.mrb[76].mxu0 %vm548_vm5, %v2674_v25 }
 0xede   :  { %3936 = vmatprep.mubr.msk.bf16.mxu0 %vm4195_vm0, %v4194_v2 }
 0xf78   :  { %v1920_v14 = vpop.f32.mrb[48].mxu0 }
 0xf79   :  { %v1926_v26 = vmul.f32 0.35355338, %v1920_v14  ;;  %v3840_v53 = vpop.f32.mrb[49].mxu0 }
 0xf7a   :  { %v1923_v18 = vpop.f32.mrb[50].mxu0 }
 0xf7b   :  { %v3841_v27 = vpop.f32.mrb[51].mxu0  ;;  %v1927_v30 = vsel %vm596_vm6, %v1926_v26, -inf }
 0xf7c   :  { %1928 = vmax.xlane.f32.xlu0 %v1927_v30 }
 0xf80   :  { %v2031_v28 = vpop.f32.mrb[52].mxu0 }
 0xf81   :  { %v2037_v29 = vmul.f32 0.35355338, %v2031_v28  ;;  %v3852_v31 = vpop.f32.mrb[53].mxu0 }
 0xf82   :  { %v2034_v32 = vpop.f32.mrb[54].mxu0 }
 0xf83   :  { %v3853_v33 = vpop.f32.mrb[55].mxu0  ;;  %v2038_v34 = vsel %vm596_vm6, %v2037_v29, -inf }
 0xf84   :  { %2039 = vmax.xlane.f32.xlu1 %v2038_v34 }
 0xf88   :  { %v2142_v36 = vpop.f32.mrb[56].mxu0 }
 0xf89   :  { %v2148_v37 = vmul.f32 0.35355338, %v2142_v36  ;;  %v3864_v38 = vpop.f32.mrb[57].mxu0 }
 0xf8a   :  { %v2145_v39 = vpop.f32.mrb[58].mxu0 }
 0xf8b   :  { %v3865_v40 = vpop.f32.mrb[59].mxu0  ;;  %v2149_v35 = vsel %vm596_vm6, %v2148_v37, -inf }
 0xf8c   :  { %2150 = vmax.xlane.f32.xlu0 %v2149_v35 }
 0xf90   :  { %v2253_v41 = vpop.f32.mrb[60].mxu0 }
 0xf91   :  { %v2259_v42 = vmul.f32 0.35355338, %v2253_v41  ;;  %v3876_v43 = vpop.f32.mrb[61].mxu0 }
 0xf92   :  { %v2256_v44 = vpop.f32.mrb[62].mxu0 }
 0xf93   :  { %v3877_v45 = vpop.f32.mrb[63].mxu0  ;;  %v2260_v46 = vsel %vm596_vm6, %v2259_v42, -inf }
 0xf94   :  { %2261 = vmax.xlane.f32.xlu0 %v2260_v46 }
 0xf98   :  { %v2384_v47 = vpop.f32.mrb[64].mxu0 }
 0xf99   :  { %v2390_v48 = vmul.f32 0.35355338, %v2384_v47  ;;  %v3888_v49 = vpop.f32.mrb[65].mxu0 }
 0xf9a   :  { %v2387_v51 = vpop.f32.mrb[66].mxu0 }
 0xf9b   :  { %v3889_v52 = vpop.f32.mrb[67].mxu0  ;;  %v2391_v54 = vsel %vm596_vm6, %v2390_v48, -inf }
 0xf9c   :  { %2392 = vmax.xlane.f32.xlu1 %v2391_v54 }
 0xfa0   :  { %v2495_v55 = vpop.f32.mrb[68].mxu0 }
 0xfa1   :  { %v4870_v56 = vmul.f32 0.35355338, %v2495_v55  ;;  %v3900_v58 = vpop.f32.mrb[69].mxu0 }
 0xfa2   :  { %v2498_v59 = vpop.f32.mrb[70].mxu0 }
 0xfa3   :  { %v3901_v60 = vpop.f32.mrb[71].mxu0  ;;  %v2502_v62 = vsel %vm596_vm6, %v4870_v56, -inf }
 0xfa4   :  { %2503 = vmax.xlane.f32.xlu0 %v2502_v62 }
 0xfa8   :  { %v2606_v63 = vpop.f32.mrb[72].mxu0 }
 0xfa9   :  { %v4874_v0 = vmul.f32 0.35355338, %v2606_v63  ;;  %v3912_v1 = vpop.f32.mrb[73].mxu0 }
 0xfaa   :  { %v2609_v3 = vpop.f32.mrb[74].mxu0 }
 0xfab   :  { %v3913_v4 = vpop.f32.mrb[75].mxu0  ;;  %v2613_v5 = vsel %vm596_vm6, %v4874_v0, -inf }
 0xfac   :  { %2614 = vmax.xlane.f32.xlu1 %v2613_v5 }
 0xfb0   :  { %v2717_v6 = vpop.f32.mrb[76].mxu0 }
 0xfb1   :  { %v2723_v7 = vmul.f32 0.35355338, %v2717_v6  ;;  %v3924_v8 = vpop.f32.mrb[77].mxu0 }
 0xfb2   :  { %v2720_v9 = vpop.f32.mrb[78].mxu0 }
 0xfb3   :  { %v3925_v10 = vpop.f32.mrb[79].mxu0  ;;  %v2724_v11 = vsel %vm596_vm6, %v2723_v7, -inf }
 0xfb4   :  { %2725 = vmax.xlane.f32.xlu0 %v2724_v11 }
 0xfbd   :  { %2050 = vrot.lane.b32.xlu1 %v4789_v57, %s5180_s2 }
 0xfc1   :  { %2161 = vrot.lane.b32.xlu1 %v4789_v57, %s5181_s27 }
 0xfca   :  { %1939 = vrot.lane.b32.xlu0 %v4789_v57, %s5182_s24 }
0x1009   :  { %v1929_v12 = vpop.xlane.xlu0 %1928 }
0x100a   :  { %v1930_v13 = vsub.f32 %v1926_v26, %v1929_v12 }
0x100c   :  { %v1931_v17 = vmul.f32 1.442695, %v1930_v13 }
0x100e   :  { %4124 = vpow2.f32 %v1931_v17 }
0x1011   :  { %v2040_v19 = vpop.xlane.xlu1 %2039 }
0x1012   :  { %v2041_v21 = vsub.f32 %v2037_v29, %v2040_v19 }
0x1014   :  { %v2042_v22 = vmul.f32 1.442695, %v2041_v21 }
0x1016   :  { %4126 = vpow2.f32 %v2042_v22 }
0x1018   :  { %v4885_v23 = vpop.eup %4124 }
0x1019   :  { %v2151_v24 = vpop.xlane.xlu0 %2150  ;;  %v1933_v50 = vsel %vm596_vm6, %v4885_v23, 0.0 }
0x101a   :  { %v2152_v25 = vsub.f32 %v2148_v37, %v2151_v24  ;;  %1934 = vadd.xlane.f32.xlu1 %v1933_v50 }
0x101c   :  { %v2153_v14 = vmul.f32 1.442695, %v2152_v25 }
0x101e   :  { %4128 = vpow2.f32 %v2153_v14 }
0x1020   :  { %v4889_v53 = vpop.eup %4126 }
0x1021   :  { %v2262_v18 = vpop.xlane.xlu0 %2261  ;;  %v2044_v26 = vsel %vm596_vm6, %v4889_v53, 0.0 }
0x1022   :  { %v2263_v27 = vsub.f32 %v2259_v42, %v2262_v18  ;;  %2045 = vadd.xlane.f32.xlu0 %v2044_v26 }
0x1024   :  { %v2264_v30 = vmul.f32 1.442695, %v2263_v27 }
0x1026   :  { %4130 = vpow2.f32 %v2264_v30 }
0x1028   :  { %v4893_v28 = vpop.eup %4128 }
0x1029   :  { %v2393_v29 = vpop.xlane.xlu1 %2392  ;;  %v2155_v31 = vsel %vm596_vm6, %v4893_v28, 0.0 }
0x102a   :  { %v2394_v32 = vsub.f32 %v2390_v48, %v2393_v29  ;;  %2156 = vadd.xlane.f32.xlu1 %v2155_v31 }
0x102c   :  { %v2395_v33 = vmul.f32 1.442695, %v2394_v32 }
0x102e   :  { %4132 = vpow2.f32 %v2395_v33 }
0x1030   :  { %v4897_v34 = vpop.eup %4130 }
0x1031   :  { %v2266_v36 = vsel %vm596_vm6, %v4897_v34, 0.0  ;;  %v2504_v39 = vpop.xlane.xlu0 %2503 }
0x1032   :  { %2267 = vadd.xlane.f32.xlu1 %v2266_v36  ;;  %v2505_v42 = vsub.f32 %v4870_v56, %v2504_v39 }
0x1034   :  { %v2506_v44 = vmul.f32 1.442695, %v2505_v42 }
0x1036   :  { %4134 = vpow2.f32 %v2506_v44 }
0x1038   :  { %v4901_v37 = vpop.eup %4132 }
0x1039   :  { %v2397_v38 = vsel %vm596_vm6, %v4901_v37, 0.0  ;;  %v2615_v43 = vpop.xlane.xlu1 %2614 }
0x103a   :  { %2398 = vadd.xlane.f32.xlu0 %v2397_v38  ;;  %v2616_v45 = vsub.f32 %v4874_v0, %v2615_v43 }
0x103c   :  { %v2617_v46 = vmul.f32 1.442695, %v2616_v45 }
0x103d   :  { %v2051_v56 = vpop.permute.xlu1 %2050 }
0x103e   :  { %4136 = vpow2.f32 %v2617_v46  ;;  %v2056_v1 = vand.u32 %v2051_v56, %v4599_v15 }
0x1040   :  { %v4913_v49 = vpop.eup %4134 }
0x1041   :  { %v2726_v40 = vpop.xlane.xlu0 %2725  ;;  %v2508_v51 = vsel %vm596_vm6, %v4913_v49, 0.0  ;;  %v2162_v58 = vpop.permute.xlu1 %2161 }
0x1042   :  { %v2727_v47 = vsub.f32 %v2723_v7, %v2726_v40  ;;  %v2167_v6 = vand.u32 %v2162_v58, %v4599_v15 }
0x1043   :  { %2403 = vrot.lane.b32.xlu1 %v4805_v61, %s5182_s24 }
0x1044   :  { %v2728_v48 = vmul.f32 1.442695, %v2727_v47 }
0x1045   :  { %v1940_v35 = vpop.permute.xlu0 %1939 }
0x1046   :  { %v1945_v41 = vand.u32 %v1940_v35, %v4599_v15  ;;  %4138 = vpow2.f32 %v2728_v48 }
0x1048   :  { %3843 = vmatpush3.bf16.msra.mxu1 %v1945_v41  ;;  %v4917_v52 = vpop.eup %4136 }
0x1049   :  { %3854 = vmatprep.subr.bf16.mxu1 %v4194_v2 }
0x1050   :  { %2272 = vrot.lane.b32.xlu0 %v4789_v57, %s5183_s28  ;;  %v2619_v57 = vsel %vm596_vm6, %v4917_v52, 0.0  ;;  %v4921_v54 = vpop.eup %4138 }
0x1051   :  { %v2730_v55 = vsel %vm596_vm6, %v4921_v54, 0.0 }
0x1067   :  { %2509 = vadd.xlane.f32.xlu1 %v2508_v51 }
0x106b   :  { %2620 = vadd.xlane.f32.xlu1 %v2619_v57 }
0x106f   :  { %2731 = vadd.xlane.f32.xlu0 %v2730_v55 }
0x107c   :  { %2514 = vrot.lane.b32.xlu1 %v4805_v61, %s5180_s2 }
0x1080   :  { %2625 = vrot.lane.b32.xlu1 %v4805_v61, %s5181_s27 }
0x1084   :  { %2736 = vrot.lane.b32.xlu1 %v4805_v61, %s5183_s28 }
0x10a7   :  { %v1935_v59 = vpop.xlane.xlu1 %1934 }
0x10a8   :  { %4140 = vrcp.f32 %v1935_v59 }
0x10af   :  { %v2046_v60 = vpop.xlane.xlu0 %2045 }
0x10b0   :  { %4142 = vrcp.f32 %v2046_v60 }
0x10b2   :  { %v4141_v62 = vpop.eup %4140 }
0x10b3   :  { %v1937_v63 = vmul.f32 %v4141_v62, %v4885_v23 }
0x10b5   :  { %v1938_v0 = vpack.c.bf16 %v1937_v63, %v1937_v63 }
0x10b7   :  { %v2157_v3 = vpop.xlane.xlu1 %2156  ;;  %3845 = vmatmul.mubr.msk.bf16.vlgmr.msra.gmra.mrb[48].mxu1 %vm611_vm9, %v1938_v0  ;;  %v4068_v0 = vld [vmem:[%s5119_s8 + $0x10] sm:$0xff]  }
0x10b8   :  { %4144 = vrcp.f32 %v2157_v3  ;;  %3855 = vmatpush3.bf16.msra.mxu1 %v2056_v1  ;;  %3856 = vmatprep.mubr.msk.bf16.mxu1 %vm4195_vm0, %v4194_v2 }
0x10b9   :  { %3866 = vmatprep.subr.bf16.mxu1 %v4194_v2  ;;  %3933 = vmatpush3.bf16.msra.mxu0 %v4068_v0  ;;  %v3501_v0 = vld [vmem:[%s5121_s10 + $0x1] ss:$0 sm:$0xff] }
0x10ba   :  { %v4143_v61 = vpop.eup %4142  ;;  %3934 = vmatprep.subr.bf16.mxu0 %v4194_v2 }
0x10bb   :  { %v2048_v4 = vmul.f32 %v4143_v61, %v4889_v53 }
0x10bd   :  { %v2049_v5 = vpack.c.bf16 %v2048_v4, %v2048_v4 }
0x10bf   :  { %v2268_v7 = vpop.xlane.xlu1 %2267  ;;  %3857 = vmatmul.mubr.msk.bf16.vlgmr.msra.gmra.mrb[52].mxu1 %vm611_vm9, %v2049_v5  ;;  %v4069_v5 = vld [vmem:[%s5119_s8 + $0x18] sm:$0xff]  }
0x10c0   :  { %4146 = vrcp.f32 %v2268_v7  ;;  %3867 = vmatpush3.bf16.msra.mxu1 %v2167_v6  ;;  %3868 = vmatprep.mubr.msk.bf16.mxu1 %vm4195_vm0, %v4194_v2 }
0x10c1   :  { %3878 = vmatprep.subr.bf16.mxu1 %v4194_v2  ;;  %3935 = vmatpush3.bf16.msra.mxu0 %v4069_v5 }
0x10c2   :  { %v4145_v8 = vpop.eup %4144  ;;  %3948 = vmatprep.subr.bf16.mxu0 %v4194_v2 }
0x10c3   :  { %v2159_v9 = vmul.f32 %v4145_v8, %v4893_v28  ;;  %v2404_v21 = vpop.permute.xlu1 %2403 }
0x10c4   :  { %v2409_v23 = vand.u32 %v2404_v21, %v4599_v15 }
0x10c5   :  { %v2160_v10 = vpack.c.bf16 %v2159_v9, %v2159_v9 }
0x10c7   :  { %3869 = vmatmul.mubr.msk.bf16.vlgmr.msra.gmra.mrb[56].mxu1 %vm611_vm9, %v2160_v10  ;;  %v2399_v11 = vpop.xlane.xlu0 %2398 }
0x10c8   :  { %4148 = vrcp.f32 %v2399_v11  ;;  %3880 = vmatprep.mubr.msk.bf16.mxu1 %vm4195_vm0, %v4194_v2 }
0x10ca   :  { %v4147_v12 = vpop.eup %4146 }
0x10cb   :  { %v2270_v13 = vmul.f32 %v4147_v12, %v4897_v34  ;;  %v2273_v17 = vpop.permute.xlu0 %2272 }
0x10cc   :  { %v2278_v19 = vand.u32 %v2273_v17, %v4599_v15 }
0x10cd   :  { %v2271_v22 = vpack.c.bf16 %v2270_v13, %v2270_v13 }
0x10ce   :  { %3879 = vmatpush3.bf16.msra.mxu1 %v2278_v19 }
0x10cf   :  { %3890 = vmatprep.subr.bf16.mxu1 %v4194_v2 }
0x10d1   :  { %3881 = vmatmul.mubr.msk.bf16.vlgmr.msra.gmra.mrb[60].mxu1 %vm611_vm9, %v2271_v22 }
0x10d2   :  { %v4149_v24 = vpop.eup %4148  ;;  %3891 = vmatpush3.bf16.msra.mxu1 %v2409_v23  ;;  %3892 = vmatprep.mubr.msk.bf16.mxu1 %vm4195_vm0, %v4194_v2 }
0x10d3   :  { %v2401_v50 = vmul.f32 %v4149_v24, %v4901_v37  ;;  %3902 = vmatprep.subr.bf16.mxu1 %v4194_v2 }
0x10d5   :  { %v2402_v25 = vpack.c.bf16 %v2401_v50, %v2401_v50 }
0x10d9   :  { %3893 = vmatmul.mubr.msk.bf16.vlgmr.msra.gmra.mrb[64].mxu1 %vm611_vm9, %v2402_v25 }
0x10da   :  { %3904 = vmatprep.mubr.msk.bf16.mxu1 %vm4195_vm0, %v4194_v2 }
0x10f4   :  { %v2510_v14 = vpop.xlane.xlu1 %2509 }
0x10f5   :  { %4150 = vrcp.f32 %v2510_v14 }
0x10f8   :  { %v2621_v53 = vpop.xlane.xlu1 %2620 }
0x10f9   :  { %4152 = vrcp.f32 %v2621_v53 }
0x10fc   :  { %v2515_v18 = vpop.permute.xlu1 %2514  ;;  %v2732_v27 = vpop.xlane.xlu0 %2731 }
0x10fd   :  { %v2520_v26 = vand.u32 %v2515_v18, %v4599_v15  ;;  %4154 = vrcp.f32 %v2732_v27 }
0x10ff   :  { %v4151_v30 = vpop.eup %4150  ;;  %3903 = vmatpush3.bf16.msra.mxu1 %v2520_v26 }
0x1100   :  { %v2512_v28 = vmul.f32 %v4151_v30, %v4913_v49  ;;  %v2626_v29 = vpop.permute.xlu1 %2625  ;;  %3914 = vmatprep.subr.bf16.mxu1 %v4194_v2 }
0x1101   :  { %v2631_v31 = vand.u32 %v2626_v29, %v4599_v15 }
0x1102   :  { %v2513_v32 = vpack.c.bf16 %v2512_v28, %v2512_v28 }
0x1103   :  { %v4153_v33 = vpop.eup %4152 }
0x1104   :  { %3905 = vmatmul.mubr.msk.bf16.vlgmr.msra.gmra.mrb[68].mxu1 %vm611_vm9, %v2513_v32  ;;  %v2623_v34 = vmul.f32 %v4153_v33, %v4917_v52  ;;  %v2737_v36 = vpop.permute.xlu1 %2736  ;;  %v3495_v33 = vld [vmem:[%s5120_s9 + $0x1] ss:$0 sm:$0xff] }
0x1105   :  { %3915 = vmatpush3.bf16.msra.mxu1 %v2631_v31  ;;  %3916 = vmatprep.mubr.msk.bf16.mxu1 %vm4195_vm0, %v4194_v2  ;;  %v2742_v39 = vand.u32 %v2737_v36, %v4599_v15 }
0x1106   :  { %3926 = vmatprep.subr.bf16.mxu1 %v4194_v2  ;;  %v2624_v37 = vpack.c.bf16 %v2623_v34, %v2623_v34 }
0x1107   :  { %v4155_v38 = vpop.eup %4154 }
0x1108   :  { %v2734_v40 = vmul.f32 %v4155_v38, %v4921_v54 }
0x110a   :  { %v2735_v35 = vpack.c.bf16 %v2734_v40, %v2734_v40 }
0x110c   :  { %3917 = vmatmul.mubr.msk.bf16.vlgmr.msra.gmra.mrb[72].mxu1 %vm611_vm9, %v2624_v37 }
0x110d   :  { %3927 = vmatpush3.bf16.msra.mxu1 %v2742_v39  ;;  %3928 = vmatprep.mubr.msk.bf16.mxu1 %vm4195_vm0, %v4194_v2 }
0x110e   :  { %3940 = vmatprep.subr.bf16.mxu1 %v4194_v2 }
0x1114   :  { %3929 = vmatmul.mubr.msk.bf16.vlgmr.msra.gmra.mrb[76].mxu1 %vm611_vm9, %v2735_v35 }
0x1115   :  { %3944 = vmatprep.mubr.msk.bf16.mxu1 %vm4195_vm0, %v4194_v2 }
0x118a   :  { %v1981_v41 = vpop.f32.mrb[48].mxu1 }
0x118b   :  { %v3846_v42 = vpop.f32.mrb[49].mxu1 }
0x118c   :  { %v1984_v43 = vpop.f32.mrb[50].mxu1 }
0x118d   :  { %v3847_v15 = vpop.f32.mrb[51].mxu1 }
0x1192   :  { %v2092_v44 = vpop.f32.mrb[52].mxu1 }
0x1193   :  { %v3858_v45 = vpop.f32.mrb[53].mxu1 }
0x1194   :  { %v2095_v46 = vpop.f32.mrb[54].mxu1 }
0x1195   :  { %v3859_v47 = vpop.f32.mrb[55].mxu1 }
0x119a   :  { %v2203_v48 = vpop.f32.mrb[56].mxu1 }
0x119b   :  { %v3870_v49 = vpop.f32.mrb[57].mxu1 }
0x119c   :  { %v2206_v51 = vpop.f32.mrb[58].mxu1 }
0x119d   :  { %v3871_v52 = vpop.f32.mrb[59].mxu1 }
0x119e   :  { %v4070_v52 = vld [vmem:[%s5123_s12 + $0x10] sm:$0xff]  }
0x119f   :  { %3941 = vmatpush3.bf16.msra.mxu1 %v4070_v52 }
0x11a0   :  { %3942 = vmatprep.subr.bf16.mxu1 %v4194_v2 }
0x11a4   :  { %v2314_v57 = vpop.f32.mrb[60].mxu1 }
0x11a5   :  { %2329 = vrot.lane.b32.xlu0 %v2314_v57, %s5184_s1  ;;  %v3882_v54 = vpop.f32.mrb[61].mxu1  ;;  %v4071_v57 = vld [vmem:[%s5123_s12 + $0x18] sm:$0xff]  }
0x11a6   :  { %v2317_v55 = vpop.f32.mrb[62].mxu1  ;;  %3943 = vmatpush3.bf16.msra.mxu1 %v4071_v57  ;;  %v3216_v57 = vld [vmem:[%s5132_s21 + $0x20] sm:$0x3f] }
0x11a7   :  { %v3883_v56 = vpop.f32.mrb[63].mxu1  ;;  %3960 = vmatprep.subr.mxu1 %v4194_v2 }
0x11ac   :  { %v2445_v58 = vpop.f32.mrb[64].mxu1 }
0x11ad   :  { %v3894_v59 = vpop.f32.mrb[65].mxu1 }
0x11ae   :  { %v2448_v60 = vpop.f32.mrb[66].mxu1 }
0x11af   :  { %v3895_v62 = vpop.f32.mrb[67].mxu1 }
0x11d7   :  { %v2556_v63 = vpop.f32.mrb[68].mxu1 }
0x11d8   :  { %v4017_v1 = vpack.i.bf16 %v2092_v44, %v2556_v63  ;;  %v3906_v3 = vpop.f32.mrb[69].mxu1 }
0x11d9   :  { %v2559_v61 = vpop.f32.mrb[70].mxu1 }
0x11da   :  { %4018 = vrot.lane.b32.xlu1 %v4017_v1, %s5185_s29  ;;  %v3907_v4 = vpop.f32.mrb[71].mxu1 }
0x11db   :  { %v3502_v4 = vld [vmem:[%s5122_s11 + $0x1] ss:$0 sm:$0xff] }
0x11df   :  { %v2667_v6 = vpop.f32.mrb[72].mxu1 }
0x11e0   :  { %v4022_v7 = vpack.i.bf16 %v2203_v48, %v2667_v6  ;;  %v3918_v8 = vpop.f32.mrb[73].mxu1 }
0x11e1   :  { %v2670_v9 = vpop.f32.mrb[74].mxu1 }
0x11e2   :  { %4023 = vrot.lane.b32.xlu1 %v4022_v7, %s5186_s25  ;;  %v3919_v10 = vpop.f32.mrb[75].mxu1  ;;  %v4072_v9 = vld [vmem:[%s5125_s14 + $0x20] sm:$0xff]  }
0x11e3   :  { %v4073_v10 = vld [vmem:[%s5125_s14 + $0x28] sm:$0xff]  }
0x11e7   :  { %v2778_v11 = vpop.f32.mrb[76].mxu1 }
0x11e8   :  { %2793 = vrot.lane.b32.xlu1 %v2778_v11, %s5184_s1  ;;  %v3930_v12 = vpop.f32.mrb[77].mxu1  ;;  %v4074_v11 = vld [vmem:[%s5125_s14 + $0x30] sm:$0xff]  }
0x11e9   :  { %v2781_v13 = vpop.f32.mrb[78].mxu1  ;;  %v4075_v12 = vld [vmem:[%s5125_s14 + $0x38] sm:$0xff]  }
0x11ea   :  { %v3931_v17 = vpop.f32.mrb[79].mxu1  ;;  %v3508_v13 = vld [vmem:[%s5124_s13 + $0x1] ss:$0 sm:$0xff] }
0x1217   :  { %v2330_v30 = vpop.permute.xlu0 %2329 }
0x124c   :  { %v4019_v19 = vpop.permute.xlu1 %4018 }
0x124d   :  { %v4021_v22 = vunpack.i.h.bf16 %v4019_v19  ;;  %v4020_v23 = vunpack.i.l.bf16 %v4019_v19 }
0x124f   :  { %v2332_v25 = vsel %vm548_vm5, %v1981_v41, %v4021_v22  ;;  %v2796_v14 = vsel %vm548_vm5, %v2445_v58, %v4020_v23 }
0x1254   :  { %v4024_v21 = vpop.permute.xlu1 %4023 }
0x1255   :  { %v4026_v24 = vunpack.i.h.bf16 %v4024_v21  ;;  %v4025_v50 = vunpack.i.l.bf16 %v4024_v21 }
0x1257   :  { %v2333_v53 = vsel %vm1008_vm10, %v2332_v25, %v4026_v24  ;;  %v2797_v18 = vsel %vm1008_vm10, %v2796_v14, %v4025_v50 }
0x1258   :  { %v2334_v29 = vsel %vm1010_vm11, %v2333_v53, %v2330_v30 }
0x125a   :  { %v2794_v26 = vpop.permute.xlu1 %2793 }
0x125b   :  { %v2798_v27 = vsel %vm1010_vm11, %v2797_v18, %v2794_v26 }
0x125c   :  { %v2800_v28 = vrot.slane %v2798_v27, 3 }
0x125e   :  { %v2802_v31 = vsel %vm1479_vm12, %v2334_v29, %v2800_v28 }
0x125f   :  { %v2803_v32 = vpack.c.bf16 %v2800_v28, %v2802_v31 }
0x1261   :  { %3937 = vmatmul.mubr.msk.bf16.vlgmr.msra.gmra.mrb[80].mxu0 %vm431_vm3, %v2803_v32  ;;  %v3121_v32 = vld [vmem:[%s5130_s19] sm:$0x3f] }
0x1262   :  { %3956 = vmatprep.mubr.msk.bf16.mxu0 %vm4195_vm0, %v4194_v2  ;;  %3949 = vmatpush3.bf16.msra.mxu0 %v4072_v9 }
0x1263   :  { %3950 = vmatprep.subr.bf16.mxu0 %v4194_v2 }
0x1266   :  { %3951 = vmatpush3.bf16.msra.mxu0 %v4073_v10 }
0x1267   :  { %3952 = vmatprep.subr.bf16.mxu0 %v4194_v2 }
0x126a   :  { %3953 = vmatpush3.bf16.msra.mxu0 %v4074_v11 }
0x126b   :  { %3954 = vmatprep.subr.bf16.mxu0 %v4194_v2 }
0x126e   :  { %3955 = vmatpush3.bf16.msra.mxu0 %v4075_v12 }
0x1334   :  { %v2866_v34 = vpop.f32.mrb[80].mxu0 }
0x1335   :  { %v2867_v36 = vadd.f32 %v3495_v33, %v2866_v34  ;;  %v3938_v37 = vpop.f32.mrb[81].mxu0  ;;  %v3521_v34 = vld [vmem:[%s5126_s15 + $0x1] ss:$0 sm:$0xff] }
0x1336   :  { %v2869_v38 = vpop.f32.mrb[82].mxu0 }
0x1337   :  { %v5003_v39 = vadd.f32 %v2867_v36, %v4756_v16  ;;  %v2870_v40 = vadd.f32 %v3495_v33, %v2869_v38  ;;  %v3939_v35 = vpop.f32.mrb[83].mxu0  ;;  %v3120_v33 = vld [vmem:[%s5129_s18] sm:$0x3] }
0x1339   :  { %v2874_v41 = vadd.f32 %v2870_v40, %v4759_v20  ;;  %v2879_v42 = vsel %vm431_vm3, %v5003_v39, 0.0 }
0x133a   :  { %2880 = vadd.xlane.f32.xlu1 %v2879_v42 }
0x133b   :  { %v2882_v43 = vsel %vm435_vm4, %v2874_v41, 0.0 }
0x133c   :  { %2883 = vadd.xlane.f32.xlu0 %v2882_v43 }
0x13c7   :  { %v2881_v15 = vpop.xlane.xlu1 %2880 }
0x13c8   :  { %v2885_v44 = vmul.f32 0.03125, %v2881_v15 }
0x13c9   :  { %v2884_v45 = vpop.xlane.xlu0 %2883 }
0x13ca   :  { %v2887_v46 = vsub.f32 %v5003_v39, %v2885_v44  ;;  %v2886_v47 = vmul.f32 0.03125, %v2884_v45 }
0x13cc   :  { %v2888_v48 = vsub.f32 %v2874_v41, %v2886_v47  ;;  %v2889_v16 = vmul.f32 %v2887_v46, %v2887_v46 }
0x13ce   :  { %v2891_v49 = vsel %vm431_vm3, %v2889_v16, 0.0  ;;  %v2890_v51 = vmul.f32 %v2888_v48, %v2888_v48 }
0x13cf   :  { %2892 = vadd.xlane.f32.xlu1 %v2891_v49 }
0x13d0   :  { %v2894_v20 = vsel %vm435_vm4, %v2890_v51, 0.0 }
0x13d3   :  { %2895 = vadd.xlane.f32.xlu1 %v2894_v20 }
0x145c   :  { %v2893_v54 = vpop.xlane.xlu1 %2892 }
0x145d   :  { %v2897_v55 = vmul.f32 0.03125, %v2893_v54  ;;  %v3212_v54 = vld [vmem:[%s5132_s21] sm:$0xff] }
0x145f   :  { %v2899_v56 = vadd.f32 1e-06, %v2897_v55  ;;  %v3213_v55 = vld [vmem:[%s5132_s21 + $0x8] sm:$0xff] }
0x1460   :  { %v2896_v58 = vpop.xlane.xlu1 %2895 }
0x1461   :  { %4156 = vrsqrt.f32 %v2899_v56  ;;  %v2898_v59 = vmul.f32 0.03125, %v2896_v58  ;;  %v3214_v56 = vld [vmem:[%s5132_s21 + $0x10] sm:$0xff]  ;;  %v4212_v58 = vmov 0.0|0.0  }
0x1462   :  { %3981 = vmatprep.subr.bf16.mxu0 %v4212_v58 }
0x1463   :  { %v2900_v60 = vadd.f32 1e-06, %v2898_v59  ;;  %v3982_v59 = vpack.c.bf16 %v3213_v55, %v3212_v54 }
0x1465   :  { %4158 = vrsqrt.f32 %v2900_v60  ;;  %v3215_v60 = vld [vmem:[%s5132_s21 + $0x18] sm:$0xff] }
0x146b   :  { %v4157_v62 = vpop.eup %4156 }
0x146c   :  { %v2903_v63 = vmul.f32 %v4157_v62, %v2887_v46  ;;  %v3985_v62 = vpack.c.bf16 %v3215_v60, %v3214_v56 }
0x146e   :  { %v2911_v3 = vmul.f32 %v3501_v0, %v2903_v63 }
0x146f   :  { %v4159_v1 = vpop.eup %4158 }
0x1470   :  { %v2904_v61 = vmul.f32 %v4159_v1, %v2888_v48  ;;  %v2919_v6 = vadd.f32 %v3502_v4, %v2911_v3 }
0x1472   :  { %v2912_v5 = vmul.f32 %v3501_v0, %v2904_v61  ;;  %v3527_v61 = vld [vmem:[%s5127_s16] ss:$0 sm:$0xff]  ;;  %s4213_s16 = smov [#allocation2]  }
0x1474   :  { %v2920_v7 = vadd.f32 %v3502_v4, %v2912_v5  ;;  %v3528_v5 = vld [vmem:[%s5128_s17] ss:$0 sm:$0xff]  ;;  %s3386_s17 = sshll.u32 %s4213_s16, 4  ;;  %s3387_s17 = int_to_ptr.vmem [resolvable:$true] %s3386_s17 }
0x1475   :  { %s4170_s7 = scalar_lea.vmem %s3387_s17, 32  ;;  %p4175_p1 = scmp.lt.s32.totalorder %s3387_s17, %s3387_s17 }
0x1476   :  { %v2921_v8 = vpack.c.bf16 %v2920_v7, %v2919_v6  ;;  %p4171_p0 = scmp.ne.s32.totalorder %s3387_s17, %s4170_s7  ;;  %p4176_p2 = scmp.lt.s32.totalorder %s4170_s7, %s4170_s7 }
0x1478   :  { %3945 = vmatmul.mubr.msk.bf16.vlgmr.msra.gmra.mrb[80].mxu1 %vm431_vm3, %v2921_v8  ;;  %p4177_p3 = por %p4176_p2, %p4175_p1 }
0x1479   :  { %3962 = vmatprep.mubr.msk.f32.mxu1 %vm4195_vm0, %v4194_v2  ;;  %3961 = vmatpush3.msk.msra.mxu1 %vm3133_vm14, %v3121_v32 }
0x147a   :  { %3965 = vmatprep.subr.mxu1 %v4194_v2  ;;  %p4178_p4 = pnand %p4177_p3, %p4171_p0 }
0x1480   :  { %3963 = vmatmul.mubr.msk.f32.vlgmr.msra.gmra.mrb[84].mxu1 %vm3129_vm15, %v3120_v33 }
0x1481   :  { %3967 = vmatprep.mubr.msk.f32.mxu1 %vm4195_vm0, %v4194_v2  ;;  %3966 = vmatpush3.msk.msra.mxu1 %vm3133_vm14, %v3216_v57 }
0x154b   :  { %v2984_v17 = vpop.f32.mrb[80].mxu1 }
0x154c   :  { %v2985_v19 = vadd.f32 %v3508_v13, %v2984_v17  ;;  %v3946_v21 = vpop.f32.mrb[81].mxu1 }
0x154d   :  { %v2987_v22 = vpop.f32.mrb[82].mxu1 }
0x154e   :  { %v2993_v23 = vmul.f32 0.70710677, %v2985_v19  ;;  %v2988_v24 = vadd.f32 %v3508_v13, %v2987_v22  ;;  %v3947_v50 = vpop.f32.mrb[83].mxu1  ;;  %v2991_v26 = vmul.f32 0.5, %v2985_v19  ;;  %v3535_v13 = vld [vmem:[%s5133_s22] ss:$0 sm:$0xff] }
0x1550   :  { %4160 = verf.f32 %v2993_v23  ;;  %v2994_v25 = vmul.f32 0.70710677, %v2988_v24  ;;  %v2992_v27 = vmul.f32 0.5, %v2988_v24 }
0x1552   :  { %4162 = verf.f32 %v2994_v25 }
0x1553   :  { %v3203_v43 = vpop.f32.mrb[84].mxu1 }
0x1554   :  { %v3964_v15 = vpop.f32.mrb[85].mxu1 }
0x155a   :  { %v4161_v14 = vpop.eup %4160 }
0x155b   :  { %v2997_v53 = vadd.f32 1.0, %v4161_v14 }
0x155c   :  { %v4163_v18 = vpop.eup %4162 }
0x155d   :  { %v2998_v30 = vadd.f32 1.0, %v4163_v18  ;;  %v2999_v28 = vmul.f32 %v2997_v53, %v2991_v26 }
0x155f   :  { %v3000_v29 = vmul.f32 %v2998_v30, %v2992_v27 }
0x1561   :  { %v3001_v31 = vpack.c.bf16 %v3000_v29, %v2999_v28 }
0x1563   :  { %3957 = vmatmul.mubr.msk.bf16.vlgmr.msra.gmra.mrb[84].mxu0 %vm1713_vm13, %v3001_v31 }
0x1564   :  { %3978 = vmatprep.mubr.msk.f32.mxu0 %vm4195_vm0, %v4194_v2  ;;  %v3529_v2 = vld [vmem:[%s5131_s20] ss:$0 sm:$0xff]  ;;  %3983 = vmatpush3.bf16.msra.mxu0 %v3982_v59 }
0x1565   :  { %v3204_v47 = vadd.f32 %v3529_v2, %v3203_v43  ;;  %3984 = vmatprep.subr.bf16.mxu0 %v4212_v58 }
0x1567   :  { %v3208_v49 = vmul.f32 0.70710677, %v3204_v47  ;;  %v3207_v51 = vmul.f32 0.5, %v3204_v47 }
0x1568   :  { %3986 = vmatpush3.bf16.msra.mxu0 %v3985_v62 }
0x1569   :  { %4164 = verf.f32 %v3208_v49 }
0x1636   :  { %v3080_v36 = vpop.f32.mrb[84].mxu0 }
0x1637   :  { %v3081_v37 = vadd.f32 %v3521_v34, %v3080_v36  ;;  %v3958_v38 = vpop.f32.mrb[85].mxu0 }
0x1638   :  { %v3083_v40 = vpop.f32.mrb[86].mxu0 }
0x1639   :  { %v3086_v35 = vadd.f32 %v3081_v37, %v5003_v39  ;;  %v3959_v41 = vpop.f32.mrb[87].mxu0  ;;  %v4165_v39 = vpop.eup %4164 }
0x163a   :  { %v3210_v20 = vadd.f32 1.0, %v4165_v39 }
0x163b   :  { %v3089_v42 = vsel %vm431_vm3, %v3086_v35, 0.0 }
0x163c   :  { %3090 = vadd.xlane.f32.xlu1 %v3089_v42  ;;  %v3211_v52 = vmul.f32 %v3210_v20, %v3207_v51 }
0x163e   :  { %3968 = vmatmul.mubr.msk.f32.vlgmr.msra.gmra.mrb[86].mxu1 %vm3129_vm15, %v3211_v52 }
0x16c9   :  { %v3091_v44 = vpop.xlane.xlu1 %3090 }
0x16ca   :  { %v3092_v45 = vmul.f32 0.03125, %v3091_v44 }
0x16cc   :  { %v3093_v46 = vsub.f32 %v3086_v35, %v3092_v45 }
0x16ce   :  { %v3094_v48 = vmul.f32 %v3093_v46, %v3093_v46 }
0x16d0   :  { %v3095_v16 = vsel %vm431_vm3, %v3094_v48, 0.0 }
0x16d1   :  { %3096 = vadd.xlane.f32.xlu1 %v3095_v16 }
0x1711   :  { %v3289_v10 = vpop.f32.mrb[86].mxu1 }
0x1712   :  { %v3969_v11 = vpop.f32.mrb[87].mxu1 }
0x175e   :  { %v3097_v63 = vpop.xlane.xlu1 %3096 }
0x175f   :  { %v3098_v0 = vmul.f32 0.03125, %v3097_v63 }
0x1761   :  { %v3099_v1 = vadd.f32 1e-06, %v3098_v0 }
0x1763   :  { %4166 = vrsqrt.f32 %v3099_v1 }
0x176d   :  { %v4167_v3 = vpop.eup %4166 }
0x176e   :  { %v3101_v4 = vmul.f32 %v4167_v3, %v3093_v46 }
0x1770   :  { %v3108_v6 = vmul.f32 %v3527_v61, %v3101_v4 }
0x1772   :  { %v3115_v7 = vadd.f32 %v3528_v5, %v3108_v6 }
0x1774   :  { %v3117_v8 = vrot.slane %v3115_v7, 4 }
0x1776   :  { %v3119_v9 = vsel %vm231_vm1, %v3115_v7, %v3117_v8 }
0x1777   :  { %3979 = vmatmul.mubr.msk.f32.vlgmr.msra.gmra.mrb[88].mxu0 %vm431_vm3, %v3119_v9 }
0x184a   :  { %v3362_v12 = vpop.f32.mrb[88].mxu0 }
0x184b   :  { %v3363_v17 = vadd.f32 %v3362_v12, %v3289_v10  ;;  %v3980_v19 = vpop.f32.mrb[89].mxu0 }
0x184d   :  { %v3373_v21 = vadd.f32 %v3535_v13, %v3363_v17 }
0x184f   :  { %v3375_v22 = vmul.f32 0.70710677, %v3373_v21  ;;  %v3374_v24 = vmul.f32 0.5, %v3373_v21 }
0x1851   :  { %4168 = verf.f32 %v3375_v22 }
0x185b   :  { %v4169_v23 = vpop.eup %4168 }
0x185c   :  { %v3377_v50 = vadd.f32 1.0, %v4169_v23 }
0x185e   :  { %v3378_v25 = vmul.f32 %v3377_v50, %v3374_v24 }
0x1860   :  { %3379 = vst.msk [vmem:[#allocation2] sm:$0x3] %vm435_vm4, %v3378_v25 }
0x1861   :  { %4181 = shalt.err (!%p4178_p4)
}
0x1862   :  { %s4182_s25 = scalar_lea.hbm %s5134_s23, 32 }
0x1863   :  { %p4183_p5 = scmp.ne.s32.totalorder %s5134_s23, %s4182_s25  ;;  %p4186_p6 = scmp.lt.u32.totalorder %s4182_s25, %s5134_s23 }
0x1865   :  { %p4188_p7 = pnand %p4186_p6, %p4183_p5 }
0x1867   :  { %4191 = shalt.err (!%p4188_p7)
}
0x1868   :  { %3389 = dma.vmem_to_hbm [thread:$0]  %s3387_s17, 32, %s5134_s23, [#allocation3]  }
0x1869   :  { %4192 = dma.done.wait [#allocation3], 32  }
0x186a   :  { %4193 = vsyncadd [#allocation3], 4294967264 }
0x186b   :  { %3393 = vsyncpa [#allocation3], 1 }

</bundles_post_ra>
